<compile_context>
chip_gen: v7x
topology: tpu7x:2x2x1
jax: 0.10.0
libtpu: 0.0.40
codegen_flags: <defaults>
</compile_context>

<pallas_src>
import functools
import math

import jax
import jax.numpy as jnp
from jax import lax
from jax.experimental import pallas as pl
from jax.experimental.pallas import tpu as pltpu


def _flash_attn_kernel(xq_ref, xkv_ref,
                       wq_ref, wk_ref, wv_ref,
                       bq_ref, bk_ref, bv_ref,
                       wp_ref, bp_ref,
                       o_ref,
                       q_buf, m_buf, l_buf, acc_buf,
                       *, n_head: int, blk: int):
    # xq_ref / xkv_ref: (1, blk, C) bf16   (query-rows / streamed KV-rows of x)
    # wq/wk/wv_ref:     (C, C)  bf16       (pre-transposed per-section weights)
    # bq/bk/bv_ref:     (1, C)  f32
    # wp_ref:           (C, C)  bf16       (pre-transposed c_proj weight)
    # bp_ref:           (1, C)  f32
    # o_ref:            (1, blk, C)        (output tile, resident across ki)
    # scratch: q_buf (blk, C) bf16; m/l (blk, n_head) f32; acc (blk, C) f32
    qi = pl.program_id(1)
    ki = pl.program_id(2)
    nk = pl.num_programs(2)
    C = xq_ref.shape[-1]
    D = C // n_head
    scale = 1.0 / math.sqrt(D)

    # ---- ki == 0: init online-softmax state and compute this q-tile's Q for
    # all heads with one lane-dense (blk,C)@(C,C) matmul; 1/sqrt(D) folded in
    # once before the bf16 cast.
    @pl.when(ki == 0)
    def _init():
        m_buf[...] = jnp.full(m_buf.shape, -jnp.inf, dtype=jnp.float32)
        l_buf[...] = jnp.zeros(l_buf.shape, dtype=jnp.float32)
        acc_buf[...] = jnp.zeros(acc_buf.shape, dtype=jnp.float32)
        q = jnp.dot(xq_ref[0], wq_ref[...], preferred_element_type=jnp.float32)
        q_buf[...] = ((q + bq_ref[...]) * scale).astype(jnp.bfloat16)

    # ---- Causal block skipping: with tq == tk the KV block is fully masked
    # iff ki > qi, so skip all of its work (K/V projection, QK^T, softmax, PV).
    @pl.when(ki <= qi)
    def _update():
        xkv = xkv_ref[0]
        k = (jnp.dot(xkv, wk_ref[...], preferred_element_type=jnp.float32)
             + bk_ref[...]).astype(jnp.bfloat16)
        v = (jnp.dot(xkv, wv_ref[...], preferred_element_type=jnp.float32)
             + bv_ref[...]).astype(jnp.bfloat16)

        # (blk, blk) additive causal bias, built once per grid step and shared
        # by all heads.  For fully-unmasked blocks (ki < qi) it is all zeros.
        rows = qi * blk + lax.broadcasted_iota(jnp.int32, (blk, blk), 0)
        cols = ki * blk + lax.broadcasted_iota(jnp.int32, (blk, blk), 1)
        mask_bias = jnp.where(rows >= cols, 0.0, -1e30).astype(jnp.float32)

        # Static head loop over small (blk, blk) tiles; every per-head value is
        # folded into scratch refs immediately (static lane-column slices), so
        # nothing per-head outlives one iteration.
        for h in range(n_head):
            cs = slice(h * D, (h + 1) * D)            # this head's columns
            # q @ k^T without an explicit transpose (contract dim 1 with 1).
            s = lax.dot_general(q_buf[:, cs], k[:, cs],
                                (((1,), (1,)), ((), ())),
                                preferred_element_type=jnp.float32)  # (blk,blk)
            s = s + mask_bias

            m_prev = m_buf[:, h:h + 1]
            m_new = jnp.maximum(m_prev, jnp.max(s, axis=-1, keepdims=True))
            alpha = jnp.exp(m_prev - m_new)            # f32 (v5e-safe)
            p = jnp.exp(s - m_new)                     # unnormalized probs
            l_buf[:, h:h + 1] = (alpha * l_buf[:, h:h + 1]
                                 + jnp.sum(p, axis=-1, keepdims=True))
            acc_buf[:, cs] = (alpha * acc_buf[:, cs]
                              + jnp.dot(p.astype(jnp.bfloat16), v[:, cs],
                                        preferred_element_type=jnp.float32))
            m_buf[:, h:h + 1] = m_new

    # ---- Last KV block: normalize each head's columns, then ONE lane-dense
    # (blk, C)@(C, C) output projection (full K = C contraction on the MXU).
    @pl.when(ki == nk - 1)
    def _finalize():
        inv_l = pl.reciprocal(l_buf[...], approx=True)     # EUP slot, ~free
        for h in range(n_head):
            cs = slice(h * D, (h + 1) * D)
            acc_buf[:, cs] = acc_buf[:, cs] * inv_l[:, h:h + 1]
        y = acc_buf[...].astype(jnp.bfloat16)
        out = jnp.dot(y, wp_ref[...], preferred_element_type=jnp.float32)
        o_ref[0] = (out + bp_ref[...]).astype(o_ref.dtype)


def _vmem_limit_bytes() -> int:
    """Per-generation scoped-VMEM cap: ~48 MiB on v7x (64 MiB physical),
    ~96 MiB on v5e/v6e (128 MiB physical)."""
    try:
        cap = pltpu.get_tpu_info().vmem_capacity_bytes
    except Exception:
        cap = 64 * 1024 * 1024          # conservative (v7x-sized) fallback
    return int(min(cap * 3 // 4, 100 * 1024 * 1024))


def causal_self_attention(x, w_attn, b_attn, w_proj, b_proj, n_head,
                          block_size: int = 256):
    """x: (B, T, C) float32; weights in PyTorch nn.Linear convention:
       w_attn (3C, C), b_attn (3C,), w_proj (C, C), b_proj (C,)."""
    B, T, C = x.shape
    assert C % n_head == 0
    blk = min(block_size, T)
    assert T % blk == 0, "T must be a multiple of the q/kv block size"
    n_blocks = T // blk

    # One-time host-side layout / dtype prep: pre-transposed bf16 weight slabs
    # for the MXU, f32 biases, bf16 activations.  Q/K/V weight sections are
    # split so the kernel never materializes an f32 (T, 3C) qkv slab.
    f32, bf16 = jnp.float32, jnp.bfloat16
    x_bf = x.astype(bf16)
    wq_t = jnp.transpose(w_attn[0 * C:1 * C]).astype(bf16)    # (C, C)
    wk_t = jnp.transpose(w_attn[1 * C:2 * C]).astype(bf16)
    wv_t = jnp.transpose(w_attn[2 * C:3 * C]).astype(bf16)
    bq = b_attn[0 * C:1 * C].reshape(1, C).astype(f32)
    bk = b_attn[1 * C:2 * C].reshape(1, C).astype(f32)
    bv = b_attn[2 * C:3 * C].reshape(1, C).astype(f32)
    wp_t = jnp.transpose(w_proj).astype(bf16)                 # (C, C)
    bp = b_proj.reshape(1, C).astype(f32)

    kernel = functools.partial(_flash_attn_kernel, n_head=n_head, blk=blk)

    def build(single_buffer_weights: bool):
        # Constant-index blocks are not re-fetched but are double-buffered by
        # default; Buffered(1) halves their resident VMEM.
        wkw = {"pipeline_mode": pl.Buffered(1)} if single_buffer_weights else {}

        def const_spec(shape):
            return pl.BlockSpec(shape, lambda b, q, k: (0, 0), **wkw)

        grid_spec = pltpu.PrefetchScalarGridSpec(
            num_scalar_prefetch=0,
            grid=(B, n_blocks, n_blocks),
            in_specs=[
                # x rows for this query tile (constant across the KV axis).
                pl.BlockSpec((1, blk, C), lambda b, q, k: (b, q, 0)),
                # x rows for the streamed KV tile.
                pl.BlockSpec((1, blk, C), lambda b, q, k: (b, k, 0)),
                const_spec((C, C)), const_spec((C, C)), const_spec((C, C)),
                const_spec((1, C)), const_spec((1, C)), const_spec((1, C)),
                const_spec((C, C)), const_spec((1, C)),
            ],
            out_specs=pl.BlockSpec((1, blk, C), lambda b, q, k: (b, q, 0)),
            scratch_shapes=[
                pltpu.VMEM((blk, C), jnp.bfloat16),        # cached Q (all heads)
                pltpu.VMEM((blk, n_head), jnp.float32),    # running max m
                pltpu.VMEM((blk, n_head), jnp.float32),    # running sum l
                pltpu.VMEM((blk, C), jnp.float32),         # context accumulator
            ],
        )
        return pl.pallas_call(
            kernel,
            out_shape=jax.ShapeDtypeStruct((B, T, C), x.dtype),
            grid_spec=grid_spec,
            compiler_params=pltpu.CompilerParams(
                # Batch rows and query tiles are independent -> shard across
                # v7x's 2 TensorCores even for B == 1; the KV axis carries the
                # online-softmax state and stays sequential.
                dimension_semantics=("parallel", "parallel", "arbitrary"),
                vmem_limit_bytes=_vmem_limit_bytes(),
            ),
        )

    args = (x_bf, x_bf, wq_t, wk_t, wv_t, bq, bk, bv, wp_t, bp)
    try:
        return build(single_buffer_weights=True)(*args)
    except Exception:
        # Fallback for Pallas builds that reject single-buffered pipeline_mode.
        return build(single_buffer_weights=False)(*args)


def _reference(x, w_attn, b_attn, w_proj, b_proj, n_head):
    B, T, C = x.shape
    D = C // n_head
    qkv = x @ w_attn.T + b_attn
    q, k, v = jnp.split(qkv, 3, axis=-1)
    q = q.reshape(B, T, n_head, D).transpose(0, 2, 1, 3)
    k = k.reshape(B, T, n_head, D).transpose(0, 2, 1, 3)
    v = v.reshape(B, T, n_head, D).transpose(0, 2, 1, 3)
    s = jnp.einsum("bhtd,bhsd->bhts", q, k) / math.sqrt(D)
    mask = jnp.tril(jnp.ones((T, T), bool))
    s = jnp.where(mask, s, -jnp.inf)
    p = jax.nn.softmax(s, axis=-1)
    y = jnp.einsum("bhts,bhsd->bhtd", p, v)
    y = y.transpose(0, 2, 1, 3).reshape(B, T, C)
    return y @ w_proj.T + b_proj


if __name__ == "__main__":
    # Small config consistent with the module: n_embd=32, n_head=4,
    # block_size >= T.  T=16 with an 8-row tile exercises KV streaming,
    # online softmax carry and causal block skipping (qi=0, ki=1 is skipped).
    B, T, C, n_head = 2, 16, 32, 4

    key = jax.random.PRNGKey(0)
    kx, kw1, kw2 = jax.random.split(key, 3)

    x = jax.random.normal(kx, (B, T, C), dtype=jnp.float32)
    # Deterministic parameter init (synthetic, GPT-2-like scale 0.02).
    w_attn = 0.02 * jax.random.normal(kw1, (3 * C, C), dtype=jnp.float32)
    b_attn = jnp.zeros((3 * C,), dtype=jnp.float32)
    w_proj = 0.02 * jax.random.normal(kw2, (C, C), dtype=jnp.float32)
    b_proj = jnp.zeros((C,), dtype=jnp.float32)

    out = causal_self_attention(x, w_attn, b_attn, w_proj, b_proj, n_head,
                                block_size=8)
    out = jax.block_until_ready(out)

    ref = _reference(x, w_attn, b_attn, w_proj, b_proj, n_head)
    # bf16 MXU operands + approx reciprocal softmax denominator -> looser
    # tolerance vs the f32 reference (documented, ~1e-3-level relative error).
    assert jnp.allclose(out, ref, atol=2e-2, rtol=2e-2), "mismatch vs reference"

    print("KERNEL_OK")
</pallas_src>

<mosaic_0001>
module attributes {stable_mosaic.version = 11 : i64} {
  func.func @_flash_attn_kernel(%arg0: i32, %arg1: i32, %arg2: i32, %arg3: memref<1x8x32xbf16, #tpu.memory_space<vmem>>, %arg4: memref<1x8x32xbf16, #tpu.memory_space<vmem>>, %arg5: memref<32x32xbf16, #tpu.memory_space<vmem>>, %arg6: memref<32x32xbf16, #tpu.memory_space<vmem>>, %arg7: memref<32x32xbf16, #tpu.memory_space<vmem>>, %arg8: memref<1x32xf32, #tpu.memory_space<vmem>>, %arg9: memref<1x32xf32, #tpu.memory_space<vmem>>, %arg10: memref<1x32xf32, #tpu.memory_space<vmem>>, %arg11: memref<32x32xbf16, #tpu.memory_space<vmem>>, %arg12: memref<1x32xf32, #tpu.memory_space<vmem>>, %arg13: memref<1x8x32xf32, #tpu.memory_space<vmem>>, %arg14: memref<8x32xbf16, #tpu.memory_space<vmem>>, %arg15: memref<8x4xf32, #tpu.memory_space<vmem>>, %arg16: memref<8x4xf32, #tpu.memory_space<vmem>>, %arg17: memref<8x32xf32, #tpu.memory_space<vmem>>) attributes {dimension_semantics = [#tpu.dimension_semantics<parallel>, #tpu.dimension_semantics<parallel>, #tpu.dimension_semantics<arbitrary>], iteration_bounds = array<i64: 2, 2, 2>, scalar_prefetch = 0 : i64, scratch_operands = 4 : i64, tpu.core_type = #tpu.core_type<tc>, window_params = [{transform_indices = @transform_0, window_bounds = array<i64: 1, 8, 32>}, {transform_indices = @transform_1, window_bounds = array<i64: 1, 8, 32>}, {pipeline_mode = #tpu.pipeline_mode<synchronous>, transform_indices = @transform_2, window_bounds = array<i64: 32, 32>}, {pipeline_mode = #tpu.pipeline_mode<synchronous>, transform_indices = @transform_3, window_bounds = array<i64: 32, 32>}, {pipeline_mode = #tpu.pipeline_mode<synchronous>, transform_indices = @transform_4, window_bounds = array<i64: 32, 32>}, {pipeline_mode = #tpu.pipeline_mode<synchronous>, transform_indices = @transform_5, window_bounds = array<i64: 1, 32>}, {pipeline_mode = #tpu.pipeline_mode<synchronous>, transform_indices = @transform_6, window_bounds = array<i64: 1, 32>}, {pipeline_mode = #tpu.pipeline_mode<synchronous>, transform_indices = @transform_7, window_bounds = array<i64: 1, 32>}, {pipeline_mode = #tpu.pipeline_mode<synchronous>, transform_indices = @transform_8, window_bounds = array<i64: 32, 32>}, {pipeline_mode = #tpu.pipeline_mode<synchronous>, transform_indices = @transform_9, window_bounds = array<i64: 1, 32>}, {transform_indices = @transform_10, window_bounds = array<i64: 1, 8, 32>}]} {
    %c0_i32 = arith.constant 0 : i32
    %0 = arith.cmpi eq, %arg2, %c0_i32 : i32
    %1 = arith.extui %0 : i1 to i32
    %c0_i32_0 = arith.constant 0 : i32
    %2 = arith.cmpi ne, %1, %c0_i32_0 : i32
    scf.if %2 {
      %cst = arith.constant 0xFF800000 : f32
      %9 = vector.broadcast %cst : f32 to vector<8x4xf32>
      %c0 = arith.constant 0 : index
      %c0_3 = arith.constant 0 : index
      %10 = vector.load %arg15[%c0, %c0_3] : memref<8x4xf32, #tpu.memory_space<vmem>>, vector<8x4xf32>
      tpu.vector_store %arg15[%c0, %c0_3], %9 {strides = array<i32>} : memref<8x4xf32, #tpu.memory_space<vmem>>, vector<8x4xf32>,
      %cst_4 = arith.constant 0.000000e+00 : f32
      %11 = vector.broadcast %cst_4 : f32 to vector<8x4xf32>
      %c0_5 = arith.constant 0 : index
      %c0_6 = arith.constant 0 : index
      %12 = vector.load %arg16[%c0_5, %c0_6] : memref<8x4xf32, #tpu.memory_space<vmem>>, vector<8x4xf32>
      tpu.vector_store %arg16[%c0_5, %c0_6], %11 {strides = array<i32>} : memref<8x4xf32, #tpu.memory_space<vmem>>, vector<8x4xf32>,
      %cst_7 = arith.constant 0.000000e+00 : f32
      %13 = vector.broadcast %cst_7 : f32 to vector<8x32xf32>
      %c0_8 = arith.constant 0 : index
      %c0_9 = arith.constant 0 : index
      %14 = vector.load %arg17[%c0_8, %c0_9] : memref<8x32xf32, #tpu.memory_space<vmem>>, vector<8x32xf32>
      tpu.vector_store %arg17[%c0_8, %c0_9], %13 {strides = array<i32>} : memref<8x32xf32, #tpu.memory_space<vmem>>, vector<8x32xf32>,
      %c0_10 = arith.constant 0 : index
      %c0_11 = arith.constant 0 : index
      %c0_12 = arith.constant 0 : index
      %15 = vector.load %arg3[%c0_10, %c0_11, %c0_12] : memref<1x8x32xbf16, #tpu.memory_space<vmem>>, vector<1x8x32xbf16>
      %16 = vector.shape_cast %15 : vector<1x8x32xbf16> to vector<8x32xbf16>
      %c0_13 = arith.constant 0 : index
      %c0_14 = arith.constant 0 : index
      %17 = vector.load %arg5[%c0_13, %c0_14] : memref<32x32xbf16, #tpu.memory_space<vmem>>, vector<32x32xbf16>
      %cst_15 = arith.constant dense<0.000000e+00> : vector<8x32xf32>
      %18 = tpu.matmul %16, %17, %cst_15 {dimension_numbers = #tpu.dot_dimension_numbers<[1], [0], [0], [1], [0, 0, 1, 1], [], []>} : vector<8x32xbf16>, vector<32x32xbf16>, vector<8x32xf32> -> vector<8x32xf32>
      %c0_16 = arith.constant 0 : index
      %c0_17 = arith.constant 0 : index
      %19 = vector.load %arg8[%c0_16, %c0_17] : memref<1x32xf32, #tpu.memory_space<vmem>>, vector<1x32xf32>
      %20 = vector.broadcast %19 : vector<1x32xf32> to vector<8x32xf32>
      %21 = arith.addf %18, %20 : vector<8x32xf32>
      %cst_18 = arith.constant 0.353553385 : f32
      %22 = vector.broadcast %cst_18 : f32 to vector<8x32xf32>
      %23 = arith.mulf %21, %22 : vector<8x32xf32>
      %24 = arith.truncf %23 : vector<8x32xf32> to vector<8x32xbf16>
      %c0_19 = arith.constant 0 : index
      %c0_20 = arith.constant 0 : index
      %25 = vector.load %arg14[%c0_19, %c0_20] : memref<8x32xbf16, #tpu.memory_space<vmem>>, vector<8x32xbf16>
      tpu.vector_store %arg14[%c0_19, %c0_20], %24 {strides = array<i32>} : memref<8x32xbf16, #tpu.memory_space<vmem>>, vector<8x32xbf16>,
    } else {
    }
    %3 = arith.cmpi sle, %arg2, %arg1 : i32
    %4 = arith.extui %3 : i1 to i32
    %c0_i32_1 = arith.constant 0 : i32
    %5 = arith.cmpi ne, %4, %c0_i32_1 : i32
    scf.if %5 {
      %c0 = arith.constant 0 : index
      %c0_3 = arith.constant 0 : index
      %c0_4 = arith.constant 0 : index
      %9 = vector.load %arg4[%c0, %c0_3, %c0_4] : memref<1x8x32xbf16, #tpu.memory_space<vmem>>, vector<1x8x32xbf16>
      %10 = vector.shape_cast %9 : vector<1x8x32xbf16> to vector<8x32xbf16>
      %c0_5 = arith.constant 0 : index
      %c0_6 = arith.constant 0 : index
      %11 = vector.load %arg6[%c0_5, %c0_6] : memref<32x32xbf16, #tpu.memory_space<vmem>>, vector<32x32xbf16>
      %cst = arith.constant dense<0.000000e+00> : vector<8x32xf32>
      %12 = tpu.matmul %10, %11, %cst {dimension_numbers = #tpu.dot_dimension_numbers<[1], [0], [0], [1], [0, 0, 1, 1], [], []>} : vector<8x32xbf16>, vector<32x32xbf16>, vector<8x32xf32> -> vector<8x32xf32>
      %c0_7 = arith.constant 0 : index
      %c0_8 = arith.constant 0 : index
      %13 = vector.load %arg9[%c0_7, %c0_8] : memref<1x32xf32, #tpu.memory_space<vmem>>, vector<1x32xf32>
      %14 = vector.broadcast %13 : vector<1x32xf32> to vector<8x32xf32>
      %15 = arith.addf %12, %14 : vector<8x32xf32>
      %16 = arith.truncf %15 : vector<8x32xf32> to vector<8x32xbf16>
      %c0_9 = arith.constant 0 : index
      %c0_10 = arith.constant 0 : index
      %17 = vector.load %arg7[%c0_9, %c0_10] : memref<32x32xbf16, #tpu.memory_space<vmem>>, vector<32x32xbf16>
      %cst_11 = arith.constant dense<0.000000e+00> : vector<8x32xf32>
      %18 = tpu.matmul %10, %17, %cst_11 {dimension_numbers = #tpu.dot_dimension_numbers<[1], [0], [0], [1], [0, 0, 1, 1], [], []>} : vector<8x32xbf16>, vector<32x32xbf16>, vector<8x32xf32> -> vector<8x32xf32>
      %c0_12 = arith.constant 0 : index
      %c0_13 = arith.constant 0 : index
      %19 = vector.load %arg10[%c0_12, %c0_13] : memref<1x32xf32, #tpu.memory_space<vmem>>, vector<1x32xf32>
      %20 = vector.broadcast %19 : vector<1x32xf32> to vector<8x32xf32>
      %21 = arith.addf %18, %20 : vector<8x32xf32>
      %22 = arith.truncf %21 : vector<8x32xf32> to vector<8x32xbf16>
      %c8_i32 = arith.constant 8 : i32
      %23 = arith.muli %arg1, %c8_i32 : i32
      %24 = tpu.iota {dimensions = array<i32: 0>} : vector<8x8xi32>
      %25 = vector.broadcast %23 : i32 to vector<8x8xi32>
      %26 = arith.addi %25, %24 : vector<8x8xi32>
      %c8_i32_14 = arith.constant 8 : i32
      %27 = arith.muli %arg2, %c8_i32_14 : i32
      %28 = tpu.iota {dimensions = array<i32: 1>} : vector<8x8xi32>
      %29 = vector.broadcast %27 : i32 to vector<8x8xi32>
      %30 = arith.addi %29, %28 : vector<8x8xi32>
      %31 = arith.cmpi sge, %26, %30 : vector<8x8xi32>
      %cst_15 = arith.constant 0.000000e+00 : f32
      %cst_16 = arith.constant -1.000000e+30 : f32
      %32 = vector.broadcast %cst_15 : f32 to vector<8x8xf32>
      %33 = vector.broadcast %cst_16 : f32 to vector<8x8xf32>
      %34 = arith.select %31, %32, %33 : vector<8x8xi1>, vector<8x8xf32>
      %c0_17 = arith.constant 0 : index
      %c0_18 = arith.constant 0 : index
      %35 = vector.load %arg14[%c0_17, %c0_18] : memref<8x32xbf16, #tpu.memory_space<vmem>>, vector<8x8xbf16>
      %36 = vector.extract_strided_slice %16 {offsets = [0, 0], sizes = [8, 8], strides = [1, 1]} : vector<8x32xbf16> to vector<8x8xbf16>
      %cst_19 = arith.constant dense<0.000000e+00> : vector<8x8xf32>
      %37 = tpu.matmul %35, %36, %cst_19 {dimension_numbers = #tpu.dot_dimension_numbers<[1], [1], [0], [0], [0, 0, 1, 0], [], []>} : vector<8x8xbf16>, vector<8x8xbf16>, vector<8x8xf32> -> vector<8x8xf32>
      %38 = arith.addf %37, %34 : vector<8x8xf32>
      %c0_20 = arith.constant 0 : index
      %c0_21 = arith.constant 0 : index
      %39 = vector.load %arg15[%c0_20, %c0_21] : memref<8x4xf32, #tpu.memory_space<vmem>>, vector<8x1xf32>
      %cst_22 = arith.constant dense<0xFF800000> : vector<8xf32>
      %40 = vector.multi_reduction <maximumf>, %38, %cst_22 [1] : vector<8x8xf32> to vector<8xf32>
      %41 = vector.shape_cast %40 : vector<8xf32> to vector<8x1xf32>
      %42 = arith.maximumf %39, %41 : vector<8x1xf32>
      %43 = arith.subf %39, %42 : vector<8x1xf32>
      %44 = math.exp %43 : vector<8x1xf32>
      %45 = vector.broadcast %42 : vector<8x1xf32> to vector<8x8xf32>
      %46 = arith.subf %38, %45 : vector<8x8xf32>
      %47 = math.exp %46 : vector<8x8xf32>
      %c0_23 = arith.constant 0 : index
      %c0_24 = arith.constant 0 : index
      %48 = vector.load %arg16[%c0_23, %c0_24] : memref<8x4xf32, #tpu.memory_space<vmem>>, vector<8x1xf32>
      %49 = arith.mulf %44, %48 : vector<8x1xf32>
      %cst_25 = arith.constant dense<0.000000e+00> : vector<8xf32>
      %50 = vector.multi_reduction <add>, %47, %cst_25 [1] : vector<8x8xf32> to vector<8xf32>
      %51 = vector.shape_cast %50 : vector<8xf32> to vector<8x1xf32>
      %52 = arith.addf %49, %51 : vector<8x1xf32>
      %c0_26 = arith.constant 0 : index
      %c0_27 = arith.constant 0 : index
      %53 = vector.load %arg16[%c0_26, %c0_27] : memref<8x4xf32, #tpu.memory_space<vmem>>, vector<8x1xf32>
      tpu.vector_store %arg16[%c0_26, %c0_27], %52 {strides = array<i32>} : memref<8x4xf32, #tpu.memory_space<vmem>>, vector<8x1xf32>,
      %c0_28 = arith.constant 0 : index
      %c0_29 = arith.constant 0 : index
      %54 = vector.load %arg17[%c0_28, %c0_29] : memref<8x32xf32, #tpu.memory_space<vmem>>, vector<8x8xf32>
      %55 = vector.broadcast %44 : vector<8x1xf32> to vector<8x8xf32>
      %56 = arith.mulf %55, %54 : vector<8x8xf32>
      %57 = arith.truncf %47 : vector<8x8xf32> to vector<8x8xbf16>
      %58 = vector.extract_strided_slice %22 {offsets = [0, 0], sizes = [8, 8], strides = [1, 1]} : vector<8x32xbf16> to vector<8x8xbf16>
      %cst_30 = arith.constant dense<0.000000e+00> : vector<8x8xf32>
      %59 = tpu.matmul %57, %58, %cst_30 {dimension_numbers = #tpu.dot_dimension_numbers<[1], [0], [0], [1], [0, 0, 1, 1], [], []>} : vector<8x8xbf16>, vector<8x8xbf16>, vector<8x8xf32> -> vector<8x8xf32>
      %60 = arith.addf %56, %59 : vector<8x8xf32>
      %c0_31 = arith.constant 0 : index
      %c0_32 = arith.constant 0 : index
      %61 = vector.load %arg17[%c0_31, %c0_32] : memref<8x32xf32, #tpu.memory_space<vmem>>, vector<8x8xf32>
      tpu.vector_store %arg17[%c0_31, %c0_32], %60 {strides = array<i32>} : memref<8x32xf32, #tpu.memory_space<vmem>>, vector<8x8xf32>,
      %c0_33 = arith.constant 0 : index
      %c0_34 = arith.constant 0 : index
      %62 = vector.load %arg15[%c0_33, %c0_34] : memref<8x4xf32, #tpu.memory_space<vmem>>, vector<8x1xf32>
      tpu.vector_store %arg15[%c0_33, %c0_34], %42 {strides = array<i32>} : memref<8x4xf32, #tpu.memory_space<vmem>>, vector<8x1xf32>,
      %c0_35 = arith.constant 0 : index
      %c8 = arith.constant 8 : index
      %63 = vector.load %arg14[%c0_35, %c8] : memref<8x32xbf16, #tpu.memory_space<vmem>>, vector<8x8xbf16>
      %64 = vector.extract_strided_slice %16 {offsets = [0, 8], sizes = [8, 8], strides = [1, 1]} : vector<8x32xbf16> to vector<8x8xbf16>
      %cst_36 = arith.constant dense<0.000000e+00> : vector<8x8xf32>
      %65 = tpu.matmul %63, %64, %cst_36 {dimension_numbers = #tpu.dot_dimension_numbers<[1], [1], [0], [0], [0, 0, 1, 0], [], []>} : vector<8x8xbf16>, vector<8x8xbf16>, vector<8x8xf32> -> vector<8x8xf32>
      %66 = arith.addf %65, %34 : vector<8x8xf32>
      %c0_37 = arith.constant 0 : index
      %c1 = arith.constant 1 : index
      %67 = vector.load %arg15[%c0_37, %c1] : memref<8x4xf32, #tpu.memory_space<vmem>>, vector<8x1xf32>
      %cst_38 = arith.constant dense<0xFF800000> : vector<8xf32>
      %68 = vector.multi_reduction <maximumf>, %66, %cst_38 [1] : vector<8x8xf32> to vector<8xf32>
      %69 = vector.shape_cast %68 : vector<8xf32> to vector<8x1xf32>
      %70 = arith.maximumf %67, %69 : vector<8x1xf32>
      %71 = arith.subf %67, %70 : vector<8x1xf32>
      %72 = math.exp %71 : vector<8x1xf32>
      %73 = vector.broadcast %70 : vector<8x1xf32> to vector<8x8xf32>
      %74 = arith.subf %66, %73 : vector<8x8xf32>
      %75 = math.exp %74 : vector<8x8xf32>
      %c0_39 = arith.constant 0 : index
      %c1_40 = arith.constant 1 : index
      %76 = vector.load %arg16[%c0_39, %c1_40] : memref<8x4xf32, #tpu.memory_space<vmem>>, vector<8x1xf32>
      %77 = arith.mulf %72, %76 : vector<8x1xf32>
      %cst_41 = arith.constant dense<0.000000e+00> : vector<8xf32>
      %78 = vector.multi_reduction <add>, %75, %cst_41 [1] : vector<8x8xf32> to vector<8xf32>
      %79 = vector.shape_cast %78 : vector<8xf32> to vector<8x1xf32>
      %80 = arith.addf %77, %79 : vector<8x1xf32>
      %c0_42 = arith.constant 0 : index
      %c1_43 = arith.constant 1 : index
      %81 = vector.load %arg16[%c0_42, %c1_43] : memref<8x4xf32, #tpu.memory_space<vmem>>, vector<8x1xf32>
      tpu.vector_store %arg16[%c0_42, %c1_43], %80 {strides = array<i32>} : memref<8x4xf32, #tpu.memory_space<vmem>>, vector<8x1xf32>,
      %c0_44 = arith.constant 0 : index
      %c8_45 = arith.constant 8 : index
      %82 = vector.load %arg17[%c0_44, %c8_45] : memref<8x32xf32, #tpu.memory_space<vmem>>, vector<8x8xf32>
      %83 = vector.broadcast %72 : vector<8x1xf32> to vector<8x8xf32>
      %84 = arith.mulf %83, %82 : vector<8x8xf32>
      %85 = arith.truncf %75 : vector<8x8xf32> to vector<8x8xbf16>
      %86 = vector.extract_strided_slice %22 {offsets = [0, 8], sizes = [8, 8], strides = [1, 1]} : vector<8x32xbf16> to vector<8x8xbf16>
      %cst_46 = arith.constant dense<0.000000e+00> : vector<8x8xf32>
      %87 = tpu.matmul %85, %86, %cst_46 {dimension_numbers = #tpu.dot_dimension_numbers<[1], [0], [0], [1], [0, 0, 1, 1], [], []>} : vector<8x8xbf16>, vector<8x8xbf16>, vector<8x8xf32> -> vector<8x8xf32>
      %88 = arith.addf %84, %87 : vector<8x8xf32>
      %c0_47 = arith.constant 0 : index
      %c8_48 = arith.constant 8 : index
      %89 = vector.load %arg17[%c0_47, %c8_48] : memref<8x32xf32, #tpu.memory_space<vmem>>, vector<8x8xf32>
      tpu.vector_store %arg17[%c0_47, %c8_48], %88 {strides = array<i32>} : memref<8x32xf32, #tpu.memory_space<vmem>>, vector<8x8xf32>,
      %c0_49 = arith.constant 0 : index
      %c1_50 = arith.constant 1 : index
      %90 = vector.load %arg15[%c0_49, %c1_50] : memref<8x4xf32, #tpu.memory_space<vmem>>, vector<8x1xf32>
      tpu.vector_store %arg15[%c0_49, %c1_50], %70 {strides = array<i32>} : memref<8x4xf32, #tpu.memory_space<vmem>>, vector<8x1xf32>,
      %c0_51 = arith.constant 0 : index
      %c16 = arith.constant 16 : index
      %91 = vector.load %arg14[%c0_51, %c16] : memref<8x32xbf16, #tpu.memory_space<vmem>>, vector<8x8xbf16>
      %92 = vector.extract_strided_slice %16 {offsets = [0, 16], sizes = [8, 8], strides = [1, 1]} : vector<8x32xbf16> to vector<8x8xbf16>
      %cst_52 = arith.constant dense<0.000000e+00> : vector<8x8xf32>
      %93 = tpu.matmul %91, %92, %cst_52 {dimension_numbers = #tpu.dot_dimension_numbers<[1], [1], [0], [0], [0, 0, 1, 0], [], []>} : vector<8x8xbf16>, vector<8x8xbf16>, vector<8x8xf32> -> vector<8x8xf32>
      %94 = arith.addf %93, %34 : vector<8x8xf32>
      %c0_53 = arith.constant 0 : index
      %c2 = arith.constant 2 : index
      %95 = vector.load %arg15[%c0_53, %c2] : memref<8x4xf32, #tpu.memory_space<vmem>>, vector<8x1xf32>
      %cst_54 = arith.constant dense<0xFF800000> : vector<8xf32>
      %96 = vector.multi_reduction <maximumf>, %94, %cst_54 [1] : vector<8x8xf32> to vector<8xf32>
      %97 = vector.shape_cast %96 : vector<8xf32> to vector<8x1xf32>
      %98 = arith.maximumf %95, %97 : vector<8x1xf32>
      %99 = arith.subf %95, %98 : vector<8x1xf32>
      %100 = math.exp %99 : vector<8x1xf32>
      %101 = vector.broadcast %98 : vector<8x1xf32> to vector<8x8xf32>
      %102 = arith.subf %94, %101 : vector<8x8xf32>
      %103 = math.exp %102 : vector<8x8xf32>
      %c0_55 = arith.constant 0 : index
      %c2_56 = arith.constant 2 : index
      %104 = vector.load %arg16[%c0_55, %c2_56] : memref<8x4xf32, #tpu.memory_space<vmem>>, vector<8x1xf32>
      %105 = arith.mulf %100, %104 : vector<8x1xf32>
      %cst_57 = arith.constant dense<0.000000e+00> : vector<8xf32>
      %106 = vector.multi_reduction <add>, %103, %cst_57 [1] : vector<8x8xf32> to vector<8xf32>
      %107 = vector.shape_cast %106 : vector<8xf32> to vector<8x1xf32>
      %108 = arith.addf %105, %107 : vector<8x1xf32>
      %c0_58 = arith.constant 0 : index
      %c2_59 = arith.constant 2 : index
      %109 = vector.load %arg16[%c0_58, %c2_59] : memref<8x4xf32, #tpu.memory_space<vmem>>, vector<8x1xf32>
      tpu.vector_store %arg16[%c0_58, %c2_59], %108 {strides = array<i32>} : memref<8x4xf32, #tpu.memory_space<vmem>>, vector<8x1xf32>,
      %c0_60 = arith.constant 0 : index
      %c16_61 = arith.constant 16 : index
      %110 = vector.load %arg17[%c0_60, %c16_61] : memref<8x32xf32, #tpu.memory_space<vmem>>, vector<8x8xf32>
      %111 = vector.broadcast %100 : vector<8x1xf32> to vector<8x8xf32>
      %112 = arith.mulf %111, %110 : vector<8x8xf32>
      %113 = arith.truncf %103 : vector<8x8xf32> to vector<8x8xbf16>
      %114 = vector.extract_strided_slice %22 {offsets = [0, 16], sizes = [8, 8], strides = [1, 1]} : vector<8x32xbf16> to vector<8x8xbf16>
      %cst_62 = arith.constant dense<0.000000e+00> : vector<8x8xf32>
      %115 = tpu.matmul %113, %114, %cst_62 {dimension_numbers = #tpu.dot_dimension_numbers<[1], [0], [0], [1], [0, 0, 1, 1], [], []>} : vector<8x8xbf16>, vector<8x8xbf16>, vector<8x8xf32> -> vector<8x8xf32>
      %116 = arith.addf %112, %115 : vector<8x8xf32>
      %c0_63 = arith.constant 0 : index
      %c16_64 = arith.constant 16 : index
      %117 = vector.load %arg17[%c0_63, %c16_64] : memref<8x32xf32, #tpu.memory_space<vmem>>, vector<8x8xf32>
      tpu.vector_store %arg17[%c0_63, %c16_64], %116 {strides = array<i32>} : memref<8x32xf32, #tpu.memory_space<vmem>>, vector<8x8xf32>,
      %c0_65 = arith.constant 0 : index
      %c2_66 = arith.constant 2 : index
      %118 = vector.load %arg15[%c0_65, %c2_66] : memref<8x4xf32, #tpu.memory_space<vmem>>, vector<8x1xf32>
      tpu.vector_store %arg15[%c0_65, %c2_66], %98 {strides = array<i32>} : memref<8x4xf32, #tpu.memory_space<vmem>>, vector<8x1xf32>,
      %c0_67 = arith.constant 0 : index
      %c24 = arith.constant 24 : index
      %119 = vector.load %arg14[%c0_67, %c24] : memref<8x32xbf16, #tpu.memory_space<vmem>>, vector<8x8xbf16>
      %120 = vector.extract_strided_slice %16 {offsets = [0, 24], sizes = [8, 8], strides = [1, 1]} : vector<8x32xbf16> to vector<8x8xbf16>
      %cst_68 = arith.constant dense<0.000000e+00> : vector<8x8xf32>
      %121 = tpu.matmul %119, %120, %cst_68 {dimension_numbers = #tpu.dot_dimension_numbers<[1], [1], [0], [0], [0, 0, 1, 0], [], []>} : vector<8x8xbf16>, vector<8x8xbf16>, vector<8x8xf32> -> vector<8x8xf32>
      %122 = arith.addf %121, %34 : vector<8x8xf32>
      %c0_69 = arith.constant 0 : index
      %c3 = arith.constant 3 : index
      %123 = vector.load %arg15[%c0_69, %c3] : memref<8x4xf32, #tpu.memory_space<vmem>>, vector<8x1xf32>
      %cst_70 = arith.constant dense<0xFF800000> : vector<8xf32>
      %124 = vector.multi_reduction <maximumf>, %122, %cst_70 [1] : vector<8x8xf32> to vector<8xf32>
      %125 = vector.shape_cast %124 : vector<8xf32> to vector<8x1xf32>
      %126 = arith.maximumf %123, %125 : vector<8x1xf32>
      %127 = arith.subf %123, %126 : vector<8x1xf32>
      %128 = math.exp %127 : vector<8x1xf32>
      %129 = vector.broadcast %126 : vector<8x1xf32> to vector<8x8xf32>
      %130 = arith.subf %122, %129 : vector<8x8xf32>
      %131 = math.exp %130 : vector<8x8xf32>
      %c0_71 = arith.constant 0 : index
      %c3_72 = arith.constant 3 : index
      %132 = vector.load %arg16[%c0_71, %c3_72] : memref<8x4xf32, #tpu.memory_space<vmem>>, vector<8x1xf32>
      %133 = arith.mulf %128, %132 : vector<8x1xf32>
      %cst_73 = arith.constant dense<0.000000e+00> : vector<8xf32>
      %134 = vector.multi_reduction <add>, %131, %cst_73 [1] : vector<8x8xf32> to vector<8xf32>
      %135 = vector.shape_cast %134 : vector<8xf32> to vector<8x1xf32>
      %136 = arith.addf %133, %135 : vector<8x1xf32>
      %c0_74 = arith.constant 0 : index
      %c3_75 = arith.constant 3 : index
      %137 = vector.load %arg16[%c0_74, %c3_75] : memref<8x4xf32, #tpu.memory_space<vmem>>, vector<8x1xf32>
      tpu.vector_store %arg16[%c0_74, %c3_75], %136 {strides = array<i32>} : memref<8x4xf32, #tpu.memory_space<vmem>>, vector<8x1xf32>,
      %c0_76 = arith.constant 0 : index
      %c24_77 = arith.constant 24 : index
      %138 = vector.load %arg17[%c0_76, %c24_77] : memref<8x32xf32, #tpu.memory_space<vmem>>, vector<8x8xf32>
      %139 = vector.broadcast %128 : vector<8x1xf32> to vector<8x8xf32>
      %140 = arith.mulf %139, %138 : vector<8x8xf32>
      %141 = arith.truncf %131 : vector<8x8xf32> to vector<8x8xbf16>
      %142 = vector.extract_strided_slice %22 {offsets = [0, 24], sizes = [8, 8], strides = [1, 1]} : vector<8x32xbf16> to vector<8x8xbf16>
      %cst_78 = arith.constant dense<0.000000e+00> : vector<8x8xf32>
      %143 = tpu.matmul %141, %142, %cst_78 {dimension_numbers = #tpu.dot_dimension_numbers<[1], [0], [0], [1], [0, 0, 1, 1], [], []>} : vector<8x8xbf16>, vector<8x8xbf16>, vector<8x8xf32> -> vector<8x8xf32>
      %144 = arith.addf %140, %143 : vector<8x8xf32>
      %c0_79 = arith.constant 0 : index
      %c24_80 = arith.constant 24 : index
      %145 = vector.load %arg17[%c0_79, %c24_80] : memref<8x32xf32, #tpu.memory_space<vmem>>, vector<8x8xf32>
      tpu.vector_store %arg17[%c0_79, %c24_80], %144 {strides = array<i32>} : memref<8x32xf32, #tpu.memory_space<vmem>>, vector<8x8xf32>,
      %c0_81 = arith.constant 0 : index
      %c3_82 = arith.constant 3 : index
      %146 = vector.load %arg15[%c0_81, %c3_82] : memref<8x4xf32, #tpu.memory_space<vmem>>, vector<8x1xf32>
      tpu.vector_store %arg15[%c0_81, %c3_82], %126 {strides = array<i32>} : memref<8x4xf32, #tpu.memory_space<vmem>>, vector<8x1xf32>,
    } else {
    }
    %c1_i32 = arith.constant 1 : i32
    %6 = arith.cmpi eq, %arg2, %c1_i32 : i32
    %7 = arith.extui %6 : i1 to i32
    %c0_i32_2 = arith.constant 0 : i32
    %8 = arith.cmpi ne, %7, %c0_i32_2 : i32
    scf.if %8 {
      %c0 = arith.constant 0 : index
      %c0_3 = arith.constant 0 : index
      %9 = vector.load %arg16[%c0, %c0_3] : memref<8x4xf32, #tpu.memory_space<vmem>>, vector<8x4xf32>
      %10 = tpu.reciprocal %9 {approx = true} : vector<8x4xf32> -> vector<8x4xf32>
      %c0_4 = arith.constant 0 : index
      %c0_5 = arith.constant 0 : index
      %11 = vector.load %arg17[%c0_4, %c0_5] : memref<8x32xf32, #tpu.memory_space<vmem>>, vector<8x8xf32>
      %12 = vector.extract_strided_slice %10 {offsets = [0, 0], sizes = [8, 1], strides = [1, 1]} : vector<8x4xf32> to vector<8x1xf32>
      %13 = vector.broadcast %12 : vector<8x1xf32> to vector<8x8xf32>
      %14 = arith.mulf %11, %13 : vector<8x8xf32>
      %c0_6 = arith.constant 0 : index
      %c0_7 = arith.constant 0 : index
      %15 = vector.load %arg17[%c0_6, %c0_7] : memref<8x32xf32, #tpu.memory_space<vmem>>, vector<8x8xf32>
      tpu.vector_store %arg17[%c0_6, %c0_7], %14 {strides = array<i32>} : memref<8x32xf32, #tpu.memory_space<vmem>>, vector<8x8xf32>,
      %c0_8 = arith.constant 0 : index
      %c8 = arith.constant 8 : index
      %16 = vector.load %arg17[%c0_8, %c8] : memref<8x32xf32, #tpu.memory_space<vmem>>, vector<8x8xf32>
      %17 = vector.extract_strided_slice %10 {offsets = [0, 1], sizes = [8, 1], strides = [1, 1]} : vector<8x4xf32> to vector<8x1xf32>
      %18 = vector.broadcast %17 : vector<8x1xf32> to vector<8x8xf32>
      %19 = arith.mulf %16, %18 : vector<8x8xf32>
      %c0_9 = arith.constant 0 : index
      %c8_10 = arith.constant 8 : index
      %20 = vector.load %arg17[%c0_9, %c8_10] : memref<8x32xf32, #tpu.memory_space<vmem>>, vector<8x8xf32>
      tpu.vector_store %arg17[%c0_9, %c8_10], %19 {strides = array<i32>} : memref<8x32xf32, #tpu.memory_space<vmem>>, vector<8x8xf32>,
      %c0_11 = arith.constant 0 : index
      %c16 = arith.constant 16 : index
      %21 = vector.load %arg17[%c0_11, %c16] : memref<8x32xf32, #tpu.memory_space<vmem>>, vector<8x8xf32>
      %22 = vector.extract_strided_slice %10 {offsets = [0, 2], sizes = [8, 1], strides = [1, 1]} : vector<8x4xf32> to vector<8x1xf32>
      %23 = vector.broadcast %22 : vector<8x1xf32> to vector<8x8xf32>
      %24 = arith.mulf %21, %23 : vector<8x8xf32>
      %c0_12 = arith.constant 0 : index
      %c16_13 = arith.constant 16 : index
      %25 = vector.load %arg17[%c0_12, %c16_13] : memref<8x32xf32, #tpu.memory_space<vmem>>, vector<8x8xf32>
      tpu.vector_store %arg17[%c0_12, %c16_13], %24 {strides = array<i32>} : memref<8x32xf32, #tpu.memory_space<vmem>>, vector<8x8xf32>,
      %c0_14 = arith.constant 0 : index
      %c24 = arith.constant 24 : index
      %26 = vector.load %arg17[%c0_14, %c24] : memref<8x32xf32, #tpu.memory_space<vmem>>, vector<8x8xf32>
      %27 = vector.extract_strided_slice %10 {offsets = [0, 3], sizes = [8, 1], strides = [1, 1]} : vector<8x4xf32> to vector<8x1xf32>
      %28 = vector.broadcast %27 : vector<8x1xf32> to vector<8x8xf32>
      %29 = arith.mulf %26, %28 : vector<8x8xf32>
      %c0_15 = arith.constant 0 : index
      %c24_16 = arith.constant 24 : index
      %30 = vector.load %arg17[%c0_15, %c24_16] : memref<8x32xf32, #tpu.memory_space<vmem>>, vector<8x8xf32>
      tpu.vector_store %arg17[%c0_15, %c24_16], %29 {strides = array<i32>} : memref<8x32xf32, #tpu.memory_space<vmem>>, vector<8x8xf32>,
      %c0_17 = arith.constant 0 : index
      %c0_18 = arith.constant 0 : index
      %31 = vector.load %arg17[%c0_17, %c0_18] : memref<8x32xf32, #tpu.memory_space<vmem>>, vector<8x32xf32>
      %32 = arith.truncf %31 : vector<8x32xf32> to vector<8x32xbf16>
      %c0_19 = arith.constant 0 : index
      %c0_20 = arith.constant 0 : index
      %33 = vector.load %arg11[%c0_19, %c0_20] : memref<32x32xbf16, #tpu.memory_space<vmem>>, vector<32x32xbf16>
      %cst = arith.constant dense<0.000000e+00> : vector<8x32xf32>
      %34 = tpu.matmul %32, %33, %cst {dimension_numbers = #tpu.dot_dimension_numbers<[1], [0], [0], [1], [0, 0, 1, 1], [], []>} : vector<8x32xbf16>, vector<32x32xbf16>, vector<8x32xf32> -> vector<8x32xf32>
      %c0_21 = arith.constant 0 : index
      %c0_22 = arith.constant 0 : index
      %35 = vector.load %arg12[%c0_21, %c0_22] : memref<1x32xf32, #tpu.memory_space<vmem>>, vector<1x32xf32>
      %36 = vector.broadcast %35 : vector<1x32xf32> to vector<8x32xf32>
      %37 = arith.addf %34, %36 : vector<8x32xf32>
      %c0_23 = arith.constant 0 : index
      %c0_24 = arith.constant 0 : index
      %c0_25 = arith.constant 0 : index
      %38 = vector.load %arg13[%c0_23, %c0_24, %c0_25] : memref<1x8x32xf32, #tpu.memory_space<vmem>>, vector<1x8x32xf32>
      %39 = vector.shape_cast %38 : vector<1x8x32xf32> to vector<8x32xf32>
      %40 = vector.shape_cast %37 : vector<8x32xf32> to vector<1x8x32xf32>
      tpu.vector_store %arg13[%c0_23, %c0_24, %c0_25], %40 {strides = array<i32>} : memref<1x8x32xf32, #tpu.memory_space<vmem>>, vector<1x8x32xf32>,
    } else {
    }
    return
  }
  func.func @transform_0(%arg0: i32, %arg1: i32, %arg2: i32) -> (i32, i32, i32) {
    %c0_i32 = arith.constant 0 : i32
    %c0_i32_0 = arith.constant 0 : i32
    return %arg0, %arg1, %c0_i32 : i32, i32, i32
  }
  func.func @transform_1(%arg0: i32, %arg1: i32, %arg2: i32) -> (i32, i32, i32) {
    %c0_i32 = arith.constant 0 : i32
    %c0_i32_0 = arith.constant 0 : i32
    return %arg0, %arg2, %c0_i32 : i32, i32, i32
  }
  func.func @transform_2(%arg0: i32, %arg1: i32, %arg2: i32) -> (i32, i32) {
    %c0_i32 = arith.constant 0 : i32
    %c0_i32_0 = arith.constant 0 : i32
    %c0_i32_1 = arith.constant 0 : i32
    return %c0_i32, %c0_i32_0 : i32, i32
  }
  func.func @transform_3(%arg0: i32, %arg1: i32, %arg2: i32) -> (i32, i32) {
    %c0_i32 = arith.constant 0 : i32
    %c0_i32_0 = arith.constant 0 : i32
    %c0_i32_1 = arith.constant 0 : i32
    return %c0_i32, %c0_i32_0 : i32, i32
  }
  func.func @transform_4(%arg0: i32, %arg1: i32, %arg2: i32) -> (i32, i32) {
    %c0_i32 = arith.constant 0 : i32
    %c0_i32_0 = arith.constant 0 : i32
    %c0_i32_1 = arith.constant 0 : i32
    return %c0_i32, %c0_i32_0 : i32, i32
  }
  func.func @transform_5(%arg0: i32, %arg1: i32, %arg2: i32) -> (i32, i32) {
    %c0_i32 = arith.constant 0 : i32
    %c0_i32_0 = arith.constant 0 : i32
    %c0_i32_1 = arith.constant 0 : i32
    return %c0_i32, %c0_i32_0 : i32, i32
  }
  func.func @transform_6(%arg0: i32, %arg1: i32, %arg2: i32) -> (i32, i32) {
    %c0_i32 = arith.constant 0 : i32
    %c0_i32_0 = arith.constant 0 : i32
    %c0_i32_1 = arith.constant 0 : i32
    return %c0_i32, %c0_i32_0 : i32, i32
  }
  func.func @transform_7(%arg0: i32, %arg1: i32, %arg2: i32) -> (i32, i32) {
    %c0_i32 = arith.constant 0 : i32
    %c0_i32_0 = arith.constant 0 : i32
    %c0_i32_1 = arith.constant 0 : i32
    return %c0_i32, %c0_i32_0 : i32, i32
  }
  func.func @transform_8(%arg0: i32, %arg1: i32, %arg2: i32) -> (i32, i32) {
    %c0_i32 = arith.constant 0 : i32
    %c0_i32_0 = arith.constant 0 : i32
    %c0_i32_1 = arith.constant 0 : i32
    return %c0_i32, %c0_i32_0 : i32, i32
  }
  func.func @transform_9(%arg0: i32, %arg1: i32, %arg2: i32) -> (i32, i32) {
    %c0_i32 = arith.constant 0 : i32
    %c0_i32_0 = arith.constant 0 : i32
    %c0_i32_1 = arith.constant 0 : i32
    return %c0_i32, %c0_i32_0 : i32, i32
  }
  func.func @transform_10(%arg0: i32, %arg1: i32, %arg2: i32) -> (i32, i32, i32) {
    %c0_i32 = arith.constant 0 : i32
    %c0_i32_0 = arith.constant 0 : i32
    return %arg0, %arg1, %c0_i32 : i32, i32, i32
  }
}

module attributes {stable_mosaic.version = 11 : i64} {
  func.func @_flash_attn_kernel(%arg0: i32, %arg1: i32, %arg2: i32, %arg3: memref<1x8x32xbf16, #tpu.memory_space<vmem>>, %arg4: memref<1x8x32xbf16, #tpu.memory_space<vmem>>, %arg5: memref<32x32xbf16, #tpu.memory_space<vmem>>, %arg6: memref<32x32xbf16, #tpu.memory_space<vmem>>, %arg7: memref<32x32xbf16, #tpu.memory_space<vmem>>, %arg8: memref<1x32xf32, #tpu.memory_space<vmem>>, %arg9: memref<1x32xf32, #tpu.memory_space<vmem>>, %arg10: memref<1x32xf32, #tpu.memory_space<vmem>>, %arg11: memref<32x32xbf16, #tpu.memory_space<vmem>>, %arg12: memref<1x32xf32, #tpu.memory_space<vmem>>, %arg13: memref<1x8x32xf32, #tpu.memory_space<vmem>>, %arg14: memref<8x32xbf16, #tpu.memory_space<vmem>>, %arg15: memref<8x4xf32, #tpu.memory_space<vmem>>, %arg16: memref<8x4xf32, #tpu.memory_space<vmem>>, %arg17: memref<8x32xf32, #tpu.memory_space<vmem>>) attributes {dimension_semantics = [#tpu.dimension_semantics<parallel>, #tpu.dimension_semantics<parallel>, #tpu.dimension_semantics<arbitrary>], iteration_bounds = array<i64: 2, 2, 2>, scalar_prefetch = 0 : i64, scratch_operands = 4 : i64, tpu.core_type = #tpu.core_type<tc>, window_params = [{transform_indices = @transform_0, window_bounds = array<i64: 1, 8, 32>}, {transform_indices = @transform_1, window_bounds = array<i64: 1, 8, 32>}, {pipeline_mode = #tpu.pipeline_mode<synchronous>, transform_indices = @transform_2, window_bounds = array<i64: 32, 32>}, {pipeline_mode = #tpu.pipeline_mode<synchronous>, transform_indices = @transform_3, window_bounds = array<i64: 32, 32>}, {pipeline_mode = #tpu.pipeline_mode<synchronous>, transform_indices = @transform_4, window_bounds = array<i64: 32, 32>}, {pipeline_mode = #tpu.pipeline_mode<synchronous>, transform_indices = @transform_5, window_bounds = array<i64: 1, 32>}, {pipeline_mode = #tpu.pipeline_mode<synchronous>, transform_indices = @transform_6, window_bounds = array<i64: 1, 32>}, {pipeline_mode = #tpu.pipeline_mode<synchronous>, transform_indices = @transform_7, window_bounds = array<i64: 1, 32>}, {pipeline_mode = #tpu.pipeline_mode<synchronous>, transform_indices = @transform_8, window_bounds = array<i64: 32, 32>}, {pipeline_mode = #tpu.pipeline_mode<synchronous>, transform_indices = @transform_9, window_bounds = array<i64: 1, 32>}, {transform_indices = @transform_10, window_bounds = array<i64: 1, 8, 32>}]} {
    %c0_i32 = arith.constant 0 : i32
    %0 = arith.cmpi eq, %arg2, %c0_i32 : i32
    %1 = arith.extui %0 : i1 to i32
    %c0_i32_0 = arith.constant 0 : i32
    %2 = arith.cmpi ne, %1, %c0_i32_0 : i32
    scf.if %2 {
      %cst = arith.constant 0xFF800000 : f32
      %9 = vector.broadcast %cst : f32 to vector<8x4xf32>
      %c0 = arith.constant 0 : index
      %c0_3 = arith.constant 0 : index
      %10 = vector.load %arg15[%c0, %c0_3] : memref<8x4xf32, #tpu.memory_space<vmem>>, vector<8x4xf32>
      tpu.vector_store %arg15[%c0, %c0_3], %9 {strides = array<i32>} : memref<8x4xf32, #tpu.memory_space<vmem>>, vector<8x4xf32>,
      %cst_4 = arith.constant 0.000000e+00 : f32
      %11 = vector.broadcast %cst_4 : f32 to vector<8x4xf32>
      %c0_5 = arith.constant 0 : index
      %c0_6 = arith.constant 0 : index
      %12 = vector.load %arg16[%c0_5, %c0_6] : memref<8x4xf32, #tpu.memory_space<vmem>>, vector<8x4xf32>
      tpu.vector_store %arg16[%c0_5, %c0_6], %11 {strides = array<i32>} : memref<8x4xf32, #tpu.memory_space<vmem>>, vector<8x4xf32>,
      %cst_7 = arith.constant 0.000000e+00 : f32
      %13 = vector.broadcast %cst_7 : f32 to vector<8x32xf32>
      %c0_8 = arith.constant 0 : index
      %c0_9 = arith.constant 0 : index
      %14 = vector.load %arg17[%c0_8, %c0_9] : memref<8x32xf32, #tpu.memory_space<vmem>>, vector<8x32xf32>
      tpu.vector_store %arg17[%c0_8, %c0_9], %13 {strides = array<i32>} : memref<8x32xf32, #tpu.memory_space<vmem>>, vector<8x32xf32>,
      %c0_10 = arith.constant 0 : index
      %c0_11 = arith.constant 0 : index
      %c0_12 = arith.constant 0 : index
      %15 = vector.load %arg3[%c0_10, %c0_11, %c0_12] : memref<1x8x32xbf16, #tpu.memory_space<vmem>>, vector<1x8x32xbf16>
      %16 = vector.shape_cast %15 : vector<1x8x32xbf16> to vector<8x32xbf16>
      %c0_13 = arith.constant 0 : index
      %c0_14 = arith.constant 0 : index
      %17 = vector.load %arg5[%c0_13, %c0_14] : memref<32x32xbf16, #tpu.memory_space<vmem>>, vector<32x32xbf16>
      %cst_15 = arith.constant dense<0.000000e+00> : vector<8x32xf32>
      %18 = tpu.matmul %16, %17, %cst_15 {dimension_numbers = #tpu.dot_dimension_numbers<[1], [0], [0], [1], [0, 0, 1, 1], [], []>} : vector<8x32xbf16>, vector<32x32xbf16>, vector<8x32xf32> -> vector<8x32xf32>
      %c0_16 = arith.constant 0 : index
      %c0_17 = arith.constant 0 : index
      %19 = vector.load %arg8[%c0_16, %c0_17] : memref<1x32xf32, #tpu.memory_space<vmem>>, vector<1x32xf32>
      %20 = vector.broadcast %19 : vector<1x32xf32> to vector<8x32xf32>
      %21 = arith.addf %18, %20 : vector<8x32xf32>
      %cst_18 = arith.constant 0.353553385 : f32
      %22 = vector.broadcast %cst_18 : f32 to vector<8x32xf32>
      %23 = arith.mulf %21, %22 : vector<8x32xf32>
      %24 = arith.truncf %23 : vector<8x32xf32> to vector<8x32xbf16>
      %c0_19 = arith.constant 0 : index
      %c0_20 = arith.constant 0 : index
      %25 = vector.load %arg14[%c0_19, %c0_20] : memref<8x32xbf16, #tpu.memory_space<vmem>>, vector<8x32xbf16>
      tpu.vector_store %arg14[%c0_19, %c0_20], %24 {strides = array<i32>} : memref<8x32xbf16, #tpu.memory_space<vmem>>, vector<8x32xbf16>,
    } else {
    }
    %3 = arith.cmpi sle, %arg2, %arg1 : i32
    %4 = arith.extui %3 : i1 to i32
    %c0_i32_1 = arith.constant 0 : i32
    %5 = arith.cmpi ne, %4, %c0_i32_1 : i32
    scf.if %5 {
      %c0 = arith.constant 0 : index
      %c0_3 = arith.constant 0 : index
      %c0_4 = arith.constant 0 : index
      %9 = vector.load %arg4[%c0, %c0_3, %c0_4] : memref<1x8x32xbf16, #tpu.memory_space<vmem>>, vector<1x8x32xbf16>
      %10 = vector.shape_cast %9 : vector<1x8x32xbf16> to vector<8x32xbf16>
      %c0_5 = arith.constant 0 : index
      %c0_6 = arith.constant 0 : index
      %11 = vector.load %arg6[%c0_5, %c0_6] : memref<32x32xbf16, #tpu.memory_space<vmem>>, vector<32x32xbf16>
      %cst = arith.constant dense<0.000000e+00> : vector<8x32xf32>
      %12 = tpu.matmul %10, %11, %cst {dimension_numbers = #tpu.dot_dimension_numbers<[1], [0], [0], [1], [0, 0, 1, 1], [], []>} : vector<8x32xbf16>, vector<32x32xbf16>, vector<8x32xf32> -> vector<8x32xf32>
      %c0_7 = arith.constant 0 : index
      %c0_8 = arith.constant 0 : index
      %13 = vector.load %arg9[%c0_7, %c0_8] : memref<1x32xf32, #tpu.memory_space<vmem>>, vector<1x32xf32>
      %14 = vector.broadcast %13 : vector<1x32xf32> to vector<8x32xf32>
      %15 = arith.addf %12, %14 : vector<8x32xf32>
      %16 = arith.truncf %15 : vector<8x32xf32> to vector<8x32xbf16>
      %c0_9 = arith.constant 0 : index
      %c0_10 = arith.constant 0 : index
      %17 = vector.load %arg7[%c0_9, %c0_10] : memref<32x32xbf16, #tpu.memory_space<vmem>>, vector<32x32xbf16>
      %cst_11 = arith.constant dense<0.000000e+00> : vector<8x32xf32>
      %18 = tpu.matmul %10, %17, %cst_11 {dimension_numbers = #tpu.dot_dimension_numbers<[1], [0], [0], [1], [0, 0, 1, 1], [], []>} : vector<8x32xbf16>, vector<32x32xbf16>, vector<8x32xf32> -> vector<8x32xf32>
      %c0_12 = arith.constant 0 : index
      %c0_13 = arith.constant 0 : index
      %19 = vector.load %arg10[%c0_12, %c0_13] : memref<1x32xf32, #tpu.memory_space<vmem>>, vector<1x32xf32>
      %20 = vector.broadcast %19 : vector<1x32xf32> to vector<8x32xf32>
      %21 = arith.addf %18, %20 : vector<8x32xf32>
      %22 = arith.truncf %21 : vector<8x32xf32> to vector<8x32xbf16>
      %c8_i32 = arith.constant 8 : i32
      %23 = arith.muli %arg1, %c8_i32 : i32
      %24 = tpu.iota {dimensions = array<i32: 0>} : vector<8x8xi32>
      %25 = vector.broadcast %23 : i32 to vector<8x8xi32>
      %26 = arith.addi %25, %24 : vector<8x8xi32>
      %c8_i32_14 = arith.constant 8 : i32
      %27 = arith.muli %arg2, %c8_i32_14 : i32
      %28 = tpu.iota {dimensions = array<i32: 1>} : vector<8x8xi32>
      %29 = vector.broadcast %27 : i32 to vector<8x8xi32>
      %30 = arith.addi %29, %28 : vector<8x8xi32>
      %31 = arith.cmpi sge, %26, %30 : vector<8x8xi32>
      %cst_15 = arith.constant 0.000000e+00 : f32
      %cst_16 = arith.constant -1.000000e+30 : f32
      %32 = vector.broadcast %cst_15 : f32 to vector<8x8xf32>
      %33 = vector.broadcast %cst_16 : f32 to vector<8x8xf32>
      %34 = arith.select %31, %32, %33 : vector<8x8xi1>, vector<8x8xf32>
      %c0_17 = arith.constant 0 : index
      %c0_18 = arith.constant 0 : index
      %35 = vector.load %arg14[%c0_17, %c0_18] : memref<8x32xbf16, #tpu.memory_space<vmem>>, vector<8x8xbf16>
      %36 = vector.extract_strided_slice %16 {offsets = [0, 0], sizes = [8, 8], strides = [1, 1]} : vector<8x32xbf16> to vector<8x8xbf16>
      %cst_19 = arith.constant dense<0.000000e+00> : vector<8x8xf32>
      %37 = tpu.matmul %35, %36, %cst_19 {dimension_numbers = #tpu.dot_dimension_numbers<[1], [1], [0], [0], [0, 0, 1, 0], [], []>} : vector<8x8xbf16>, vector<8x8xbf16>, vector<8x8xf32> -> vector<8x8xf32>
      %38 = arith.addf %37, %34 : vector<8x8xf32>
      %c0_20 = arith.constant 0 : index
      %c0_21 = arith.constant 0 : index
      %39 = vector.load %arg15[%c0_20, %c0_21] : memref<8x4xf32, #tpu.memory_space<vmem>>, vector<8x1xf32>
      %cst_22 = arith.constant dense<0xFF800000> : vector<8xf32>
      %40 = vector.multi_reduction <maximumf>, %38, %cst_22 [1] : vector<8x8xf32> to vector<8xf32>
      %41 = vector.shape_cast %40 : vector<8xf32> to vector<8x1xf32>
      %42 = arith.maximumf %39, %41 : vector<8x1xf32>
      %43 = arith.subf %39, %42 : vector<8x1xf32>
      %44 = math.exp %43 : vector<8x1xf32>
      %45 = vector.broadcast %42 : vector<8x1xf32> to vector<8x8xf32>
      %46 = arith.subf %38, %45 : vector<8x8xf32>
      %47 = math.exp %46 : vector<8x8xf32>
      %c0_23 = arith.constant 0 : index
      %c0_24 = arith.constant 0 : index
      %48 = vector.load %arg16[%c0_23, %c0_24] : memref<8x4xf32, #tpu.memory_space<vmem>>, vector<8x1xf32>
      %49 = arith.mulf %44, %48 : vector<8x1xf32>
      %cst_25 = arith.constant dense<0.000000e+00> : vector<8xf32>
      %50 = vector.multi_reduction <add>, %47, %cst_25 [1] : vector<8x8xf32> to vector<8xf32>
      %51 = vector.shape_cast %50 : vector<8xf32> to vector<8x1xf32>
      %52 = arith.addf %49, %51 : vector<8x1xf32>
      %c0_26 = arith.constant 0 : index
      %c0_27 = arith.constant 0 : index
      %53 = vector.load %arg16[%c0_26, %c0_27] : memref<8x4xf32, #tpu.memory_space<vmem>>, vector<8x1xf32>
      tpu.vector_store %arg16[%c0_26, %c0_27], %52 {strides = array<i32>} : memref<8x4xf32, #tpu.memory_space<vmem>>, vector<8x1xf32>,
      %c0_28 = arith.constant 0 : index
      %c0_29 = arith.constant 0 : index
      %54 = vector.load %arg17[%c0_28, %c0_29] : memref<8x32xf32, #tpu.memory_space<vmem>>, vector<8x8xf32>
      %55 = vector.broadcast %44 : vector<8x1xf32> to vector<8x8xf32>
      %56 = arith.mulf %55, %54 : vector<8x8xf32>
      %57 = arith.truncf %47 : vector<8x8xf32> to vector<8x8xbf16>
      %58 = vector.extract_strided_slice %22 {offsets = [0, 0], sizes = [8, 8], strides = [1, 1]} : vector<8x32xbf16> to vector<8x8xbf16>
      %cst_30 = arith.constant dense<0.000000e+00> : vector<8x8xf32>
      %59 = tpu.matmul %57, %58, %cst_30 {dimension_numbers = #tpu.dot_dimension_numbers<[1], [0], [0], [1], [0, 0, 1, 1], [], []>} : vector<8x8xbf16>, vector<8x8xbf16>, vector<8x8xf32> -> vector<8x8xf32>
      %60 = arith.addf %56, %59 : vector<8x8xf32>
      %c0_31 = arith.constant 0 : index
      %c0_32 = arith.constant 0 : index
      %61 = vector.load %arg17[%c0_31, %c0_32] : memref<8x32xf32, #tpu.memory_space<vmem>>, vector<8x8xf32>
      tpu.vector_store %arg17[%c0_31, %c0_32], %60 {strides = array<i32>} : memref<8x32xf32, #tpu.memory_space<vmem>>, vector<8x8xf32>,
      %c0_33 = arith.constant 0 : index
      %c0_34 = arith.constant 0 : index
      %62 = vector.load %arg15[%c0_33, %c0_34] : memref<8x4xf32, #tpu.memory_space<vmem>>, vector<8x1xf32>
      tpu.vector_store %arg15[%c0_33, %c0_34], %42 {strides = array<i32>} : memref<8x4xf32, #tpu.memory_space<vmem>>, vector<8x1xf32>,
      %c0_35 = arith.constant 0 : index
      %c8 = arith.constant 8 : index
      %63 = vector.load %arg14[%c0_35, %c8] : memref<8x32xbf16, #tpu.memory_space<vmem>>, vector<8x8xbf16>
      %64 = vector.extract_strided_slice %16 {offsets = [0, 8], sizes = [8, 8], strides = [1, 1]} : vector<8x32xbf16> to vector<8x8xbf16>
      %cst_36 = arith.constant dense<0.000000e+00> : vector<8x8xf32>
      %65 = tpu.matmul %63, %64, %cst_36 {dimension_numbers = #tpu.dot_dimension_numbers<[1], [1], [0], [0], [0, 0, 1, 0], [], []>} : vector<8x8xbf16>, vector<8x8xbf16>, vector<8x8xf32> -> vector<8x8xf32>
      %66 = arith.addf %65, %34 : vector<8x8xf32>
      %c0_37 = arith.constant 0 : index
      %c1 = arith.constant 1 : index
      %67 = vector.load %arg15[%c0_37, %c1] : memref<8x4xf32, #tpu.memory_space<vmem>>, vector<8x1xf32>
      %cst_38 = arith.constant dense<0xFF800000> : vector<8xf32>
      %68 = vector.multi_reduction <maximumf>, %66, %cst_38 [1] : vector<8x8xf32> to vector<8xf32>
      %69 = vector.shape_cast %68 : vector<8xf32> to vector<8x1xf32>
      %70 = arith.maximumf %67, %69 : vector<8x1xf32>
      %71 = arith.subf %67, %70 : vector<8x1xf32>
      %72 = math.exp %71 : vector<8x1xf32>
      %73 = vector.broadcast %70 : vector<8x1xf32> to vector<8x8xf32>
      %74 = arith.subf %66, %73 : vector<8x8xf32>
      %75 = math.exp %74 : vector<8x8xf32>
      %c0_39 = arith.constant 0 : index
      %c1_40 = arith.constant 1 : index
      %76 = vector.load %arg16[%c0_39, %c1_40] : memref<8x4xf32, #tpu.memory_space<vmem>>, vector<8x1xf32>
      %77 = arith.mulf %72, %76 : vector<8x1xf32>
      %cst_41 = arith.constant dense<0.000000e+00> : vector<8xf32>
      %78 = vector.multi_reduction <add>, %75, %cst_41 [1] : vector<8x8xf32> to vector<8xf32>
      %79 = vector.shape_cast %78 : vector<8xf32> to vector<8x1xf32>
      %80 = arith.addf %77, %79 : vector<8x1xf32>
      %c0_42 = arith.constant 0 : index
      %c1_43 = arith.constant 1 : index
      %81 = vector.load %arg16[%c0_42, %c1_43] : memref<8x4xf32, #tpu.memory_space<vmem>>, vector<8x1xf32>
      tpu.vector_store %arg16[%c0_42, %c1_43], %80 {strides = array<i32>} : memref<8x4xf32, #tpu.memory_space<vmem>>, vector<8x1xf32>,
      %c0_44 = arith.constant 0 : index
      %c8_45 = arith.constant 8 : index
      %82 = vector.load %arg17[%c0_44, %c8_45] : memref<8x32xf32, #tpu.memory_space<vmem>>, vector<8x8xf32>
      %83 = vector.broadcast %72 : vector<8x1xf32> to vector<8x8xf32>
      %84 = arith.mulf %83, %82 : vector<8x8xf32>
      %85 = arith.truncf %75 : vector<8x8xf32> to vector<8x8xbf16>
      %86 = vector.extract_strided_slice %22 {offsets = [0, 8], sizes = [8, 8], strides = [1, 1]} : vector<8x32xbf16> to vector<8x8xbf16>
      %cst_46 = arith.constant dense<0.000000e+00> : vector<8x8xf32>
      %87 = tpu.matmul %85, %86, %cst_46 {dimension_numbers = #tpu.dot_dimension_numbers<[1], [0], [0], [1], [0, 0, 1, 1], [], []>} : vector<8x8xbf16>, vector<8x8xbf16>, vector<8x8xf32> -> vector<8x8xf32>
      %88 = arith.addf %84, %87 : vector<8x8xf32>
      %c0_47 = arith.constant 0 : index
      %c8_48 = arith.constant 8 : index
      %89 = vector.load %arg17[%c0_47, %c8_48] : memref<8x32xf32, #tpu.memory_space<vmem>>, vector<8x8xf32>
      tpu.vector_store %arg17[%c0_47, %c8_48], %88 {strides = array<i32>} : memref<8x32xf32, #tpu.memory_space<vmem>>, vector<8x8xf32>,
      %c0_49 = arith.constant 0 : index
      %c1_50 = arith.constant 1 : index
      %90 = vector.load %arg15[%c0_49, %c1_50] : memref<8x4xf32, #tpu.memory_space<vmem>>, vector<8x1xf32>
      tpu.vector_store %arg15[%c0_49, %c1_50], %70 {strides = array<i32>} : memref<8x4xf32, #tpu.memory_space<vmem>>, vector<8x1xf32>,
      %c0_51 = arith.constant 0 : index
      %c16 = arith.constant 16 : index
      %91 = vector.load %arg14[%c0_51, %c16] : memref<8x32xbf16, #tpu.memory_space<vmem>>, vector<8x8xbf16>
      %92 = vector.extract_strided_slice %16 {offsets = [0, 16], sizes = [8, 8], strides = [1, 1]} : vector<8x32xbf16> to vector<8x8xbf16>
      %cst_52 = arith.constant dense<0.000000e+00> : vector<8x8xf32>
      %93 = tpu.matmul %91, %92, %cst_52 {dimension_numbers = #tpu.dot_dimension_numbers<[1], [1], [0], [0], [0, 0, 1, 0], [], []>} : vector<8x8xbf16>, vector<8x8xbf16>, vector<8x8xf32> -> vector<8x8xf32>
      %94 = arith.addf %93, %34 : vector<8x8xf32>
      %c0_53 = arith.constant 0 : index
      %c2 = arith.constant 2 : index
      %95 = vector.load %arg15[%c0_53, %c2] : memref<8x4xf32, #tpu.memory_space<vmem>>, vector<8x1xf32>
      %cst_54 = arith.constant dense<0xFF800000> : vector<8xf32>
      %96 = vector.multi_reduction <maximumf>, %94, %cst_54 [1] : vector<8x8xf32> to vector<8xf32>
      %97 = vector.shape_cast %96 : vector<8xf32> to vector<8x1xf32>
      %98 = arith.maximumf %95, %97 : vector<8x1xf32>
      %99 = arith.subf %95, %98 : vector<8x1xf32>
      %100 = math.exp %99 : vector<8x1xf32>
      %101 = vector.broadcast %98 : vector<8x1xf32> to vector<8x8xf32>
      %102 = arith.subf %94, %101 : vector<8x8xf32>
      %103 = math.exp %102 : vector<8x8xf32>
      %c0_55 = arith.constant 0 : index
      %c2_56 = arith.constant 2 : index
      %104 = vector.load %arg16[%c0_55, %c2_56] : memref<8x4xf32, #tpu.memory_space<vmem>>, vector<8x1xf32>
      %105 = arith.mulf %100, %104 : vector<8x1xf32>
      %cst_57 = arith.constant dense<0.000000e+00> : vector<8xf32>
      %106 = vector.multi_reduction <add>, %103, %cst_57 [1] : vector<8x8xf32> to vector<8xf32>
      %107 = vector.shape_cast %106 : vector<8xf32> to vector<8x1xf32>
      %108 = arith.addf %105, %107 : vector<8x1xf32>
      %c0_58 = arith.constant 0 : index
      %c2_59 = arith.constant 2 : index
      %109 = vector.load %arg16[%c0_58, %c2_59] : memref<8x4xf32, #tpu.memory_space<vmem>>, vector<8x1xf32>
      tpu.vector_store %arg16[%c0_58, %c2_59], %108 {strides = array<i32>} : memref<8x4xf32, #tpu.memory_space<vmem>>, vector<8x1xf32>,
      %c0_60 = arith.constant 0 : index
      %c16_61 = arith.constant 16 : index
      %110 = vector.load %arg17[%c0_60, %c16_61] : memref<8x32xf32, #tpu.memory_space<vmem>>, vector<8x8xf32>
      %111 = vector.broadcast %100 : vector<8x1xf32> to vector<8x8xf32>
      %112 = arith.mulf %111, %110 : vector<8x8xf32>
      %113 = arith.truncf %103 : vector<8x8xf32> to vector<8x8xbf16>
      %114 = vector.extract_strided_slice %22 {offsets = [0, 16], sizes = [8, 8], strides = [1, 1]} : vector<8x32xbf16> to vector<8x8xbf16>
      %cst_62 = arith.constant dense<0.000000e+00> : vector<8x8xf32>
      %115 = tpu.matmul %113, %114, %cst_62 {dimension_numbers = #tpu.dot_dimension_numbers<[1], [0], [0], [1], [0, 0, 1, 1], [], []>} : vector<8x8xbf16>, vector<8x8xbf16>, vector<8x8xf32> -> vector<8x8xf32>
      %116 = arith.addf %112, %115 : vector<8x8xf32>
      %c0_63 = arith.constant 0 : index
      %c16_64 = arith.constant 16 : index
      %117 = vector.load %arg17[%c0_63, %c16_64] : memref<8x32xf32, #tpu.memory_space<vmem>>, vector<8x8xf32>
      tpu.vector_store %arg17[%c0_63, %c16_64], %116 {strides = array<i32>} : memref<8x32xf32, #tpu.memory_space<vmem>>, vector<8x8xf32>,
      %c0_65 = arith.constant 0 : index
      %c2_66 = arith.constant 2 : index
      %118 = vector.load %arg15[%c0_65, %c2_66] : memref<8x4xf32, #tpu.memory_space<vmem>>, vector<8x1xf32>
      tpu.vector_store %arg15[%c0_65, %c2_66], %98 {strides = array<i32>} : memref<8x4xf32, #tpu.memory_space<vmem>>, vector<8x1xf32>,
      %c0_67 = arith.constant 0 : index
      %c24 = arith.constant 24 : index
      %119 = vector.load %arg14[%c0_67, %c24] : memref<8x32xbf16, #tpu.memory_space<vmem>>, vector<8x8xbf16>
      %120 = vector.extract_strided_slice %16 {offsets = [0, 24], sizes = [8, 8], strides = [1, 1]} : vector<8x32xbf16> to vector<8x8xbf16>
      %cst_68 = arith.constant dense<0.000000e+00> : vector<8x8xf32>
      %121 = tpu.matmul %119, %120, %cst_68 {dimension_numbers = #tpu.dot_dimension_numbers<[1], [1], [0], [0], [0, 0, 1, 0], [], []>} : vector<8x8xbf16>, vector<8x8xbf16>, vector<8x8xf32> -> vector<8x8xf32>
      %122 = arith.addf %121, %34 : vector<8x8xf32>
      %c0_69 = arith.constant 0 : index
      %c3 = arith.constant 3 : index
      %123 = vector.load %arg15[%c0_69, %c3] : memref<8x4xf32, #tpu.memory_space<vmem>>, vector<8x1xf32>
      %cst_70 = arith.constant dense<0xFF800000> : vector<8xf32>
      %124 = vector.multi_reduction <maximumf>, %122, %cst_70 [1] : vector<8x8xf32> to vector<8xf32>
      %125 = vector.shape_cast %124 : vector<8xf32> to vector<8x1xf32>
      %126 = arith.maximumf %123, %125 : vector<8x1xf32>
      %127 = arith.subf %123, %126 : vector<8x1xf32>
      %128 = math.exp %127 : vector<8x1xf32>
      %129 = vector.broadcast %126 : vector<8x1xf32> to vector<8x8xf32>
      %130 = arith.subf %122, %129 : vector<8x8xf32>
      %131 = math.exp %130 : vector<8x8xf32>
      %c0_71 = arith.constant 0 : index
      %c3_72 = arith.constant 3 : index
      %132 = vector.load %arg16[%c0_71, %c3_72] : memref<8x4xf32, #tpu.memory_space<vmem>>, vector<8x1xf32>
      %133 = arith.mulf %128, %132 : vector<8x1xf32>
      %cst_73 = arith.constant dense<0.000000e+00> : vector<8xf32>
      %134 = vector.multi_reduction <add>, %131, %cst_73 [1] : vector<8x8xf32> to vector<8xf32>
      %135 = vector.shape_cast %134 : vector<8xf32> to vector<8x1xf32>
      %136 = arith.addf %133, %135 : vector<8x1xf32>
      %c0_74 = arith.constant 0 : index
      %c3_75 = arith.constant 3 : index
      %137 = vector.load %arg16[%c0_74, %c3_75] : memref<8x4xf32, #tpu.memory_space<vmem>>, vector<8x1xf32>
      tpu.vector_store %arg16[%c0_74, %c3_75], %136 {strides = array<i32>} : memref<8x4xf32, #tpu.memory_space<vmem>>, vector<8x1xf32>,
      %c0_76 = arith.constant 0 : index
      %c24_77 = arith.constant 24 : index
      %138 = vector.load %arg17[%c0_76, %c24_77] : memref<8x32xf32, #tpu.memory_space<vmem>>, vector<8x8xf32>
      %139 = vector.broadcast %128 : vector<8x1xf32> to vector<8x8xf32>
      %140 = arith.mulf %139, %138 : vector<8x8xf32>
      %141 = arith.truncf %131 : vector<8x8xf32> to vector<8x8xbf16>
      %142 = vector.extract_strided_slice %22 {offsets = [0, 24], sizes = [8, 8], strides = [1, 1]} : vector<8x32xbf16> to vector<8x8xbf16>
      %cst_78 = arith.constant dense<0.000000e+00> : vector<8x8xf32>
      %143 = tpu.matmul %141, %142, %cst_78 {dimension_numbers = #tpu.dot_dimension_numbers<[1], [0], [0], [1], [0, 0, 1, 1], [], []>} : vector<8x8xbf16>, vector<8x8xbf16>, vector<8x8xf32> -> vector<8x8xf32>
      %144 = arith.addf %140, %143 : vector<8x8xf32>
      %c0_79 = arith.constant 0 : index
      %c24_80 = arith.constant 24 : index
      %145 = vector.load %arg17[%c0_79, %c24_80] : memref<8x32xf32, #tpu.memory_space<vmem>>, vector<8x8xf32>
      tpu.vector_store %arg17[%c0_79, %c24_80], %144 {strides = array<i32>} : memref<8x32xf32, #tpu.memory_space<vmem>>, vector<8x8xf32>,
      %c0_81 = arith.constant 0 : index
      %c3_82 = arith.constant 3 : index
      %146 = vector.load %arg15[%c0_81, %c3_82] : memref<8x4xf32, #tpu.memory_space<vmem>>, vector<8x1xf32>
      tpu.vector_store %arg15[%c0_81, %c3_82], %126 {strides = array<i32>} : memref<8x4xf32, #tpu.memory_space<vmem>>, vector<8x1xf32>,
    } else {
    }
    %c1_i32 = arith.constant 1 : i32
    %6 = arith.cmpi eq, %arg2, %c1_i32 : i32
    %7 = arith.extui %6 : i1 to i32
    %c0_i32_2 = arith.constant 0 : i32
    %8 = arith.cmpi ne, %7, %c0_i32_2 : i32
    scf.if %8 {
      %c0 = arith.constant 0 : index
      %c0_3 = arith.constant 0 : index
      %9 = vector.load %arg16[%c0, %c0_3] : memref<8x4xf32, #tpu.memory_space<vmem>>, vector<8x4xf32>
      %10 = tpu.reciprocal %9 {approx = true} : vector<8x4xf32> -> vector<8x4xf32>
      %c0_4 = arith.constant 0 : index
      %c0_5 = arith.constant 0 : index
      %11 = vector.load %arg17[%c0_4, %c0_5] : memref<8x32xf32, #tpu.memory_space<vmem>>, vector<8x8xf32>
      %12 = vector.extract_strided_slice %10 {offsets = [0, 0], sizes = [8, 1], strides = [1, 1]} : vector<8x4xf32> to vector<8x1xf32>
      %13 = vector.broadcast %12 : vector<8x1xf32> to vector<8x8xf32>
      %14 = arith.mulf %11, %13 : vector<8x8xf32>
      %c0_6 = arith.constant 0 : index
      %c0_7 = arith.constant 0 : index
      %15 = vector.load %arg17[%c0_6, %c0_7] : memref<8x32xf32, #tpu.memory_space<vmem>>, vector<8x8xf32>
      tpu.vector_store %arg17[%c0_6, %c0_7], %14 {strides = array<i32>} : memref<8x32xf32, #tpu.memory_space<vmem>>, vector<8x8xf32>,
      %c0_8 = arith.constant 0 : index
      %c8 = arith.constant 8 : index
      %16 = vector.load %arg17[%c0_8, %c8] : memref<8x32xf32, #tpu.memory_space<vmem>>, vector<8x8xf32>
      %17 = vector.extract_strided_slice %10 {offsets = [0, 1], sizes = [8, 1], strides = [1, 1]} : vector<8x4xf32> to vector<8x1xf32>
      %18 = vector.broadcast %17 : vector<8x1xf32> to vector<8x8xf32>
      %19 = arith.mulf %16, %18 : vector<8x8xf32>
      %c0_9 = arith.constant 0 : index
      %c8_10 = arith.constant 8 : index
      %20 = vector.load %arg17[%c0_9, %c8_10] : memref<8x32xf32, #tpu.memory_space<vmem>>, vector<8x8xf32>
      tpu.vector_store %arg17[%c0_9, %c8_10], %19 {strides = array<i32>} : memref<8x32xf32, #tpu.memory_space<vmem>>, vector<8x8xf32>,
      %c0_11 = arith.constant 0 : index
      %c16 = arith.constant 16 : index
      %21 = vector.load %arg17[%c0_11, %c16] : memref<8x32xf32, #tpu.memory_space<vmem>>, vector<8x8xf32>
      %22 = vector.extract_strided_slice %10 {offsets = [0, 2], sizes = [8, 1], strides = [1, 1]} : vector<8x4xf32> to vector<8x1xf32>
      %23 = vector.broadcast %22 : vector<8x1xf32> to vector<8x8xf32>
      %24 = arith.mulf %21, %23 : vector<8x8xf32>
      %c0_12 = arith.constant 0 : index
      %c16_13 = arith.constant 16 : index
      %25 = vector.load %arg17[%c0_12, %c16_13] : memref<8x32xf32, #tpu.memory_space<vmem>>, vector<8x8xf32>
      tpu.vector_store %arg17[%c0_12, %c16_13], %24 {strides = array<i32>} : memref<8x32xf32, #tpu.memory_space<vmem>>, vector<8x8xf32>,
      %c0_14 = arith.constant 0 : index
      %c24 = arith.constant 24 : index
      %26 = vector.load %arg17[%c0_14, %c24] : memref<8x32xf32, #tpu.memory_space<vmem>>, vector<8x8xf32>
      %27 = vector.extract_strided_slice %10 {offsets = [0, 3], sizes = [8, 1], strides = [1, 1]} : vector<8x4xf32> to vector<8x1xf32>
      %28 = vector.broadcast %27 : vector<8x1xf32> to vector<8x8xf32>
      %29 = arith.mulf %26, %28 : vector<8x8xf32>
      %c0_15 = arith.constant 0 : index
      %c24_16 = arith.constant 24 : index
      %30 = vector.load %arg17[%c0_15, %c24_16] : memref<8x32xf32, #tpu.memory_space<vmem>>, vector<8x8xf32>
      tpu.vector_store %arg17[%c0_15, %c24_16], %29 {strides = array<i32>} : memref<8x32xf32, #tpu.memory_space<vmem>>, vector<8x8xf32>,
      %c0_17 = arith.constant 0 : index
      %c0_18 = arith.constant 0 : index
      %31 = vector.load %arg17[%c0_17, %c0_18] : memref<8x32xf32, #tpu.memory_space<vmem>>, vector<8x32xf32>
      %32 = arith.truncf %31 : vector<8x32xf32> to vector<8x32xbf16>
      %c0_19 = arith.constant 0 : index
      %c0_20 = arith.constant 0 : index
      %33 = vector.load %arg11[%c0_19, %c0_20] : memref<32x32xbf16, #tpu.memory_space<vmem>>, vector<32x32xbf16>
      %cst = arith.constant dense<0.000000e+00> : vector<8x32xf32>
      %34 = tpu.matmul %32, %33, %cst {dimension_numbers = #tpu.dot_dimension_numbers<[1], [0], [0], [1], [0, 0, 1, 1], [], []>} : vector<8x32xbf16>, vector<32x32xbf16>, vector<8x32xf32> -> vector<8x32xf32>
      %c0_21 = arith.constant 0 : index
      %c0_22 = arith.constant 0 : index
      %35 = vector.load %arg12[%c0_21, %c0_22] : memref<1x32xf32, #tpu.memory_space<vmem>>, vector<1x32xf32>
      %36 = vector.broadcast %35 : vector<1x32xf32> to vector<8x32xf32>
      %37 = arith.addf %34, %36 : vector<8x32xf32>
      %c0_23 = arith.constant 0 : index
      %c0_24 = arith.constant 0 : index
      %c0_25 = arith.constant 0 : index
      %38 = vector.load %arg13[%c0_23, %c0_24, %c0_25] : memref<1x8x32xf32, #tpu.memory_space<vmem>>, vector<1x8x32xf32>
      %39 = vector.shape_cast %38 : vector<1x8x32xf32> to vector<8x32xf32>
      %40 = vector.shape_cast %37 : vector<8x32xf32> to vector<1x8x32xf32>
      tpu.vector_store %arg13[%c0_23, %c0_24, %c0_25], %40 {strides = array<i32>} : memref<1x8x32xf32, #tpu.memory_space<vmem>>, vector<1x8x32xf32>,
    } else {
    }
    return
  }
  func.func @transform_0(%arg0: i32, %arg1: i32, %arg2: i32) -> (i32, i32, i32) {
    %c0_i32 = arith.constant 0 : i32
    %c0_i32_0 = arith.constant 0 : i32
    return %arg0, %arg1, %c0_i32 : i32, i32, i32
  }
  func.func @transform_1(%arg0: i32, %arg1: i32, %arg2: i32) -> (i32, i32, i32) {
    %c0_i32 = arith.constant 0 : i32
    %c0_i32_0 = arith.constant 0 : i32
    return %arg0, %arg2, %c0_i32 : i32, i32, i32
  }
  func.func @transform_2(%arg0: i32, %arg1: i32, %arg2: i32) -> (i32, i32) {
    %c0_i32 = arith.constant 0 : i32
    %c0_i32_0 = arith.constant 0 : i32
    %c0_i32_1 = arith.constant 0 : i32
    return %c0_i32, %c0_i32_0 : i32, i32
  }
  func.func @transform_3(%arg0: i32, %arg1: i32, %arg2: i32) -> (i32, i32) {
    %c0_i32 = arith.constant 0 : i32
    %c0_i32_0 = arith.constant 0 : i32
    %c0_i32_1 = arith.constant 0 : i32
    return %c0_i32, %c0_i32_0 : i32, i32
  }
  func.func @transform_4(%arg0: i32, %arg1: i32, %arg2: i32) -> (i32, i32) {
    %c0_i32 = arith.constant 0 : i32
    %c0_i32_0 = arith.constant 0 : i32
    %c0_i32_1 = arith.constant 0 : i32
    return %c0_i32, %c0_i32_0 : i32, i32
  }
  func.func @transform_5(%arg0: i32, %arg1: i32, %arg2: i32) -> (i32, i32) {
    %c0_i32 = arith.constant 0 : i32
    %c0_i32_0 = arith.constant 0 : i32
    %c0_i32_1 = arith.constant 0 : i32
    return %c0_i32, %c0_i32_0 : i32, i32
  }
  func.func @transform_6(%arg0: i32, %arg1: i32, %arg2: i32) -> (i32, i32) {
    %c0_i32 = arith.constant 0 : i32
    %c0_i32_0 = arith.constant 0 : i32
    %c0_i32_1 = arith.constant 0 : i32
    return %c0_i32, %c0_i32_0 : i32, i32
  }
  func.func @transform_7(%arg0: i32, %arg1: i32, %arg2: i32) -> (i32, i32) {
    %c0_i32 = arith.constant 0 : i32
    %c0_i32_0 = arith.constant 0 : i32
    %c0_i32_1 = arith.constant 0 : i32
    return %c0_i32, %c0_i32_0 : i32, i32
  }
  func.func @transform_8(%arg0: i32, %arg1: i32, %arg2: i32) -> (i32, i32) {
    %c0_i32 = arith.constant 0 : i32
    %c0_i32_0 = arith.constant 0 : i32
    %c0_i32_1 = arith.constant 0 : i32
    return %c0_i32, %c0_i32_0 : i32, i32
  }
  func.func @transform_9(%arg0: i32, %arg1: i32, %arg2: i32) -> (i32, i32) {
    %c0_i32 = arith.constant 0 : i32
    %c0_i32_0 = arith.constant 0 : i32
    %c0_i32_1 = arith.constant 0 : i32
    return %c0_i32, %c0_i32_0 : i32, i32
  }
  func.func @transform_10(%arg0: i32, %arg1: i32, %arg2: i32) -> (i32, i32, i32) {
    %c0_i32 = arith.constant 0 : i32
    %c0_i32_0 = arith.constant 0 : i32
    return %arg0, %arg1, %c0_i32 : i32, i32, i32
  }
}

</mosaic_0001>

<bundles_post_ra>
// kernel: tpu_custom_call.1
= control target key start
LH: loop header
LB: loop body
LE: loop exit
PB: predicated region body
PF: predicated region fallthrough
CT: control target
= control target key end

     0   :  { %s2885_s0 = inlined_call_operand.hbm [shape: bf16[2,16,32], index: 0, kind: input, shape index: {}]   ;;  %s2886_s1 = inlined_call_operand.hbm [shape: bf16[2,16,32], index: 1, kind: input, shape index: {}]   ;;  %s2887_s2 = inlined_call_operand.hbm [shape: bf16[32,32], index: 2, kind: input, shape index: {}]   ;;  %s2888_s3 = inlined_call_operand.hbm [shape: bf16[32,32], index: 3, kind: input, shape index: {}]   ;;  %s2889_s4 = inlined_call_operand.hbm [shape: bf16[32,32], index: 4, kind: input, shape index: {}]   ;;  %s2890_s5 = inlined_call_operand.vmem [shape: f32[1,32], index: 5, kind: input, shape index: {}]   ;;  %s2891_s6 = inlined_call_operand.vmem [shape: f32[1,32], index: 6, kind: input, shape index: {}]   ;;  %s2892_s7 = inlined_call_operand.vmem [shape: f32[1,32], index: 7, kind: input, shape index: {}]   ;;  %s2893_s8 = inlined_call_operand.vmem [shape: bf16[32,32], index: 8, kind: input, shape index: {}]   ;;  %s2894_s9 = inlined_call_operand.vmem [shape: f32[1,32], index: 9, kind: input, shape index: {}]   ;;  %s2895_s10 = inlined_call_operand.hbm [shape: f32[2,16,32], index: 10, kind: output, shape index: {}]  }
   0x1   :  { %2912 = sst [smem:[#allocation30_spill]] %s2886_s1 }
   0x2   :  { %2913 = sst [smem:[#allocation31_spill]] %s2887_s2 }
   0x3   :  { %2914 = sst [smem:[#allocation32_spill]] %s2888_s3 }
   0x4   :  { %2915 = sst [smem:[#allocation33_spill]] %s2889_s4 }
   0x5   :  { %2916 = sst [smem:[#allocation34_spill]] %s2890_s5 }
   0x6   :  { %2917 = sst [smem:[#allocation35_spill]] %s2891_s6 }
   0x7   :  { %2918 = sst [smem:[#allocation36_spill]] %s2892_s7 }
   0x8   :  { %2919 = sst [smem:[#allocation37_spill]] %s2893_s8 }
   0x9   :  { %2920 = sst [smem:[#allocation38_spill]] %s2894_s9 }
   0xa   :  { %2921 = sst [smem:[#allocation39_spill]] %s2895_s10 }
   0xb   :  { %15 = vsyncpa [#allocation7], 0 }
   0xc   :  { %17 = vsyncpa [#allocation7 + $0x1], 0 }
   0xd   :  { %18 = vsyncpa [#allocation10], 0 }
   0xe   :  { %20 = vsyncpa [#allocation10 + $0x1], 0 }
   0xf   :  { %21 = vsyncpa [#allocation13], 0 }
  0x10   :  { %22 = vsyncpa [#allocation8], 0 }
  0x11   :  { %24 = vsyncpa [#allocation8 + $0x1], 0  ;;  %s2308_s13 = smov 0   ;;  %s2310_s14 = smov 0  }
  0x12   :  { %s2312_s15 = smov 0   ;;  %s2314_s16 = smov 0  }
  0x13   :  { %s2316_s17 = smov 0   ;;  %s2318_s18 = smov 0  }
  0x14   :  { %s2320_s19 = smov 0   ;;  %s2322_s20 = smov 0  }
  0x15   :  { %s2324_s21 = smov 0   ;;  %s2326_s22 = smov 0  }
  0x16   :  { %s2328_s23 = smov 0   ;;  %s2330_s24 = smov 0  }
  0x17   :  { %s2332_s25 = smov 0  }
  0x18 LB: > { %2922 = sst [smem:[#allocation21_spill]] %s2185_s16  ;;  %s2374_s26 = sadd.s32 4294967295, %s2221_s25   ;;  %s2221_s25 = sphi %s2332_s25, %s30_s25   ;;  %s2217_s24 = sphi %s2330_s24, %s2993_s24   ;;  %s2213_s23 = sphi %s2328_s23, %s2992_s23   ;;  %s2209_s22 = sphi %s2326_s22, %s2991_s22   ;;  %s2205_s21 = sphi %s2324_s21, %s2990_s21   ;;  %s2201_s20 = sphi %s2322_s20, %s2989_s20   ;;  %s2197_s19 = sphi %s2320_s19, %s2988_s19   ;;  %s2193_s18 = sphi %s2318_s18, %s2987_s18   ;;  %s2189_s17 = sphi %s2316_s17, %s2986_s17   ;;  %s2185_s16 = sphi %s2314_s16, %s2985_s16   ;;  %s2181_s15 = sphi %s2312_s15, %s2984_s15   ;;  %s2177_s14 = sphi %s2310_s14, %s2983_s14   ;;  %s2173_s13 = sphi %s2308_s13, %s2982_s13  }
  0x19   : > { %2923 = sst [smem:[#allocation22_spill]] %s2197_s19  ;;  %p1543_p0 = scmp.ge.s32.totalorder %s2221_s25, 1 }
  0x1a   : > { %2924 = sst [smem:[#allocation23_spill]] %s2201_s20  ;;  %p2900_p1 = scmp.eq.s32.totalorder %s2374_s26, 0 }
  0x1b   : > { %2925 = sst [smem:[#allocation24_spill]] %s2205_s21  ;;  %p306_p2 = scmp.lt.s32.totalorder %s2221_s25, 9 }
  0x1c   : > { %s2223_s28 = smov [#allocation11]   ;;  %s2224_s11 = smov [#allocation12]  }
  0x1d   : > { %p2379_p3 = pnand %p1543_p0, %p306_p2  ;;  %s318_s29 = sshll.u32 %s2223_s28, 4  ;;  %s2383_s29 = int_to_ptr.vmem [resolvable:$true] %s318_s29 }
  0x1e   : > { %s331_s12 = sshll.u32 %s2224_s11, 4  ;;  %s2225_s10 = smov [#allocation14]   ;;  %s2393_s12 = int_to_ptr.vmem [resolvable:$true] %s331_s12 }
  0x1f   : > { %s2926_s27 = scalar_select %p2379_p3, 1, 0 }
  0x20   : > { %p1724_p4 = pneg %p2379_p3  ;;  %s2395_s21 = sshll.u32 %s2225_s10, 4  ;;  %s345_s21 = int_to_ptr.vmem [resolvable:$true] %s2395_s21 }
  0x21   : > { %2927 = sst [smem:[#allocation25_spill]] %s2926_s27  ;;  %s2929_s2 = sld [smem:[#allocation31_spill]] }
  0x22   : > { %p2389_p5 = pnand %p1724_p4, %p2900_p1 }
  0x24   : > { %p2405_p7 = pneg %p2389_p5 }
  0x27   : > { %s1927_s28 = scalar_lea.hbm %s2929_s2, 256 }
  0x28   : > { %p1928_p6 = scmp.ne.s32.totalorder %s2929_s2, %s1927_s28  ;;  %p1934_p10 = scmp.lt.u32.totalorder %s1927_s28, %s2929_s2 }
  0x2a   : > { %p1930_p8 = pnand %p2405_p7, %p1928_p6 }
  0x2c   : > { %p1931_p9 = pneg %p1930_p8 }
  0x2e   : > { %p1936_p11 = pnand %p1934_p10, %p1931_p9 }
  0x30   : > { %1939 = shalt.err (!%p1936_p11)
}
  0x31   : > { %s1940_s6 = scalar_lea.vmem %s2383_s29, 256  ;;  %p1948_p2 = scmp.lt.s32.totalorder %s2383_s29, %s2383_s29 }
  0x32   : > { %p1941_p12 = scmp.ne.s32.totalorder %s2383_s29, %s1940_s6  ;;  %p1949_p4 = scmp.lt.s32.totalorder %s1940_s6, %s1940_s6 }
  0x34   : > { %p1943_p13 = pnand %p1941_p12, %p2405_p7  ;;  %p1950_p6 = por %p1949_p4, %p1948_p2 }
  0x36   : > { %p1944_p0 = pneg %p1943_p13 }
  0x38   : > { %p1951_p8 = pnand %p1950_p6, %p1944_p0 }
  0x3a   : > { %1954 = shalt.err (!%p1951_p8)
}
  0x3b   : > { %s2226_s7 = smov 64   ;;  %s2227_s8 = smov 4  }
  0x3c   : > { %1727 = dma.hbm_to_vmem [thread:$0]  (!%p2389_p5), %s2929_s2, 256, %s2383_s29, [#allocation10], %s2226_s7, %s2226_s7, %s2227_s8  }
  0x3d   : > { %s2931_s3 = sld [smem:[#allocation32_spill]] }
  0x43   : > { %s1955_s6 = scalar_lea.hbm %s2931_s3, 256 }
  0x44   : > { %p1956_p9 = scmp.ne.s32.totalorder %s2931_s3, %s1955_s6  ;;  %p1962_p12 = scmp.lt.u32.totalorder %s1955_s6, %s2931_s3 }
  0x46   : > { %p1958_p10 = pnand %p1956_p9, %p2405_p7 }
  0x48   : > { %p1959_p11 = pneg %p1958_p10 }
  0x4a   : > { %p1964_p13 = pnand %p1962_p12, %p1959_p11 }
  0x4c   : > { %1967 = shalt.err (!%p1964_p13)
}
  0x4d   : > { %s1968_s29 = scalar_lea.vmem %s2393_s12, 256  ;;  %p1976_p6 = scmp.lt.s32.totalorder %s2393_s12, %s2393_s12 }
  0x4e   : > { %p1969_p0 = scmp.ne.s32.totalorder %s2393_s12, %s1968_s29  ;;  %p1977_p8 = scmp.lt.s32.totalorder %s1968_s29, %s1968_s29 }
  0x50   : > { %p1971_p2 = pnand %p1969_p0, %p2405_p7  ;;  %p1978_p9 = por %p1977_p8, %p1976_p6 }
  0x52   : > { %p1972_p4 = pneg %p1971_p2 }
  0x54   : > { %p1979_p10 = pnand %p1978_p9, %p1972_p4 }
  0x56   : > { %1982 = shalt.err (!%p1979_p10)
}
  0x57   : > { %1730 = dma.hbm_to_vmem [thread:$0]  (!%p2389_p5), %s2931_s3, 256, %s2393_s12, [#allocation13], %s2226_s7, %s2226_s7, %s2227_s8  }
  0x58   : > { %s2932_s4 = sld [smem:[#allocation33_spill]] }
  0x5e   : > { %s1983_s9 = scalar_lea.hbm %s2932_s4, 256 }
  0x5f   : > { %p1984_p11 = scmp.ne.s32.totalorder %s2932_s4, %s1983_s9  ;;  %p1990_p0 = scmp.lt.u32.totalorder %s1983_s9, %s2932_s4 }
  0x61   : > { %p1986_p12 = pnand %p1984_p11, %p2405_p7 }
  0x63   : > { %p1987_p13 = pneg %p1986_p12 }
  0x65   : > { %p1992_p2 = pnand %p1990_p0, %p1987_p13 }
  0x67   : > { %1995 = shalt.err (!%p1992_p2)
}
  0x68   : > { %s1996_s29 = scalar_lea.vmem %s345_s21, 256  ;;  %p2004_p9 = scmp.lt.s32.totalorder %s345_s21, %s345_s21 }
  0x69   : > { %p1997_p4 = scmp.ne.s32.totalorder %s345_s21, %s1996_s29  ;;  %p2005_p10 = scmp.lt.s32.totalorder %s1996_s29, %s1996_s29 }
  0x6b   : > { %p1999_p6 = pnand %p1997_p4, %p2405_p7  ;;  %p2006_p1 = por %p2005_p10, %p2004_p9 }
  0x6d   : > { %p2000_p8 = pneg %p1999_p6 }
  0x6f   : > { %p2007_p3 = pnand %p2006_p1, %p2000_p8 }
  0x71   : > { %2010 = shalt.err (!%p2007_p3)
}
  0x72   : > { %1733 = dma.hbm_to_vmem [thread:$0]  (!%p2389_p5), %s2932_s4, 256, %s345_s21, [#allocation13], %s2226_s7, %s2226_s7, %s2227_s8  }
  0x73   : > { %s1542_s20 = sadd.s32 4294967294, %s2221_s25   ;;  %s42_s30 = sadd.s32 1, %s2209_s22 }
  0x74   : > { %s45_s5 = sadd.s32 1, %s2213_s23  ;;  %p43_p1 = scmp.ge.s32.totalorder %s42_s30, 2 }
  0x75   : > { %s49_s19 = sadd.s32 1, %s2217_s24  ;;  %s58_s27 = sadd.s32 1, %s2193_s18 }
  0x76   : > { %p65_p3 = scmp.ne.s32.totalorder %s2193_s18, %s2189_s17  ;;  %s2995_s30 = smov (%p43_p1, %s42_s30), 0 }
  0x77   : > { %2933 = sst [smem:[#allocation26_spill]] %s2995_s30  ;;  %s2997_s5 = smov (!%p43_p1, %s45_s5), %s2213_s23 }
  0x78   : > { %p2909_p5 = scmp.eq.s32.totalorder %s2221_s25, 0  ;;  %p71_p7 = scmp.ne.s32.totalorder %s2189_s17, %s2185_s16 }
  0x79   : > { %p47_p11 = scmp.ge.s32.totalorder %s2997_s5, 2  ;;  %s82_s21 = ssub.s32 %s2209_s22, %s2995_s30 }
  0x7a   : > { %p2497_p12 = por %p2909_p5, %p65_p3  ;;  %p2935_p13 = scmp.eq.s32.totalorder %s2374_s26, 0 }
  0x7b   : > { %s2999_s5 = smov (%p47_p11, %s2997_s5), 0  ;;  %s3001_s19 = smov (!%p47_p11, %s49_s19), %s2217_s24 }
  0x7c   : > { %p2506_p0 = por %p2935_p13, %p71_p7  ;;  %2937 = sst [smem:[#allocation27_spill]] %s2999_s5 }
  0x7d   : > { %s54_s9 = ssub.s32 %s2213_s23, %s2999_s5  ;;  %p293_p2 = scmp.eq.s32.totalorder %s2374_s26, 7 }
  0x7e   : > { %p51_p4 = scmp.ge.s32.totalorder %s3001_s19, 2  ;;  %p299_p6 = scmp.eq.s32.totalorder %s1542_s20, 7 }
  0x7f   : > { %p2519_p8 = por %p293_p2, %p65_p3  ;;  %p2908_p9 = scmp.lt.s32.totalorder %s2221_s25, 8 }
  0x80   : > { %s3003_s19 = smov (%p51_p4, %s3001_s19), 0  ;;  %p2529_p10 = por %p299_p6, %p71_p7 }
  0x81   : > { %s2938_s28 = scalar_select %p2519_p8, 1, 0 }
  0x82   : > { %s2940_s11 = scalar_select %p2529_p10, 1, 0 }
  0x83   : > { %2939 = sst [smem:[#allocation28_spill]] %s2938_s28  ;;  %s373_s10 = sand.u32 1, %s2193_s18  }
  0x84   : > { %2941 = sst [smem:[#allocation29_spill]] %s2940_s11  ;;  %s53_s6 = ssub.s32 %s2217_s24, %s3003_s19 }
  0x85   : > { %s55_s29 = sor.u32 %s54_s9, %s53_s6  ;;  %s2536_s12 = sor.u32 %s82_s21, %s53_s6 }
  0x86   : > { %p56_p1 = scmp.eq.s32.totalorder %s55_s29, 0  ;;  %s1548_s1 = sshll.u32 %s373_s10, 2 }
  0x87   : > { %s1549_s20 = sshll.u32 %s2217_s24, 1  ;;  %s377_s5 = scalar_lea.vmem [#allocation6], %s1548_s1 }
  0x88   : > { %s2541_s2 = scalar_select %p56_p1, %s2193_s18, %s58_s27  }
  0x89   : > { %s382_s3 = sadd.s32 %s2213_s23, %s1549_s20  ;;  %s386_s30 = sshll.u32 %s377_s5, 4  ;;  %s2549_s30 = int_to_ptr.vmem [resolvable:$true] %s386_s30 }
  0x8a   : > { %s1550_s4 = sshll.u32 %s382_s3, 6  ;;  %p2555_p7 = pnand %p2908_p9, %p2497_p12 }
  0x8b   : > { %s2547_s28 = scalar_lea.hbm %s2885_s0, %s1550_s4  ;;  %s2560_s3 = sadd.s32 %s2209_s22, %s1549_s20 }
  0x8c   : > { %s374_s5 = scalar_lea.sflag [#allocation7], %s373_s10  ;;  %s2011_s16 = scalar_lea.hbm %s2547_s28, 64 }
  0x8d   : > { %p2012_p11 = scmp.ne.s32.totalorder %s2547_s28, %s2011_s16  ;;  %p2013_p13 = pneg %p2555_p7 }
  0x8e   : > { %s2016_s7 = scalar_lea.hbm %s2885_s0, 256  ;;  %p2017_p12 = scmp.lt.u32.totalorder %s2547_s28, %s2885_s0 }
  0x8f   : > { %p2014_p2 = pnand %p2013_p13, %p2012_p11  ;;  %p2018_p6 = scmp.lt.u32.totalorder %s2016_s7, %s2011_s16 }
  0x90   : > { %p2020_p9 = scmp.lt.u32.totalorder %s2011_s16, %s2547_s28 }
  0x91   : > { %p2015_p4 = pneg %p2014_p2  ;;  %p2019_p1 = por %p2018_p6, %p2017_p12 }
  0x93   : > { %p2021_p5 = por %p2020_p9, %p2019_p1 }
  0x95   : > { %p2022_p3 = pnand %p2021_p5, %p2015_p4 }
  0x97   : > { %2025 = shalt.err (!%p2022_p3)
}
  0x98   : > { %s2026_s10 = scalar_lea.vmem %s2549_s30, 64  ;;  %s2228_s6 = smov [#allocation6]  }
  0x99   : > { %p2027_p11 = scmp.ne.s32.totalorder %s2549_s30, %s2026_s10  ;;  %s2031_s29 = sshll.u32 %s2228_s6, 4  ;;  %s2032_s29 = int_to_ptr.vmem [resolvable:$false] %s2031_s29 }
  0x9a   : > { %s2033_s1 = scalar_lea.vmem %s2032_s29, 128  ;;  %p2034_p8 = scmp.lt.s32.totalorder %s2549_s30, %s2032_s29 }
  0x9b   : > { %p2029_p2 = pnand %p2027_p11, %p2013_p13  ;;  %p2035_p12 = scmp.lt.s32.totalorder %s2033_s1, %s2026_s10 }
  0x9d   : > { %p2030_p10 = pneg %p2029_p2  ;;  %p2036_p6 = por %p2035_p12, %p2034_p8 }
  0x9f   : > { %p2037_p9 = pnand %p2036_p6, %p2030_p10 }
  0xa1   : > { %2040 = shalt.err (!%p2037_p9)
}
  0xa2   : > { %1737 = dma.hbm_to_vmem [thread:$0]  (!%p2555_p7), %s2547_s28, 64, %s2549_s30, %s374_s5  }
  0xa3   : > { %s86_s20 = sadd.s32 1, %s2181_s15  ;;  %p2943_p5 = scmp.eq.s32.totalorder %s2536_s12, 0 }
  0xa4   : > { %p93_p8 = scmp.ne.s32.totalorder %s2181_s15, %s2177_s14  ;;  %p99_p10 = scmp.ne.s32.totalorder %s2177_s14, %s2173_s13 }
  0xa5   : > { %s2591_s16 = scalar_select %p2943_p5, %s2181_s15, %s86_s20  }
  0xa6   : > { %s393_s27 = sand.u32 1, %s2221_s25   ;;  %s395_s4 = sand.u32 1, %s2181_s15  }
  0xa7   : > { %p2944_p3 = scmp.eq.s32.totalorder %s2221_s25, 0  ;;  %p2945_p4 = scmp.eq.s32.totalorder %s2374_s26, 0 }
  0xa8   : > { %s1551_s7 = sshll.u32 %s395_s4, 2  ;;  %s1553_s9 = sshll.u32 %s2560_s3, 6 }
  0xa9   : > { %p95_p13 = por %p93_p8, %p2944_p3  ;;  %p2603_p1 = por %p99_p10, %p2945_p4 }
  0xaa   : > { %s2947_s30 = sld [smem:[#allocation30_spill]]  ;;  %s397_s13 = scalar_lea.vmem [#allocation9], %s1551_s7 }
  0xab   : > { %s2946_s21 = scalar_select %p2603_p1, 1, 0 }
  0xac   : > { %s406_s12 = sshll.u32 %s397_s13, 4  ;;  %p2948_p7 = scmp.lt.s32.totalorder %s2221_s25, 8  ;;  %s2613_s12 = int_to_ptr.vmem [resolvable:$true] %s406_s12 }
  0xad   : > { %s394_s3 = scalar_lea.sflag [#allocation10], %s393_s27 }
  0xae   : > { %p2617_p11 = pnand %p2948_p7, %p95_p13 }
  0xb0   : > { %s2611_s28 = scalar_lea.hbm %s2947_s30, %s1553_s9  ;;  %p2043_p12 = pneg %p2617_p11 }
  0xb1   : > { %s2041_s6 = scalar_lea.hbm %s2611_s28, 64  ;;  %s2046_s20 = scalar_lea.hbm %s2947_s30, 256 }
  0xb2   : > { %p2042_p2 = scmp.ne.s32.totalorder %s2611_s28, %s2041_s6  ;;  %p2047_p5 = scmp.lt.u32.totalorder %s2611_s28, %s2947_s30 }
  0xb3   : > { %p2048_p8 = scmp.lt.u32.totalorder %s2046_s20, %s2041_s6  ;;  %p2050_p3 = scmp.lt.u32.totalorder %s2041_s6, %s2611_s28 }
  0xb4   : > { %p2044_p6 = pnand %p2043_p12, %p2042_p2 }
  0xb5   : > { %p2049_p10 = por %p2048_p8, %p2047_p5 }
  0xb6   : > { %p2045_p9 = pneg %p2044_p6 }
  0xb7   : > { %p2051_p13 = por %p2050_p3, %p2049_p10 }
  0xb9   : > { %p2052_p4 = pnand %p2051_p13, %p2045_p9 }
  0xbb   : > { %2055 = shalt.err (!%p2052_p4)
}
  0xbc   : > { %s2056_s27 = scalar_lea.vmem %s2613_s12, 64  ;;  %s2229_s9 = smov [#allocation9]  }
  0xbd   : > { %p2057_p7 = scmp.ne.s32.totalorder %s2613_s12, %s2056_s27  ;;  %s2061_s11 = sshll.u32 %s2229_s9, 4  ;;  %s2062_s11 = int_to_ptr.vmem [resolvable:$false] %s2061_s11 }
  0xbe   : > { %s2063_s10 = scalar_lea.vmem %s2062_s11, 128  ;;  %p2064_p1 = scmp.lt.s32.totalorder %s2613_s12, %s2062_s11 }
  0xbf   : > { %p2059_p2 = pnand %p2057_p7, %p2043_p12  ;;  %p2065_p5 = scmp.lt.s32.totalorder %s2063_s10, %s2056_s27 }
  0xc1   : > { %p2060_p6 = pneg %p2059_p2  ;;  %p2066_p8 = por %p2065_p5, %p2064_p1 }
  0xc3   : > { %p2067_p10 = pnand %p2066_p8, %p2060_p6 }
  0xc5   : > { %2070 = shalt.err (!%p2067_p10)
}
  0xc6   : > { %1740 = dma.hbm_to_vmem [thread:$0]  (!%p2617_p11), %s2611_s28, 64, %s2613_s12, %s394_s3  }
  0xc7   : > { %s2950_s13 = sld [smem:[#allocation25_spill]] }
  0xcd   : > { %p2951_p9 = scmp.ne.s32.totalorder %s2950_s13, 0 }
  0xce   : > { %s2649_s6 = sand.u32 (!%p2951_p9), 1, %s2189_s17  }
  0xcf   : > { %415 = sbr.rel (%p2951_p9) target bundleno = 2154 (0x86a), region = 60  ;;  %s1555_s29 = sshll.u32 (!%p2951_p9), %s2649_s6, 2 }
  0xd0   : > { %s418_s1 = scalar_lea.sflag (!%p2951_p9), [#allocation7], %s2649_s6  ;;  %s2653_s20 = scalar_lea.vmem (!%p2951_p9), [#allocation6], %s1555_s29 }
  0xd6   : > { %2152 = dma.done.wait (%p2506_p0), %s418_s1, 64  }
  0xd7   : > { %2154 = vsyncadd (%p2506_p0), %s418_s1, 4294967232  ;;  %s426_s28 = sand.u32 1, %s2374_s26   ;;  %s428_s12 = sand.u32 1, %s2177_s14  }
  0xd8   : > { %s2661_s5 = sshll.u32 %s428_s12, 2  ;;  %s427_s3 = scalar_lea.sflag [#allocation10], %s426_s28 }
  0xd9   : > { %s430_s4 = scalar_lea.vmem [#allocation9], %s2661_s5  ;;  %p2952_p1 = scmp.ne.s32.totalorder %s2946_s21, 0 }
  0xdb   : > { %2156 = dma.done.wait (%p2952_p1), %s427_s3, 64  }
  0xdc   : > { %2158 = vsyncadd (%p2952_p1), %s427_s3, 4294967232  ;;  %p2953_p11 = scmp.eq.s32.totalorder %s2374_s26, 0 }
  0xde   : > { %2160 = dma.done.wait (%p2953_p11), [#allocation10], 256   ;;  %p2954_p0 = pmov %p2953_p11 }
  0xe0   : > { %2162 = vsyncadd (%p2954_p0), [#allocation10], 4294967040  ;;  %p2955_p12 = pmov %p2954_p0 }
  0xe1   : > { %p2956_p3 = pmov %p2954_p0 }
  0xe2   : > { %2164 = dma.done.wait (%p2955_p12), [#allocation13], 512  }
  0xe3   : > { %2166 = vsyncadd (%p2956_p3), [#allocation13], 4294966784  ;;  %s1560_s8 = sshll.u32 %s2649_s6, 3  ;;  %s2957_s27 = sld [smem:[#allocation22_spill]] }
  0xe4   : > { %s2677_s7 = scalar_lea.vmem [#allocation15], %s1560_s8 }
  0xe9   : > { %p1561_p13 = scmp.ne.s32.totalorder %s2957_s27, 0 }
  0xea   : > { %vm489_vm0 = vcmask (!%p1561_p13), 31744   ;;  %v1884_v0 = vld [vmem:[#allocation11] sm:$0xff] (!%p1561_p13)   ;;  %v2230_v1 = vmov (!%p1561_p13), -inf   ;;  %v2231_v2 = vmov (!%p1561_p13), 0.0   ;;  %v1885_v3 = vld [vmem:[#allocation11 + $0x8] sm:$0xff] (!%p1561_p13)   ;;  %vm492_vm1 = vcmask (!%p1561_p13), 261120  }
  0xeb   : > { %488 = sbr.rel (%p1561_p13) target bundleno = 462 (0x1ce), region = 84  ;;  %490 = vst.msk [vmem:[#allocation3] sm:$0xff] (!%p1561_p13), %vm489_vm0, %v2230_v1  ;;  %491 = vst.msk [vmem:[#allocation4] sm:$0xff] (!%p1561_p13), %vm489_vm0, %v2231_v2  ;;  %1626 = vmatprep.subr.bf16.mxu0 (!%p1561_p13), %v2231_v2  ;;  %vm2232_vm2 = vmmov (!%p1561_p13), 0   ;;  %v494_v4 = vld [vmem:[%s2653_s20] sm:$0xf] (!%p1561_p13) }
  0xec   : > { %1627 = vmatpush3.bf16.msra.mxu0 (!%p1561_p13), %v1884_v0  ;;  %1630 = vmatprep.mubr.msk.bf16.mxu0 (!%p1561_p13), %vm2232_vm2, %v2231_v2  ;;  %493 = vst.msk [vmem:[#allocation5] sm:$0xff] (!%p1561_p13), %vm492_vm1, %v2231_v2  ;;  %s2958_s9 = sld [smem:[#allocation34_spill]] (!%p1561_p13)  ;;  %vm563_vm3 = vcmask (!%p1561_p13), 257024  }
  0xed   : > { %1628 = vmatprep.subr.bf16.mxu0 (!%p1561_p13), %v2231_v2 }
  0xf0   : > { %1629 = vmatpush3.bf16.msra.mxu0 (!%p1561_p13), %v1885_v3 }
  0xf2   : > { %v1562_v5 = vld [vmem:[%s2958_s9] ss:$0 sm:$0xff] }
  0xf3   : > { %1631 = vmatmul.mubr.msk.bf16.vlgmr.msra.gmra.mrb[0].mxu0 %vm492_vm1, %v494_v4 }
 0x1c6   : > { %v555_v6 = vpop.f32.mrb[0].mxu0 }
 0x1c7   : > { %v556_v7 = vadd.f32 %v1562_v5, %v555_v6  ;;  %v1632_v8 = vpop.f32.mrb[1].mxu0 }
 0x1c8   : > { %v558_v9 = vpop.f32.mrb[2].mxu0 }
 0x1c9   : > { %v561_v10 = vmul.f32 0.35355338, %v556_v7  ;;  %v1633_v11 = vpop.f32.mrb[3].mxu0 }
 0x1cb   : > { %v562_v12 = vpack.c.bf16 %v561_v10, %v561_v10 }
 0x1cd   : > { %564 = vst.msk [vmem:[#allocation2] sm:$0xf] %vm563_vm3, %v562_v12 }
 0x1ce PF: > { %s2959_s11 = sld [smem:[#allocation23_spill]]  ;;  %s2960_s10 = sld [smem:[#allocation22_spill]] }
 0x1d4   : > { %p1566_p4 = scmp.gt.s32.totalorder %s2960_s10, %s2959_s11 }
 0x1d5   : > { %v1895_v13 = vld [vmem:[#allocation12] sm:$0xff] (!%p1566_p4)   ;;  %v2233_v14 = vmov (!%p1566_p4), 0.0   ;;  %v1896_v15 = vld [vmem:[#allocation12 + $0x8] sm:$0xff] (!%p1566_p4)   ;;  %vm2234_vm4 = vmmov (!%p1566_p4), 0   ;;  %vm593_vm5 = vcmask (!%p1566_p4), 261120   ;;  %s2961_s1 = sld [smem:[#allocation35_spill]] (!%p1566_p4)  ;;  %v703_v40 = vlaneseq (!%p1566_p4) }
 0x1d6   : > { %568 = sbr.rel (%p1566_p4) target bundleno = 1720 (0x6b8), region = 88  ;;  %1634 = vmatprep.subr.bf16.mxu0 (!%p1566_p4), %v2233_v14  ;;  %1642 = vmatprep.subr.bf16.mxu1 (!%p1566_p4), %v2233_v14  ;;  %v569_v16 = vld [vmem:[%s430_s4] sm:$0xf] (!%p1566_p4)  ;;  %vm715_vm6 = vcmask (!%p1566_p4), 64512   ;;  %s2235_s20 = smov (!%p1566_p4), 112   ;;  %v1900_v29 = vld [vmem:[#allocation14] sm:$0xff] (!%p1566_p4)  }
 0x1d7   : > { %1635 = vmatpush3.bf16.msra.mxu0 (!%p1566_p4), %v1895_v13  ;;  %1638 = vmatprep.mubr.msk.bf16.mxu0 (!%p1566_p4), %vm2234_vm4, %v2233_v14  ;;  %s2236_s28 = smov (!%p1566_p4), 120   ;;  %v1897_v25 = vld [vmem:[#allocation2] ss:$0 sps:$4 sm:$0xff] (!%p1566_p4)   ;;  %s2237_s12 = smov (!%p1566_p4), 104   ;;  %v1901_v30 = vld [vmem:[#allocation14 + $0x8] sm:$0xff] (!%p1566_p4)   ;;  %v704_v41 = vshrl.u32 (!%p1566_p4), %v703_v40, 7 }
 0x1d8   : > { %1636 = vmatprep.subr.bf16.mxu0 (!%p1566_p4), %v2233_v14  ;;  %1646 = vmatprep.mubr.msk.bf16.mxu1 (!%p1566_p4), %vm2234_vm4, %v2233_v14  ;;  %v1898_v26 = vld [vmem:[#allocation2] ss:$0 sps:$4 sm:$0xff] (!%p1566_p4)   ;;  %s2962_s5 = sld [smem:[#allocation23_spill]] (!%p1566_p4)  ;;  %s2963_s3 = sld [smem:[#allocation22_spill]] (!%p1566_p4)  ;;  %v709_v42 = vand.u32 (!%p1566_p4), 127, %v703_v40  ;;  %v2239_v55 = vmov (!%p1566_p4), 0  }
 0x1d9   : > { %v714_v27 = vld [vmem:[#allocation2] sm:$0xf] (!%p1566_p4)  ;;  %1643 = vmatpush3.bf16.msra.mxu1 (!%p1566_p4), %v1900_v29  ;;  %v2238_v47 = vmov (!%p1566_p4), -1e+30   ;;  %1886 = vset.pattern.permute.xlu1 (!%p1566_p4), %v2239_v55  ;;  %v2240_v10 = vmov (!%p1566_p4), 1   ;;  %v762_v11 = vld [vmem:[#allocation3] sm:$0xff] (!%p1566_p4) }
 0x1da   : > { %v1899_v28 = vld [vmem:[#allocation2] ss:$0 sps:$4 sm:$0xff] (!%p1566_p4)   ;;  %1644 = vmatprep.subr.bf16.mxu1 (!%p1566_p4), %v2233_v14  ;;  %1887 = vset.pattern.permute.xlu0 (!%p1566_p4), %v2240_v10  ;;  %vm784_vm8 = vcmask (!%p1566_p4), 7168   ;;  %s2964_s21 = sld [smem:[#allocation36_spill]] (!%p1566_p4)  ;;  %vm797_vm9 = vcmask (!%p1566_p4), 1043456   ;;  %vm921_vm10 = vcmask (!%p1566_p4), 15368  }
 0x1db   : > { %1637 = vmatpush3.bf16.msra.mxu0 (!%p1566_p4), %v1896_v15  ;;  %v1567_v17 = vld [vmem:[%s2961_s1] ss:$0 sm:$0xff] (!%p1566_p4)  ;;  %vm1064_vm11 = vcmask (!%p1566_p4), 23568   ;;  %v2242_v40 = vmov (!%p1566_p4), 3   ;;  %vm1206_vm12 = vcmask (!%p1566_p4), 31768   ;;  %s2243_s9 = smov (!%p1566_p4), 8  }
 0x1dc   : > { %1650 = vmatprep.subr.bf16.mxu0 (!%p1566_p4), %v2233_v14  ;;  %s2244_s11 = smov (!%p1566_p4), 16   ;;  %s2245_s10 = smov (!%p1566_p4), 24   ;;  %vm985_vm13 = vcmask (!%p1566_p4), 130112   ;;  %vm1127_vm14 = vcmask (!%p1566_p4), 195712   ;;  %vm1269_vm15 = vcmask (!%p1566_p4), 261312  }
 0x1dd   : > { %1645 = vmatpush3.bf16.msra.mxu1 %v1901_v30 }
 0x1de   : > { %1639 = vmatmul.mubr.msk.bf16.vlgmr.msra.gmra.mrb[0].mxu0 %vm593_vm5, %v569_v16  ;;  %1656 = vmatprep.subr.bf16.mxu1 %v2233_v14  ;;  %s1575_s4 = sshll.u32 %s2962_s5, 3  ;;  %s1576_s8 = sshll.u32 %s2963_s3, 3 }
 0x1df   : > { %1652 = vmatprep.mubr.msk.bf16.mxu0 %vm2234_vm4, %v2233_v14  ;;  %v705_v43 = vstv %s1575_s4  ;;  %v710_v44 = vstv %s1576_s8 }
 0x1e0   : > { %1647 = vmatmul.mubr.msk.bf16.vlgmr.msra.gmra.mrb[0].mxu1 %vm593_vm5, %v569_v16  ;;  %v706_v45 = vadd.s32 %v705_v43, %v704_v41  ;;  %v711_v46 = vadd.s32 %v710_v44, %v709_v42 }
 0x1e1   : > { %1658 = vmatprep.mubr.msk.bf16.mxu1 %vm2234_vm4, %v2233_v14 }
 0x1e2   : > { %vm712_vm7 = vcmp.ge.s32.totalorder %v706_v45, %v711_v46 }
 0x1e3   : > { %v713_v48 = vsel %vm712_vm7, 0.0, %v2238_v47 }
 0x2b1   : > { %v631_v18 = vpop.f32.mrb[0].mxu0 }
 0x2b2   : > { %v632_v19 = vadd.f32 %v1567_v17, %v631_v18  ;;  %v1640_v20 = vpop.f32.mrb[1].mxu0  ;;  %v1571_v18 = vld [vmem:[%s2964_s21] ss:$0 sm:$0xff] }
 0x2b3   : > { %v634_v21 = vpop.f32.mrb[2].mxu0  ;;  %v695_v12 = vpop.f32.mrb[0].mxu1 }
 0x2b4   : > { %v637_v22 = vpack.c.bf16 %v632_v19, %v632_v19  ;;  %v1641_v23 = vpop.f32.mrb[3].mxu0  ;;  %v1648_v13 = vpop.f32.mrb[1].mxu1  ;;  %v696_v20 = vadd.f32 %v1571_v18, %v695_v12 }
 0x2b5   : > { %v698_v16 = vpop.f32.mrb[2].mxu1 }
 0x2b6   : > { %994 = vrot.lane.b32.xlu1 %v637_v22, %s2235_s20  ;;  %851 = vrot.lane.b32.xlu0 %v637_v22, %s2236_s28  ;;  %v720_v24 = vsel %vm715_vm6, %v637_v22, 0  ;;  %v1649_v19 = vpop.f32.mrb[3].mxu1  ;;  %v786_v16 = vld [vmem:[#allocation5] sm:$0xff] }
 0x2b7   : > { %1651 = vmatpush3.bf16.xpose.msra.mxu0 %v720_v24  ;;  %v2241_v24 = vmov 2  }
 0x2b8   : > { %1662 = vmatprep.subr.bf16.mxu0 %v2233_v14 }
 0x2ba   : > { %848 = vrot.lane.b32.xlu0 %v1897_v25, %s2236_s28  ;;  %992 = vrot.lane.b32.xlu1 %v1898_v26, %s2235_s20 }
 0x2be   : > { %1136 = vrot.lane.b32.xlu0 %v637_v22, %s2237_s12  ;;  %1653 = vmatmul.mubr.msk.bf16.vlgmr.msra.gmra.mrb[4].mxu0 %vm715_vm6, %v714_v27  ;;  %v701_v22 = vpack.c.bf16 %v696_v20, %v696_v20 }
 0x2bf   : > { %1134 = vrot.lane.b32.xlu1 %v1899_v28, %s2237_s12  ;;  %1664 = vmatprep.mubr.msk.bf16.mxu0 %vm2234_vm4, %v2233_v14 }
 0x2c0   : > { %v799_v23 = vsel %vm797_vm9, %v701_v22, 0 }
 0x2c1   : > { %1657 = vmatpush3.bf16.msra.mxu1 %v799_v23 }
 0x2c2   : > { %1668 = vmatprep.subr.bf16.mxu1 %v2233_v14 }
 0x328   : > { %v852_v31 = vpop.permute.xlu0 %851  ;;  %v995_v33 = vpop.permute.xlu1 %994 }
 0x329   : > { %v857_v32 = vsel %vm715_vm6, %v852_v31, 0  ;;  %v1000_v35 = vsel %vm715_vm6, %v995_v33, 0 }
 0x32a   : > { %1663 = vmatpush3.bf16.xpose.msra.mxu0 %v857_v32 }
 0x32b   : > { %1674 = vmatprep.subr.bf16.mxu0 %v2233_v14 }
 0x32c   : > { %v849_v34 = vpop.permute.xlu0 %848  ;;  %v993_v37 = vpop.permute.xlu1 %992 }
 0x330   : > { %v1137_v36 = vpop.permute.xlu0 %1136 }
 0x331   : > { %1665 = vmatmul.mubr.msk.bf16.vlgmr.msra.gmra.mrb[8].mxu0 %vm715_vm6, %v849_v34  ;;  %v1142_v38 = vsel %vm715_vm6, %v1137_v36, 0  ;;  %v1135_v39 = vpop.permute.xlu1 %1134 }
 0x332   : > { %1675 = vmatpush3.bf16.xpose.msra.mxu0 %v1000_v35  ;;  %1676 = vmatprep.mubr.msk.bf16.mxu0 %vm2234_vm4, %v2233_v14 }
 0x333   : > { %1686 = vmatprep.subr.bf16.mxu0 %v2233_v14 }
 0x339   : > { %1677 = vmatmul.mubr.msk.bf16.vlgmr.msra.gmra.mrb[12].mxu0 %vm715_vm6, %v993_v37 }
 0x33a   : > { %1687 = vmatpush3.bf16.xpose.msra.mxu0 %v1142_v38  ;;  %1688 = vmatprep.mubr.msk.bf16.mxu0 %vm2234_vm4, %v2233_v14 }
 0x341   : > { %1689 = vmatmul.mubr.msk.bf16.vlgmr.msra.gmra.mrb[16].mxu0 %vm715_vm6, %v1135_v39 }
 0x391   : > { %v756_v49 = vpop.f32.mrb[4].mxu0 }
 0x392   : > { %v2732_v50 = vadd.f32 %v756_v49, %v713_v48  ;;  %v1654_v51 = vpop.f32.mrb[5].mxu0 }
 0x393   : > { %v759_v52 = vpop.f32.mrb[6].mxu0 }
 0x394   : > { %v763_v53 = vsel %vm715_vm6, %v2732_v50, -inf  ;;  %v1655_v54 = vpop.f32.mrb[7].mxu0 }
 0x395   : > { %764 = vmax.xlane.f32.xlu0 %v763_v53 }
 0x404   : > { %v893_v56 = vpop.f32.mrb[8].mxu0 }
 0x405   : > { %v2736_v57 = vadd.f32 %v893_v56, %v713_v48  ;;  %v1666_v58 = vpop.f32.mrb[9].mxu0 }
 0x406   : > { %v896_v59 = vpop.f32.mrb[10].mxu0 }
 0x407   : > { %v1667_v60 = vpop.f32.mrb[11].mxu0  ;;  %v900_v61 = vsel %vm715_vm6, %v2736_v57, -inf }
 0x408   : > { %901 = vmax.xlane.f32.xlu1 %v900_v61 }
 0x40c   : > { %v1036_v62 = vpop.f32.mrb[12].mxu0 }
 0x40d   : > { %v2740_v63 = vadd.f32 %v1036_v62, %v713_v48  ;;  %v1678_v0 = vpop.f32.mrb[13].mxu0 }
 0x40e   : > { %v1039_v1 = vpop.f32.mrb[14].mxu0 }
 0x40f   : > { %v1679_v2 = vpop.f32.mrb[15].mxu0  ;;  %v1043_v3 = vsel %vm715_vm6, %v2740_v63, -inf }
 0x410   : > { %1044 = vmax.xlane.f32.xlu0 %v1043_v3 }
 0x414   : > { %v1178_v4 = vpop.f32.mrb[16].mxu0 }
 0x415   : > { %v2744_v5 = vadd.f32 %v1178_v4, %v713_v48  ;;  %v1690_v6 = vpop.f32.mrb[17].mxu0 }
 0x416   : > { %v1181_v7 = vpop.f32.mrb[18].mxu0 }
 0x417   : > { %v1691_v8 = vpop.f32.mrb[19].mxu0  ;;  %v1185_v9 = vsel %vm715_vm6, %v2744_v5, -inf }
 0x418   : > { %1186 = vmax.xlane.f32.xlu0 %v1185_v9 }
 0x422   : > { %v765_v15 = vpop.xlane.xlu0 %764 }
 0x423   : > { %v766_v17 = vmax.f32 %v762_v11, %v765_v15 }
 0x425   : > { %v767_v21 = vsub.f32 %v762_v11, %v766_v17  ;;  %843 = vst.msk [vmem:[#allocation3] sm:$0xff] %vm784_vm8, %v766_v17  ;;  %772 = vperm.xlu1 %1886, %v766_v17   ;;  %v778_v11 = vld [vmem:[#allocation4] sm:$0xff] }
 0x427   : > { %v768_v25 = vmul.f32 1.442695, %v767_v21 }
 0x429   : > { %1888 = vset.pattern.permute.xlu1 %v2241_v24  ;;  %1902 = vpow2.f32 %v768_v25 }
 0x42c   : > { %v899_v26 = vld [vmem:[#allocation3] sm:$0xff] }
 0x433   : > { %v2755_v30 = vpop.eup %1902 }
 0x434   : > { %v779_v12 = vmul.f32 %v2755_v30, %v778_v11 }
 0x495   : > { %v902_v27 = vpop.xlane.xlu1 %901 }
 0x496   : > { %v903_v28 = vmax.f32 %v899_v26, %v902_v27 }
 0x498   : > { %v904_v29 = vsub.f32 %v899_v26, %v903_v28  ;;  %987 = vst.msk [vmem:[#allocation3] sm:$0xff] %vm921_vm10, %v903_v28  ;;  %909 = vperm.xlu0 %1887, %v903_v28  }
 0x49a   : > { %v905_v48 = vmul.f32 1.442695, %v904_v29 }
 0x49c   : > { %1890 = vset.pattern.permute.xlu0 %v2239_v55 }
 0x49d   : > { %789 = vperm.xlu0 %1890, %v2755_v30   ;;  %v1045_v31 = vpop.xlane.xlu0 %1044 }
 0x49f   : > { %v1042_v32 = vld [vmem:[#allocation3] sm:$0xff] }
 0x4a0   : > { %v1046_v33 = vmax.f32 %v1042_v32, %v1045_v31 }
 0x4a1   : > { %1892 = vset.pattern.permute.xlu0 %v2241_v24 }
 0x4a2   : > { %v1047_v34 = vsub.f32 %v1042_v32, %v1046_v33  ;;  %1129 = vst.msk [vmem:[#allocation3] sm:$0xff] %vm1064_vm11, %v1046_v33  ;;  %1052 = vperm.xlu1 %1888, %v1046_v33  }
 0x4a4   : > { %v1048_v35 = vmul.f32 1.442695, %v1047_v34  ;;  %v773_v36 = vpop.permute.xlu1 %772 }
 0x4a5   : > { %v775_v37 = vsub.f32 %v2732_v50, %v773_v36  ;;  %v1187_v39 = vpop.xlane.xlu0 %1186 }
 0x4a6   : > { %1904 = vpow2.f32 %v1048_v35  ;;  %932 = vrot.lane.b32.xlu1 %v701_v22, %s2236_s28 }
 0x4a7   : > { %v776_v38 = vmul.f32 1.442695, %v775_v37  ;;  %1889 = vset.pattern.permute.xlu1 %v2242_v40 }
 0x4a9   : > { %1906 = vpow2.f32 %v776_v38  ;;  %v1184_v41 = vld [vmem:[#allocation3] sm:$0xff] }
 0x4aa   : > { %v1188_v42 = vmax.f32 %v1184_v41, %v1187_v39  ;;  %1908 = vpow2.f32 %v905_v48 }
 0x4ac   : > { %v1189_v43 = vsub.f32 %v1184_v41, %v1188_v42  ;;  %1271 = vst.msk [vmem:[#allocation3] sm:$0xff] %vm1206_vm12, %v1188_v42  ;;  %1194 = vperm.xlu1 %1889, %v1188_v42  }
 0x4ae   : > { %v1190_v7 = vmul.f32 1.442695, %v1189_v43 }
 0x4b0   : > { %v2762_v44 = vpop.eup %1904  ;;  %1074 = vrot.lane.b32.xlu1 %v701_v22, %s2235_s20 }
 0x4b1   : > { %1069 = vperm.xlu0 %1892, %v2762_v44   ;;  %1891 = vset.pattern.permute.xlu1 %v2240_v10 }
 0x4b3   : > { %v1907_v45 = vpop.eup %1906 }
 0x4b4   : > { %1216 = vrot.lane.b32.xlu1 %v701_v22, %s2237_s12  ;;  %v793_v46 = vpack.c.bf16 %v1907_v45, %v1907_v45  ;;  %v780_v47 = vsel %vm715_vm6, %v1907_v45, 0.0  ;;  %v1909_v49 = vpop.eup %1908 }
 0x4b5   : > { %1894 = vset.pattern.permute.xlu0 %v2242_v40 }
 0x4b6   : > { %1659 = vmatmul.mubr.msk.bf16.vlgmr.msra.gmra.mrb[4].mxu1 %vm715_vm6, %v793_v46 }
 0x4b7   : > { %1670 = vmatprep.mubr.msk.bf16.mxu1 %vm2234_vm4, %v2233_v14 }
 0x4d8   : > { %781 = vadd.xlane.f32.xlu1 %v780_v47 }
 0x4e9   : > { %926 = vperm.xlu1 %1891, %v1909_v49  }
 0x4ed   : > { %1893 = vset.pattern.permute.xlu1 %v2242_v40 }
 0x517   : > { %v910_v50 = vpop.permute.xlu0 %909 }
 0x518   : > { %v912_v51 = vsub.f32 %v2736_v57, %v910_v50 }
 0x51a   : > { %v913_v52 = vmul.f32 1.442695, %v912_v51 }
 0x51c   : > { %1910 = vpow2.f32 %v913_v52  ;;  %v790_v17 = vpop.permute.xlu0 %789 }
 0x51d   : > { %v792_v18 = vmul.f32 %v790_v17, %v786_v16 }
 0x521   : > { %v1053_v53 = vpop.permute.xlu1 %1052 }
 0x522   : > { %v1055_v54 = vsub.f32 %v2740_v63, %v1053_v53 }
 0x524   : > { %v1056_v55 = vmul.f32 1.442695, %v1055_v54 }
 0x525   : > { %v933_v56 = vpop.permute.xlu1 %932 }
 0x526   : > { %v1911_v58 = vpop.eup %1910  ;;  %1912 = vpow2.f32 %v1056_v55  ;;  %v938_v59 = vsel %vm797_vm9, %v933_v56, 0 }
 0x527   : > { %1669 = vmatpush3.bf16.msra.mxu1 %v938_v59  ;;  %v917_v60 = vsel %vm715_vm6, %v1911_v58, 0.0  ;;  %v930_v61 = vpack.c.bf16 %v1911_v58, %v1911_v58 }
 0x528   : > { %918 = vadd.xlane.f32.xlu0 %v917_v60  ;;  %1680 = vmatprep.subr.bf16.mxu1 %v2233_v14 }
 0x52a   : > { %1671 = vmatmul.mubr.msk.bf16.vlgmr.msra.gmra.mrb[8].mxu1 %vm715_vm6, %v930_v61 }
 0x52b   : > { %v1195_v57 = vpop.permute.xlu1 %1194  ;;  %1682 = vmatprep.mubr.msk.bf16.mxu1 %vm2234_vm4, %v2233_v14 }
 0x52c   : > { %v1197_v62 = vsub.f32 %v2744_v5, %v1195_v57 }
 0x52e   : > { %v1198_v63 = vmul.f32 1.442695, %v1197_v62 }
 0x52f   : > { %v1075_v0 = vpop.permute.xlu1 %1074 }
 0x530   : > { %v1913_v1 = vpop.eup %1912  ;;  %1914 = vpow2.f32 %v1198_v63  ;;  %v1080_v2 = vsel %vm797_vm9, %v1075_v0, 0  ;;  %v1070_v23 = vpop.permute.xlu0 %1069 }
 0x531   : > { %1681 = vmatpush3.bf16.msra.mxu1 %v1080_v2  ;;  %v1060_v3 = vsel %vm715_vm6, %v1913_v1, 0.0  ;;  %v1073_v4 = vpack.c.bf16 %v1913_v1, %v1913_v1  ;;  %1916 = vpow2.f32 %v1190_v7 }
 0x532   : > { %1061 = vadd.xlane.f32.xlu1 %v1060_v3  ;;  %1692 = vmatprep.subr.bf16.mxu1 %v2233_v14 }
 0x533   : > { %v1217_v6 = vpop.permute.xlu1 %1216 }
 0x534   : > { %v1222_v8 = vsel %vm797_vm9, %v1217_v6, 0  ;;  %1683 = vmatmul.mubr.msk.bf16.vlgmr.msra.gmra.mrb[12].mxu1 %vm715_vm6, %v1073_v4 }
 0x535   : > { %1693 = vmatpush3.bf16.msra.mxu1 %v1222_v8  ;;  %1694 = vmatprep.mubr.msk.bf16.mxu1 %vm2234_vm4, %v2233_v14 }
 0x53a   : > { %v1915_v5 = vpop.eup %1914 }
 0x53b   : > { %v1215_v9 = vpack.c.bf16 %v1915_v5, %v1915_v5  ;;  %v2788_v10 = vpop.eup %1916  ;;  %v1202_v45 = vsel %vm715_vm6, %v1915_v5, 0.0 }
 0x53d   : > { %1695 = vmatmul.mubr.msk.bf16.vlgmr.msra.gmra.mrb[16].mxu1 %vm715_vm6, %v1215_v9 }
 0x543   : > { %1211 = vperm.xlu1 %1893, %v2788_v10  }
 0x565   : > { %v782_v13 = vpop.xlane.xlu1 %781 }
 0x566   : > { %v783_v15 = vadd.f32 %v782_v13, %v779_v12 }
 0x568   : > { %785 = vst.msk [vmem:[#allocation4] sm:$0xff] %vm784_vm8, %v783_v15 }
 0x569   : > { %v927_v28 = vpop.permute.xlu1 %926 }
 0x56f   : > { %v915_v24 = vld [vmem:[#allocation4] sm:$0xff] }
 0x570   : > { %v916_v25 = vmul.f32 %v1909_v49, %v915_v24 }
 0x589   : > { %v835_v14 = vpop.f32.mrb[4].mxu1 }
 0x58a   : > { %v841_v19 = vadd.f32 %v835_v14, %v792_v18  ;;  %v1660_v20 = vpop.f32.mrb[5].mxu1 }
 0x58b   : > { %v838_v21 = vpop.f32.mrb[6].mxu1 }
 0x58c   : > { %842 = vst.msk [vmem:[#allocation5] sm:$0xff] %vm715_vm6, %v841_v19  ;;  %v1661_v22 = vpop.f32.mrb[7].mxu1 }
 0x593   : > { %v923_v46 = vld [vmem:[#allocation5] sm:$0xff] }
 0x594   : > { %v929_v47 = vmul.f32 %v927_v28, %v923_v46 }
 0x5b5   : > { %v919_v26 = vpop.xlane.xlu0 %918 }
 0x5b6   : > { %v920_v27 = vadd.f32 %v919_v26, %v916_v25 }
 0x5b8   : > { %922 = vst.msk [vmem:[#allocation4] sm:$0xff] %vm921_vm10, %v920_v27 }
 0x5bf   : > { %v1058_v29 = vld [vmem:[#allocation4] sm:$0xff]  ;;  %v1062_v31 = vpop.xlane.xlu1 %1061 }
 0x5c0   : > { %v1059_v30 = vmul.f32 %v2762_v44, %v1058_v29 }
 0x5c2   : > { %v1063_v32 = vadd.f32 %v1062_v31, %v1059_v30 }
 0x5c3   : > { %v1212_v54 = vpop.permute.xlu1 %1211 }
 0x5c4   : > { %1065 = vst.msk [vmem:[#allocation4] sm:$0xff] %vm1064_vm11, %v1063_v32 }
 0x5cb   : > { %v1200_v60 = vld [vmem:[#allocation4] sm:$0xff] }
 0x5cc   : > { %v1201_v61 = vmul.f32 %v2788_v10, %v1200_v60 }
 0x5fd   : > { %v974_v33 = vpop.f32.mrb[8].mxu1 }
 0x5fe   : > { %v1672_v34 = vpop.f32.mrb[9].mxu1  ;;  %981 = vrot.lane.b32.xlu0 %v974_v33, %s2243_s9 }
 0x5ff   : > { %v977_v35 = vpop.f32.mrb[10].mxu1 }
 0x600   : > { %v1673_v36 = vpop.f32.mrb[11].mxu1 }
 0x607   : > { %v1116_v37 = vpop.f32.mrb[12].mxu1 }
 0x608   : > { %v1684_v38 = vpop.f32.mrb[13].mxu1  ;;  %1123 = vrot.lane.b32.xlu0 %v1116_v37, %s2244_s11 }
 0x609   : > { %v1119_v39 = vpop.f32.mrb[14].mxu1 }
 0x60a   : > { %v1685_v40 = vpop.f32.mrb[15].mxu1 }
 0x610   : > { %v1258_v41 = vpop.f32.mrb[16].mxu1 }
 0x611   : > { %1265 = vrot.lane.b32.xlu1 %v1258_v41, %s2245_s10  ;;  %v1696_v42 = vpop.f32.mrb[17].mxu1 }
 0x612   : > { %v1261_v43 = vpop.f32.mrb[18].mxu1 }
 0x613   : > { %v1697_v44 = vpop.f32.mrb[19].mxu1 }
 0x627   : > { %1203 = vadd.xlane.f32.xlu0 %v1202_v45 }
 0x670   : > { %v982_v48 = vpop.permute.xlu0 %981 }
 0x671   : > { %v984_v49 = vadd.f32 %v982_v48, %v929_v47 }
 0x673   : > { %986 = vst.msk [vmem:[#allocation5] sm:$0xff] %vm985_vm13, %v984_v49 }
 0x67a   : > { %v1066_v50 = vld [vmem:[#allocation5] sm:$0xff]  ;;  %v1124_v52 = vpop.permute.xlu0 %1123 }
 0x67b   : > { %v1072_v51 = vmul.f32 %v1070_v23, %v1066_v50 }
 0x67d   : > { %v1126_v53 = vadd.f32 %v1124_v52, %v1072_v51 }
 0x67f   : > { %1128 = vst.msk [vmem:[#allocation5] sm:$0xff] %vm1127_vm14, %v1126_v53 }
 0x683   : > { %v1266_v58 = vpop.permute.xlu1 %1265 }
 0x686   : > { %v1208_v55 = vld [vmem:[#allocation5] sm:$0xff] }
 0x687   : > { %v1214_v56 = vmul.f32 %v1212_v54, %v1208_v55 }
 0x689   : > { %v1268_v59 = vadd.f32 %v1266_v58, %v1214_v56 }
 0x68b   : > { %1270 = vst.msk [vmem:[#allocation5] sm:$0xff] %vm1269_vm15, %v1268_v59 }
 0x6b4   : > { %v1204_v57 = vpop.xlane.xlu0 %1203 }
 0x6b5   : > { %v1205_v62 = vadd.f32 %v1204_v57, %v1201_v61 }
 0x6b7   : > { %1207 = vst.msk [vmem:[#allocation4] sm:$0xff] %vm1206_vm12, %v1205_v62 }
 0x6b8 PF: > { %s2965_s13 = sld [smem:[#allocation22_spill]] }
 0x6be   : > { %p1588_p7 = scmp.ne.s32.totalorder %s2965_s13, 1 }
 0x6bf   : > { %v1276_v63 = vld [vmem:[#allocation4] sm:$0xff] (!%p1588_p7)  ;;  %v2246_v0 = vmov (!%p1588_p7), 0   ;;  %v2247_v1 = vmov (!%p1588_p7), 2   ;;  %v2248_v3 = vmov (!%p1588_p7), 1   ;;  %v2249_v4 = vmov (!%p1588_p7), 3   ;;  %s2966_s20 = sld [smem:[#allocation37_spill]] (!%p1588_p7) }
 0x6c0   : > { %1275 = sbr.rel (%p1588_p7) target bundleno = 2124 (0x84c), region = 92  ;;  %1918 = vset.pattern.permute.xlu0 (!%p1588_p7), %v2246_v0  ;;  %1925 = vrcp.f32 (!%p1588_p7), %v1276_v63  ;;  %1920 = vset.pattern.permute.xlu1 (!%p1588_p7), %v2247_v1  ;;  %v2250_v7 = vmov (!%p1588_p7), 0.0   ;;  %vm2251_vm0 = vmmov (!%p1588_p7), 0   ;;  %v1278_v5 = vld [vmem:[#allocation5] sm:$0xff] (!%p1588_p7)  ;;  %vm1285_vm1 = vcmask (!%p1588_p7), 64512   ;;  %s2968_s8 = sld [smem:[#allocation38_spill]] (!%p1588_p7) }
 0x6c1   : > { %1698 = vmatprep.subr.bf16.mxu0 (!%p1588_p7), %v2250_v7  ;;  %1702 = vmatprep.mubr.msk.bf16.mxu0 (!%p1588_p7), %vm2251_vm0, %v2250_v7  ;;  %vm1293_vm2 = vcmask (!%p1588_p7), 130112   ;;  %vm1301_vm3 = vcmask (!%p1588_p7), 195712   ;;  %vm1309_vm4 = vcmask (!%p1588_p7), 261312   ;;  %vm1336_vm5 = vcmask (!%p1588_p7), 261120  }
 0x6c5   : > { %s2967_s28 = smov (!%p1588_p7), %s2966_s20  ;;  %v1923_v6 = vld [vmem:[%s2966_s20] sm:$0xff] (!%p1588_p7)  }
 0x6c6   : > { %1699 = vmatpush3.bf16.msra.mxu0 (!%p1588_p7), %v1923_v6  ;;  %v1924_v8 = vld [vmem:[%s2967_s28 + $0x8] sm:$0xff] (!%p1588_p7)   ;;  %v1589_v22 = vld [vmem:[%s2968_s8] ss:$0 sm:$0xff] (!%p1588_p7) }
 0x6c7   : > { %1700 = vmatprep.subr.bf16.mxu0 %v2250_v7 }
 0x6ca   : > { %v1926_v2 = vpop.eup %1925  ;;  %1701 = vmatpush3.bf16.msra.mxu0 %v1924_v8 }
 0x6cb   : > { %1281 = vperm.xlu0 %1918, %v1926_v2   ;;  %1297 = vperm.xlu1 %1920, %v1926_v2  }
 0x6cf   : > { %1919 = vset.pattern.permute.xlu0 %v2248_v3  ;;  %1921 = vset.pattern.permute.xlu1 %v2249_v4 }
 0x6d0   : > { %1289 = vperm.xlu0 %1919, %v1926_v2   ;;  %1305 = vperm.xlu1 %1921, %v1926_v2  }
 0x6d4   : > { %1922 = vset.pattern.permute.xlu0 %v2249_v4 }
 0x74a   : > { %v1282_v9 = vpop.permute.xlu0 %1281  ;;  %v1298_v15 = vpop.permute.xlu1 %1297 }
 0x74b   : > { %v1284_v10 = vmul.f32 %v1282_v9, %v1278_v5 }
 0x74d   : > { %1286 = vst.msk [vmem:[#allocation5] sm:$0xff] %vm1285_vm1, %v1284_v10 }
 0x74f   : > { %v1290_v11 = vpop.permute.xlu0 %1289  ;;  %v1306_v18 = vpop.permute.xlu1 %1305 }
 0x754   : > { %v1287_v12 = vld [vmem:[#allocation5] sm:$0xff] }
 0x755   : > { %v1292_v13 = vmul.f32 %v1290_v11, %v1287_v12 }
 0x757   : > { %1294 = vst.msk [vmem:[#allocation5] sm:$0xff] %vm1293_vm2, %v1292_v13 }
 0x75e   : > { %v1295_v16 = vld [vmem:[#allocation5] sm:$0xff] }
 0x75f   : > { %v1300_v17 = vmul.f32 %v1298_v15, %v1295_v16 }
 0x761   : > { %1302 = vst.msk [vmem:[#allocation5] sm:$0xff] %vm1301_vm3, %v1300_v17 }
 0x768   : > { %v1303_v14 = vld [vmem:[#allocation5] sm:$0xff] }
 0x769   : > { %v1308_v19 = vmul.f32 %v1306_v18, %v1303_v14 }
 0x76b   : > { %1310 = vst.msk [vmem:[#allocation5] sm:$0xff] %vm1309_vm4, %v1308_v19 }
 0x772   : > { %v1311_v20 = vld [vmem:[#allocation5] sm:$0xff] }
 0x773   : > { %v1312_v21 = vpack.c.bf16 %v1311_v20, %v1311_v20 }
 0x775   : > { %1703 = vmatmul.mubr.msk.bf16.vlgmr.msra.gmra.mrb[0].mxu0 %vm1336_vm5, %v1312_v21 }
 0x848   : > { %v1374_v23 = vpop.f32.mrb[0].mxu0 }
 0x849   : > { %v1375_v24 = vadd.f32 %v1589_v22, %v1374_v23  ;;  %v1704_v25 = vpop.f32.mrb[1].mxu0 }
 0x84a   : > { %v1377_v26 = vpop.f32.mrb[2].mxu0 }
 0x84b   : > { %1380 = vst.msk [vmem:[%s2677_s7] sm:$0xff] %vm1336_vm5, %v1375_v24  ;;  %v1705_v27 = vpop.f32.mrb[3].mxu0 }
 0x84c PF: > { %s2969_s27 = sld [smem:[#allocation24_spill]]  ;;  %s2970_s26 = sld [smem:[#allocation23_spill]] }
 0x84d   : > { %s2971_s21 = sld [smem:[#allocation28_spill]]  ;;  %s1397_s10 = sshll.u32 %s2677_s7, 4  ;;  %s2814_s10 = int_to_ptr.vmem [resolvable:$true] %s1397_s10 }
 0x84e   : > { %s2972_s20 = sld [smem:[#allocation39_spill]]  ;;  %s1382_s3 = scalar_lea.sflag [#allocation8], %s2649_s6 }
 0x84f   : > { %s2071_s4 = scalar_lea.vmem %s2814_s10, 128  ;;  %s2252_s8 = smov [#allocation15]  }
 0x850   : > { %p2072_p2 = scmp.ne.s32.totalorder %s2814_s10, %s2071_s4 }
 0x852   : > { %s1594_s9 = sshll.u32 %s2969_s27, 1  ;;  %s2075_s27 = sshll.u32 %s2252_s8, 4  ;;  %s2076_s27 = int_to_ptr.vmem [resolvable:$false] %s2075_s27 }
 0x853   : > { %s1393_s11 = sadd.s32 %s2970_s26, %s1594_s9  ;;  %p2974_p6 = scmp.ne.s32.totalorder %s2971_s21, 0 }
 0x854   : > { %s1595_s13 = sshll.u32 %s1393_s11, 7  ;;  %s2973_s12 = smov %s2972_s20 }
 0x855   : > { %s1395_s5 = scalar_lea.hbm %s2972_s20, %s1595_s13  ;;  %p2073_p5 = pnand %p2072_p2, %p2974_p6 }
 0x856   : > { %s2077_s7 = scalar_lea.vmem %s2076_s27, 256  ;;  %p2078_p10 = scmp.lt.s32.totalorder %s2814_s10, %s2076_s27 }
 0x857   : > { %p2074_p8 = pneg %p2073_p5  ;;  %p2079_p9 = scmp.lt.s32.totalorder %s2077_s7, %s2071_s4 }
 0x859   : > { %p2080_p1 = por %p2079_p9, %p2078_p10 }
 0x85b   : > { %p2081_p11 = pnand %p2080_p1, %p2074_p8 }
 0x85d   : > { %2084 = shalt.err (!%p2081_p11)
}
 0x85e   : > { %s2085_s26 = scalar_lea.hbm %s1395_s5, 128  ;;  %s2089_s11 = scalar_lea.hbm %s2973_s12, 512 }
 0x85f   : > { %p2086_p0 = scmp.ne.s32.totalorder %s1395_s5, %s2085_s26  ;;  %p2090_p13 = scmp.lt.u32.totalorder %s1395_s5, %s2973_s12 }
 0x860   : > { %p2091_p4 = scmp.lt.u32.totalorder %s2089_s11, %s2085_s26  ;;  %p2093_p2 = scmp.lt.u32.totalorder %s2085_s26, %s1395_s5 }
 0x861   : > { %p2087_p12 = pnand %p2086_p0, %p2974_p6 }
 0x862   : > { %p2092_p7 = por %p2091_p4, %p2090_p13 }
 0x863   : > { %p2088_p3 = pneg %p2087_p12 }
 0x864   : > { %p2094_p5 = por %p2093_p2, %p2092_p7 }
 0x866   : > { %p2095_p8 = pnand %p2094_p5, %p2088_p3 }
 0x868   : > { %2098 = shalt.err (!%p2095_p8)
}
 0x869   : > { %1722 = dma.vmem_to_hbm [thread:$0]  (%p2974_p6), %s2814_s10, 128, %s1395_s5, %s1382_s3  }
 0x86a PF: > { %s2975_s1 = sld [smem:[#allocation21_spill]]  ;;  %s2976_s20 = sld [smem:[#allocation29_spill]] }
 0x86b   : > { %p1752_p10 = scmp.ge.s32.totalorder %s2221_s25, 2 }
 0x870   : > { %s1409_s4 = sand.u32 1, %s2975_s1   ;;  %p2977_p9 = scmp.ne.s32.totalorder %s2976_s20, 0 }
 0x871   : > { %s1410_s8 = scalar_lea.sflag [#allocation8], %s1409_s4 }
 0x872   : > { %p1742_p1 = pnand %p1752_p10, %p2977_p9 }
 0x874   : > { %2168 = dma.done.wait (!%p1742_p1), %s1410_s8, 128  }
 0x875   : > { %2170 = vsyncadd (!%p1742_p1), %s1410_s8, 4294967168  ;;  %s30_s25 = sadd.s32 1, %s2221_s25   ;;  %s2979_s10 = sld [smem:[#allocation26_spill]] }
 0x876   : > { %p2841_p11 = scmp.ge.s32.totalorder %s30_s25, 10   ;;  %s2980_s5 = sld [smem:[#allocation27_spill]] }
 0x877   : > { %s2981_s3 = smov %s3003_s19  ;;  %s2982_s13 = smov %s2177_s14 }
 0x878   : > { %s2983_s14 = smov %s2181_s15  ;;  %s2984_s15 = smov %s2591_s16 }
 0x879   : > { %s2985_s16 = smov %s2189_s17  ;;  %s2986_s17 = smov %s2193_s18 }
 0x87a   : > { %s2987_s18 = smov %s2541_s2  ;;  %s2988_s19 = smov %s2209_s22 }
 0x87b   : > { %s2989_s20 = smov %s2213_s23  ;;  %s2990_s21 = smov %s2217_s24 }
 0x87c   : > { %s2991_s22 = smov %s2979_s10  ;;  %s2992_s23 = smov %s2980_s5 }
 0x87d   : > { %s2993_s24 = smov %s2981_s3  ;;  %29 = sbr.rel (!%p2841_p11) target bundleno = 24 (0x18), region = 142 }
 0x884   :  { %1415 = vsyncpa [#allocation7], 1 }
 0x885   :  { %1417 = vsyncpa [#allocation7 + $0x1], 1 }
 0x886   :  { %1418 = vsyncpa [#allocation10], 1 }
 0x887   :  { %1420 = vsyncpa [#allocation10 + $0x1], 1 }
 0x888   :  { %1421 = vsyncpa [#allocation13], 1 }
 0x889   :  { %1422 = vsyncpa [#allocation8], 1 }
 0x88a   :  { %1424 = vsyncpa [#allocation8 + $0x1], 1 }

// kernel: tpu_custom_call.1
= control target key start
LH: loop header
LB: loop body
LE: loop exit
PB: predicated region body
PF: predicated region fallthrough
CT: control target
= control target key end

     0   :  { %s2885_s0 = inlined_call_operand.hbm [shape: bf16[2,16,32], index: 0, kind: input, shape index: {}]   ;;  %s2886_s1 = inlined_call_operand.hbm [shape: bf16[2,16,32], index: 1, kind: input, shape index: {}]   ;;  %s2887_s2 = inlined_call_operand.hbm [shape: bf16[32,32], index: 2, kind: input, shape index: {}]   ;;  %s2888_s3 = inlined_call_operand.hbm [shape: bf16[32,32], index: 3, kind: input, shape index: {}]   ;;  %s2889_s4 = inlined_call_operand.hbm [shape: bf16[32,32], index: 4, kind: input, shape index: {}]   ;;  %s2890_s5 = inlined_call_operand.vmem [shape: f32[1,32], index: 5, kind: input, shape index: {}]   ;;  %s2891_s6 = inlined_call_operand.vmem [shape: f32[1,32], index: 6, kind: input, shape index: {}]   ;;  %s2892_s7 = inlined_call_operand.vmem [shape: f32[1,32], index: 7, kind: input, shape index: {}]   ;;  %s2893_s8 = inlined_call_operand.vmem [shape: bf16[32,32], index: 8, kind: input, shape index: {}]   ;;  %s2894_s9 = inlined_call_operand.vmem [shape: f32[1,32], index: 9, kind: input, shape index: {}]   ;;  %s2895_s10 = inlined_call_operand.hbm [shape: f32[2,16,32], index: 10, kind: output, shape index: {}]  }
   0x1   :  { %2912 = sst [smem:[#allocation30_spill]] %s2886_s1 }
   0x2   :  { %2913 = sst [smem:[#allocation31_spill]] %s2887_s2 }
   0x3   :  { %2914 = sst [smem:[#allocation32_spill]] %s2888_s3 }
   0x4   :  { %2915 = sst [smem:[#allocation33_spill]] %s2889_s4 }
   0x5   :  { %2916 = sst [smem:[#allocation34_spill]] %s2890_s5 }
   0x6   :  { %2917 = sst [smem:[#allocation35_spill]] %s2891_s6 }
   0x7   :  { %2918 = sst [smem:[#allocation36_spill]] %s2892_s7 }
   0x8   :  { %2919 = sst [smem:[#allocation37_spill]] %s2893_s8 }
   0x9   :  { %2920 = sst [smem:[#allocation38_spill]] %s2894_s9 }
   0xa   :  { %2921 = sst [smem:[#allocation39_spill]] %s2895_s10 }
   0xb   :  { %15 = vsyncpa [#allocation7], 0 }
   0xc   :  { %17 = vsyncpa [#allocation7 + $0x1], 0 }
   0xd   :  { %18 = vsyncpa [#allocation10], 0 }
   0xe   :  { %20 = vsyncpa [#allocation10 + $0x1], 0 }
   0xf   :  { %21 = vsyncpa [#allocation13], 0 }
  0x10   :  { %22 = vsyncpa [#allocation8], 0 }
  0x11   :  { %24 = vsyncpa [#allocation8 + $0x1], 0  ;;  %s2308_s13 = smov 0   ;;  %s2310_s14 = smov 0  }
  0x12   :  { %s2312_s15 = smov 0   ;;  %s2314_s16 = smov 0  }
  0x13   :  { %s2316_s17 = smov 0   ;;  %s2318_s18 = smov 0  }
  0x14   :  { %s2320_s19 = smov 0   ;;  %s2322_s20 = smov 0  }
  0x15   :  { %s2324_s21 = smov 0   ;;  %s2326_s22 = smov 0  }
  0x16   :  { %s2328_s23 = smov 0   ;;  %s2330_s24 = smov 0  }
  0x17   :  { %s2332_s25 = smov 0  }
  0x18 LB: > { %2922 = sst [smem:[#allocation21_spill]] %s2185_s16  ;;  %s2374_s26 = sadd.s32 4294967295, %s2221_s25   ;;  %s2221_s25 = sphi %s2332_s25, %s30_s25   ;;  %s2217_s24 = sphi %s2330_s24, %s2993_s24   ;;  %s2213_s23 = sphi %s2328_s23, %s2992_s23   ;;  %s2209_s22 = sphi %s2326_s22, %s2991_s22   ;;  %s2205_s21 = sphi %s2324_s21, %s2990_s21   ;;  %s2201_s20 = sphi %s2322_s20, %s2989_s20   ;;  %s2197_s19 = sphi %s2320_s19, %s2988_s19   ;;  %s2193_s18 = sphi %s2318_s18, %s2987_s18   ;;  %s2189_s17 = sphi %s2316_s17, %s2986_s17   ;;  %s2185_s16 = sphi %s2314_s16, %s2985_s16   ;;  %s2181_s15 = sphi %s2312_s15, %s2984_s15   ;;  %s2177_s14 = sphi %s2310_s14, %s2983_s14   ;;  %s2173_s13 = sphi %s2308_s13, %s2982_s13  }
  0x19   : > { %2923 = sst [smem:[#allocation22_spill]] %s2197_s19  ;;  %p1543_p0 = scmp.ge.s32.totalorder %s2221_s25, 1 }
  0x1a   : > { %2924 = sst [smem:[#allocation23_spill]] %s2201_s20  ;;  %p2900_p1 = scmp.eq.s32.totalorder %s2374_s26, 0 }
  0x1b   : > { %2925 = sst [smem:[#allocation24_spill]] %s2205_s21  ;;  %p306_p2 = scmp.lt.s32.totalorder %s2221_s25, 9 }
  0x1c   : > { %s2223_s28 = smov [#allocation11]   ;;  %s2224_s11 = smov [#allocation12]  }
  0x1d   : > { %p2379_p3 = pnand %p1543_p0, %p306_p2  ;;  %s318_s29 = sshll.u32 %s2223_s28, 4  ;;  %s2383_s29 = int_to_ptr.vmem [resolvable:$true] %s318_s29 }
  0x1e   : > { %s331_s12 = sshll.u32 %s2224_s11, 4  ;;  %s2225_s10 = smov [#allocation14]   ;;  %s2393_s12 = int_to_ptr.vmem [resolvable:$true] %s331_s12 }
  0x1f   : > { %s2926_s27 = scalar_select %p2379_p3, 1, 0 }
  0x20   : > { %p1724_p4 = pneg %p2379_p3  ;;  %s2395_s21 = sshll.u32 %s2225_s10, 4  ;;  %s345_s21 = int_to_ptr.vmem [resolvable:$true] %s2395_s21 }
  0x21   : > { %2927 = sst [smem:[#allocation25_spill]] %s2926_s27  ;;  %s2929_s2 = sld [smem:[#allocation31_spill]] }
  0x22   : > { %p2389_p5 = pnand %p1724_p4, %p2900_p1 }
  0x24   : > { %p2405_p7 = pneg %p2389_p5 }
  0x27   : > { %s1927_s28 = scalar_lea.hbm %s2929_s2, 256 }
  0x28   : > { %p1928_p6 = scmp.ne.s32.totalorder %s2929_s2, %s1927_s28  ;;  %p1934_p10 = scmp.lt.u32.totalorder %s1927_s28, %s2929_s2 }
  0x2a   : > { %p1930_p8 = pnand %p2405_p7, %p1928_p6 }
  0x2c   : > { %p1931_p9 = pneg %p1930_p8 }
  0x2e   : > { %p1936_p11 = pnand %p1934_p10, %p1931_p9 }
  0x30   : > { %1939 = shalt.err (!%p1936_p11)
}
  0x31   : > { %s1940_s6 = scalar_lea.vmem %s2383_s29, 256  ;;  %p1948_p2 = scmp.lt.s32.totalorder %s2383_s29, %s2383_s29 }
  0x32   : > { %p1941_p12 = scmp.ne.s32.totalorder %s2383_s29, %s1940_s6  ;;  %p1949_p4 = scmp.lt.s32.totalorder %s1940_s6, %s1940_s6 }
  0x34   : > { %p1943_p13 = pnand %p1941_p12, %p2405_p7  ;;  %p1950_p6 = por %p1949_p4, %p1948_p2 }
  0x36   : > { %p1944_p0 = pneg %p1943_p13 }
  0x38   : > { %p1951_p8 = pnand %p1950_p6, %p1944_p0 }
  0x3a   : > { %1954 = shalt.err (!%p1951_p8)
}
  0x3b   : > { %s2226_s7 = smov 64   ;;  %s2227_s8 = smov 4  }
  0x3c   : > { %1727 = dma.hbm_to_vmem [thread:$0]  (!%p2389_p5), %s2929_s2, 256, %s2383_s29, [#allocation10], %s2226_s7, %s2226_s7, %s2227_s8  }
  0x3d   : > { %s2931_s3 = sld [smem:[#allocation32_spill]] }
  0x43   : > { %s1955_s6 = scalar_lea.hbm %s2931_s3, 256 }
  0x44   : > { %p1956_p9 = scmp.ne.s32.totalorder %s2931_s3, %s1955_s6  ;;  %p1962_p12 = scmp.lt.u32.totalorder %s1955_s6, %s2931_s3 }
  0x46   : > { %p1958_p10 = pnand %p1956_p9, %p2405_p7 }
  0x48   : > { %p1959_p11 = pneg %p1958_p10 }
  0x4a   : > { %p1964_p13 = pnand %p1962_p12, %p1959_p11 }
  0x4c   : > { %1967 = shalt.err (!%p1964_p13)
}
  0x4d   : > { %s1968_s29 = scalar_lea.vmem %s2393_s12, 256  ;;  %p1976_p6 = scmp.lt.s32.totalorder %s2393_s12, %s2393_s12 }
  0x4e   : > { %p1969_p0 = scmp.ne.s32.totalorder %s2393_s12, %s1968_s29  ;;  %p1977_p8 = scmp.lt.s32.totalorder %s1968_s29, %s1968_s29 }
  0x50   : > { %p1971_p2 = pnand %p1969_p0, %p2405_p7  ;;  %p1978_p9 = por %p1977_p8, %p1976_p6 }
  0x52   : > { %p1972_p4 = pneg %p1971_p2 }
  0x54   : > { %p1979_p10 = pnand %p1978_p9, %p1972_p4 }
  0x56   : > { %1982 = shalt.err (!%p1979_p10)
}
  0x57   : > { %1730 = dma.hbm_to_vmem [thread:$0]  (!%p2389_p5), %s2931_s3, 256, %s2393_s12, [#allocation13], %s2226_s7, %s2226_s7, %s2227_s8  }
  0x58   : > { %s2932_s4 = sld [smem:[#allocation33_spill]] }
  0x5e   : > { %s1983_s9 = scalar_lea.hbm %s2932_s4, 256 }
  0x5f   : > { %p1984_p11 = scmp.ne.s32.totalorder %s2932_s4, %s1983_s9  ;;  %p1990_p0 = scmp.lt.u32.totalorder %s1983_s9, %s2932_s4 }
  0x61   : > { %p1986_p12 = pnand %p1984_p11, %p2405_p7 }
  0x63   : > { %p1987_p13 = pneg %p1986_p12 }
  0x65   : > { %p1992_p2 = pnand %p1990_p0, %p1987_p13 }
  0x67   : > { %1995 = shalt.err (!%p1992_p2)
}
  0x68   : > { %s1996_s29 = scalar_lea.vmem %s345_s21, 256  ;;  %p2004_p9 = scmp.lt.s32.totalorder %s345_s21, %s345_s21 }
  0x69   : > { %p1997_p4 = scmp.ne.s32.totalorder %s345_s21, %s1996_s29  ;;  %p2005_p10 = scmp.lt.s32.totalorder %s1996_s29, %s1996_s29 }
  0x6b   : > { %p1999_p6 = pnand %p1997_p4, %p2405_p7  ;;  %p2006_p1 = por %p2005_p10, %p2004_p9 }
  0x6d   : > { %p2000_p8 = pneg %p1999_p6 }
  0x6f   : > { %p2007_p3 = pnand %p2006_p1, %p2000_p8 }
  0x71   : > { %2010 = shalt.err (!%p2007_p3)
}
  0x72   : > { %1733 = dma.hbm_to_vmem [thread:$0]  (!%p2389_p5), %s2932_s4, 256, %s345_s21, [#allocation13], %s2226_s7, %s2226_s7, %s2227_s8  }
  0x73   : > { %s1542_s20 = sadd.s32 4294967294, %s2221_s25   ;;  %s42_s30 = sadd.s32 1, %s2209_s22 }
  0x74   : > { %s45_s5 = sadd.s32 1, %s2213_s23  ;;  %p43_p1 = scmp.ge.s32.totalorder %s42_s30, 2 }
  0x75   : > { %s49_s19 = sadd.s32 1, %s2217_s24  ;;  %s58_s27 = sadd.s32 1, %s2193_s18 }
  0x76   : > { %p65_p3 = scmp.ne.s32.totalorder %s2193_s18, %s2189_s17  ;;  %s2995_s30 = smov (%p43_p1, %s42_s30), 0 }
  0x77   : > { %2933 = sst [smem:[#allocation26_spill]] %s2995_s30  ;;  %s2997_s5 = smov (!%p43_p1, %s45_s5), %s2213_s23 }
  0x78   : > { %p2909_p5 = scmp.eq.s32.totalorder %s2221_s25, 0  ;;  %p71_p7 = scmp.ne.s32.totalorder %s2189_s17, %s2185_s16 }
  0x79   : > { %p47_p11 = scmp.ge.s32.totalorder %s2997_s5, 2  ;;  %s82_s21 = ssub.s32 %s2209_s22, %s2995_s30 }
  0x7a   : > { %p2497_p12 = por %p2909_p5, %p65_p3  ;;  %p2935_p13 = scmp.eq.s32.totalorder %s2374_s26, 0 }
  0x7b   : > { %s2999_s5 = smov (%p47_p11, %s2997_s5), 0  ;;  %s3001_s19 = smov (!%p47_p11, %s49_s19), %s2217_s24 }
  0x7c   : > { %p2506_p0 = por %p2935_p13, %p71_p7  ;;  %2937 = sst [smem:[#allocation27_spill]] %s2999_s5 }
  0x7d   : > { %s54_s9 = ssub.s32 %s2213_s23, %s2999_s5  ;;  %p293_p2 = scmp.eq.s32.totalorder %s2374_s26, 7 }
  0x7e   : > { %p51_p4 = scmp.ge.s32.totalorder %s3001_s19, 2  ;;  %p299_p6 = scmp.eq.s32.totalorder %s1542_s20, 7 }
  0x7f   : > { %p2519_p8 = por %p293_p2, %p65_p3  ;;  %p2908_p9 = scmp.lt.s32.totalorder %s2221_s25, 8 }
  0x80   : > { %s3003_s19 = smov (%p51_p4, %s3001_s19), 0  ;;  %p2529_p10 = por %p299_p6, %p71_p7 }
  0x81   : > { %s2938_s28 = scalar_select %p2519_p8, 1, 0 }
  0x82   : > { %s2940_s11 = scalar_select %p2529_p10, 1, 0 }
  0x83   : > { %2939 = sst [smem:[#allocation28_spill]] %s2938_s28  ;;  %s373_s10 = sand.u32 1, %s2193_s18  }
  0x84   : > { %2941 = sst [smem:[#allocation29_spill]] %s2940_s11  ;;  %s53_s6 = ssub.s32 %s2217_s24, %s3003_s19 }
  0x85   : > { %s55_s29 = sor.u32 %s54_s9, %s53_s6  ;;  %s2536_s12 = sor.u32 %s82_s21, %s53_s6 }
  0x86   : > { %p56_p1 = scmp.eq.s32.totalorder %s55_s29, 0  ;;  %s1548_s1 = sshll.u32 %s373_s10, 2 }
  0x87   : > { %s1549_s20 = sshll.u32 %s2217_s24, 1  ;;  %s377_s5 = scalar_lea.vmem [#allocation6], %s1548_s1 }
  0x88   : > { %s2541_s2 = scalar_select %p56_p1, %s2193_s18, %s58_s27  }
  0x89   : > { %s382_s3 = sadd.s32 %s2213_s23, %s1549_s20  ;;  %s386_s30 = sshll.u32 %s377_s5, 4  ;;  %s2549_s30 = int_to_ptr.vmem [resolvable:$true] %s386_s30 }
  0x8a   : > { %s1550_s4 = sshll.u32 %s382_s3, 6  ;;  %p2555_p7 = pnand %p2908_p9, %p2497_p12 }
  0x8b   : > { %s2547_s28 = scalar_lea.hbm %s2885_s0, %s1550_s4  ;;  %s2560_s3 = sadd.s32 %s2209_s22, %s1549_s20 }
  0x8c   : > { %s374_s5 = scalar_lea.sflag [#allocation7], %s373_s10  ;;  %s2011_s16 = scalar_lea.hbm %s2547_s28, 64 }
  0x8d   : > { %p2012_p11 = scmp.ne.s32.totalorder %s2547_s28, %s2011_s16  ;;  %p2013_p13 = pneg %p2555_p7 }
  0x8e   : > { %s2016_s7 = scalar_lea.hbm %s2885_s0, 256  ;;  %p2017_p12 = scmp.lt.u32.totalorder %s2547_s28, %s2885_s0 }
  0x8f   : > { %p2014_p2 = pnand %p2013_p13, %p2012_p11  ;;  %p2018_p6 = scmp.lt.u32.totalorder %s2016_s7, %s2011_s16 }
  0x90   : > { %p2020_p9 = scmp.lt.u32.totalorder %s2011_s16, %s2547_s28 }
  0x91   : > { %p2015_p4 = pneg %p2014_p2  ;;  %p2019_p1 = por %p2018_p6, %p2017_p12 }
  0x93   : > { %p2021_p5 = por %p2020_p9, %p2019_p1 }
  0x95   : > { %p2022_p3 = pnand %p2021_p5, %p2015_p4 }
  0x97   : > { %2025 = shalt.err (!%p2022_p3)
}
  0x98   : > { %s2026_s10 = scalar_lea.vmem %s2549_s30, 64  ;;  %s2228_s6 = smov [#allocation6]  }
  0x99   : > { %p2027_p11 = scmp.ne.s32.totalorder %s2549_s30, %s2026_s10  ;;  %s2031_s29 = sshll.u32 %s2228_s6, 4  ;;  %s2032_s29 = int_to_ptr.vmem [resolvable:$false] %s2031_s29 }
  0x9a   : > { %s2033_s1 = scalar_lea.vmem %s2032_s29, 128  ;;  %p2034_p8 = scmp.lt.s32.totalorder %s2549_s30, %s2032_s29 }
  0x9b   : > { %p2029_p2 = pnand %p2027_p11, %p2013_p13  ;;  %p2035_p12 = scmp.lt.s32.totalorder %s2033_s1, %s2026_s10 }
  0x9d   : > { %p2030_p10 = pneg %p2029_p2  ;;  %p2036_p6 = por %p2035_p12, %p2034_p8 }
  0x9f   : > { %p2037_p9 = pnand %p2036_p6, %p2030_p10 }
  0xa1   : > { %2040 = shalt.err (!%p2037_p9)
}
  0xa2   : > { %1737 = dma.hbm_to_vmem [thread:$0]  (!%p2555_p7), %s2547_s28, 64, %s2549_s30, %s374_s5  }
  0xa3   : > { %s86_s20 = sadd.s32 1, %s2181_s15  ;;  %p2943_p5 = scmp.eq.s32.totalorder %s2536_s12, 0 }
  0xa4   : > { %p93_p8 = scmp.ne.s32.totalorder %s2181_s15, %s2177_s14  ;;  %p99_p10 = scmp.ne.s32.totalorder %s2177_s14, %s2173_s13 }
  0xa5   : > { %s2591_s16 = scalar_select %p2943_p5, %s2181_s15, %s86_s20  }
  0xa6   : > { %s393_s27 = sand.u32 1, %s2221_s25   ;;  %s395_s4 = sand.u32 1, %s2181_s15  }
  0xa7   : > { %p2944_p3 = scmp.eq.s32.totalorder %s2221_s25, 0  ;;  %p2945_p4 = scmp.eq.s32.totalorder %s2374_s26, 0 }
  0xa8   : > { %s1551_s7 = sshll.u32 %s395_s4, 2  ;;  %s1553_s9 = sshll.u32 %s2560_s3, 6 }
  0xa9   : > { %p95_p13 = por %p93_p8, %p2944_p3  ;;  %p2603_p1 = por %p99_p10, %p2945_p4 }
  0xaa   : > { %s2947_s30 = sld [smem:[#allocation30_spill]]  ;;  %s397_s13 = scalar_lea.vmem [#allocation9], %s1551_s7 }
  0xab   : > { %s2946_s21 = scalar_select %p2603_p1, 1, 0 }
  0xac   : > { %s406_s12 = sshll.u32 %s397_s13, 4  ;;  %p2948_p7 = scmp.lt.s32.totalorder %s2221_s25, 8  ;;  %s2613_s12 = int_to_ptr.vmem [resolvable:$true] %s406_s12 }
  0xad   : > { %s394_s3 = scalar_lea.sflag [#allocation10], %s393_s27 }
  0xae   : > { %p2617_p11 = pnand %p2948_p7, %p95_p13 }
  0xb0   : > { %s2611_s28 = scalar_lea.hbm %s2947_s30, %s1553_s9  ;;  %p2043_p12 = pneg %p2617_p11 }
  0xb1   : > { %s2041_s6 = scalar_lea.hbm %s2611_s28, 64  ;;  %s2046_s20 = scalar_lea.hbm %s2947_s30, 256 }
  0xb2   : > { %p2042_p2 = scmp.ne.s32.totalorder %s2611_s28, %s2041_s6  ;;  %p2047_p5 = scmp.lt.u32.totalorder %s2611_s28, %s2947_s30 }
  0xb3   : > { %p2048_p8 = scmp.lt.u32.totalorder %s2046_s20, %s2041_s6  ;;  %p2050_p3 = scmp.lt.u32.totalorder %s2041_s6, %s2611_s28 }
  0xb4   : > { %p2044_p6 = pnand %p2043_p12, %p2042_p2 }
  0xb5   : > { %p2049_p10 = por %p2048_p8, %p2047_p5 }
  0xb6   : > { %p2045_p9 = pneg %p2044_p6 }
  0xb7   : > { %p2051_p13 = por %p2050_p3, %p2049_p10 }
  0xb9   : > { %p2052_p4 = pnand %p2051_p13, %p2045_p9 }
  0xbb   : > { %2055 = shalt.err (!%p2052_p4)
}
  0xbc   : > { %s2056_s27 = scalar_lea.vmem %s2613_s12, 64  ;;  %s2229_s9 = smov [#allocation9]  }
  0xbd   : > { %p2057_p7 = scmp.ne.s32.totalorder %s2613_s12, %s2056_s27  ;;  %s2061_s11 = sshll.u32 %s2229_s9, 4  ;;  %s2062_s11 = int_to_ptr.vmem [resolvable:$false] %s2061_s11 }
  0xbe   : > { %s2063_s10 = scalar_lea.vmem %s2062_s11, 128  ;;  %p2064_p1 = scmp.lt.s32.totalorder %s2613_s12, %s2062_s11 }
  0xbf   : > { %p2059_p2 = pnand %p2057_p7, %p2043_p12  ;;  %p2065_p5 = scmp.lt.s32.totalorder %s2063_s10, %s2056_s27 }
  0xc1   : > { %p2060_p6 = pneg %p2059_p2  ;;  %p2066_p8 = por %p2065_p5, %p2064_p1 }
  0xc3   : > { %p2067_p10 = pnand %p2066_p8, %p2060_p6 }
  0xc5   : > { %2070 = shalt.err (!%p2067_p10)
}
  0xc6   : > { %1740 = dma.hbm_to_vmem [thread:$0]  (!%p2617_p11), %s2611_s28, 64, %s2613_s12, %s394_s3  }
  0xc7   : > { %s2950_s13 = sld [smem:[#allocation25_spill]] }
  0xcd   : > { %p2951_p9 = scmp.ne.s32.totalorder %s2950_s13, 0 }
  0xce   : > { %s2649_s6 = sand.u32 (!%p2951_p9), 1, %s2189_s17  }
  0xcf   : > { %415 = sbr.rel (%p2951_p9) target bundleno = 2154 (0x86a), region = 60  ;;  %s1555_s29 = sshll.u32 (!%p2951_p9), %s2649_s6, 2 }
  0xd0   : > { %s418_s1 = scalar_lea.sflag (!%p2951_p9), [#allocation7], %s2649_s6  ;;  %s2653_s20 = scalar_lea.vmem (!%p2951_p9), [#allocation6], %s1555_s29 }
  0xd6   : > { %2152 = dma.done.wait (%p2506_p0), %s418_s1, 64  }
  0xd7   : > { %2154 = vsyncadd (%p2506_p0), %s418_s1, 4294967232  ;;  %s426_s28 = sand.u32 1, %s2374_s26   ;;  %s428_s12 = sand.u32 1, %s2177_s14  }
  0xd8   : > { %s2661_s5 = sshll.u32 %s428_s12, 2  ;;  %s427_s3 = scalar_lea.sflag [#allocation10], %s426_s28 }
  0xd9   : > { %s430_s4 = scalar_lea.vmem [#allocation9], %s2661_s5  ;;  %p2952_p1 = scmp.ne.s32.totalorder %s2946_s21, 0 }
  0xdb   : > { %2156 = dma.done.wait (%p2952_p1), %s427_s3, 64  }
  0xdc   : > { %2158 = vsyncadd (%p2952_p1), %s427_s3, 4294967232  ;;  %p2953_p11 = scmp.eq.s32.totalorder %s2374_s26, 0 }
  0xde   : > { %2160 = dma.done.wait (%p2953_p11), [#allocation10], 256   ;;  %p2954_p0 = pmov %p2953_p11 }
  0xe0   : > { %2162 = vsyncadd (%p2954_p0), [#allocation10], 4294967040  ;;  %p2955_p12 = pmov %p2954_p0 }
  0xe1   : > { %p2956_p3 = pmov %p2954_p0 }
  0xe2   : > { %2164 = dma.done.wait (%p2955_p12), [#allocation13], 512  }
  0xe3   : > { %2166 = vsyncadd (%p2956_p3), [#allocation13], 4294966784  ;;  %s1560_s8 = sshll.u32 %s2649_s6, 3  ;;  %s2957_s27 = sld [smem:[#allocation22_spill]] }
  0xe4   : > { %s2677_s7 = scalar_lea.vmem [#allocation15], %s1560_s8 }
  0xe9   : > { %p1561_p13 = scmp.ne.s32.totalorder %s2957_s27, 0 }
  0xea   : > { %vm489_vm0 = vcmask (!%p1561_p13), 31744   ;;  %v1884_v0 = vld [vmem:[#allocation11] sm:$0xff] (!%p1561_p13)   ;;  %v2230_v1 = vmov (!%p1561_p13), -inf   ;;  %v2231_v2 = vmov (!%p1561_p13), 0.0   ;;  %v1885_v3 = vld [vmem:[#allocation11 + $0x8] sm:$0xff] (!%p1561_p13)   ;;  %vm492_vm1 = vcmask (!%p1561_p13), 261120  }
  0xeb   : > { %488 = sbr.rel (%p1561_p13) target bundleno = 462 (0x1ce), region = 84  ;;  %490 = vst.msk [vmem:[#allocation3] sm:$0xff] (!%p1561_p13), %vm489_vm0, %v2230_v1  ;;  %491 = vst.msk [vmem:[#allocation4] sm:$0xff] (!%p1561_p13), %vm489_vm0, %v2231_v2  ;;  %1626 = vmatprep.subr.bf16.mxu0 (!%p1561_p13), %v2231_v2  ;;  %vm2232_vm2 = vmmov (!%p1561_p13), 0   ;;  %v494_v4 = vld [vmem:[%s2653_s20] sm:$0xf] (!%p1561_p13) }
  0xec   : > { %1627 = vmatpush3.bf16.msra.mxu0 (!%p1561_p13), %v1884_v0  ;;  %1630 = vmatprep.mubr.msk.bf16.mxu0 (!%p1561_p13), %vm2232_vm2, %v2231_v2  ;;  %493 = vst.msk [vmem:[#allocation5] sm:$0xff] (!%p1561_p13), %vm492_vm1, %v2231_v2  ;;  %s2958_s9 = sld [smem:[#allocation34_spill]] (!%p1561_p13)  ;;  %vm563_vm3 = vcmask (!%p1561_p13), 257024  }
  0xed   : > { %1628 = vmatprep.subr.bf16.mxu0 (!%p1561_p13), %v2231_v2 }
  0xf0   : > { %1629 = vmatpush3.bf16.msra.mxu0 (!%p1561_p13), %v1885_v3 }
  0xf2   : > { %v1562_v5 = vld [vmem:[%s2958_s9] ss:$0 sm:$0xff] }
  0xf3   : > { %1631 = vmatmul.mubr.msk.bf16.vlgmr.msra.gmra.mrb[0].mxu0 %vm492_vm1, %v494_v4 }
 0x1c6   : > { %v555_v6 = vpop.f32.mrb[0].mxu0 }
 0x1c7   : > { %v556_v7 = vadd.f32 %v1562_v5, %v555_v6  ;;  %v1632_v8 = vpop.f32.mrb[1].mxu0 }
 0x1c8   : > { %v558_v9 = vpop.f32.mrb[2].mxu0 }
 0x1c9   : > { %v561_v10 = vmul.f32 0.35355338, %v556_v7  ;;  %v1633_v11 = vpop.f32.mrb[3].mxu0 }
 0x1cb   : > { %v562_v12 = vpack.c.bf16 %v561_v10, %v561_v10 }
 0x1cd   : > { %564 = vst.msk [vmem:[#allocation2] sm:$0xf] %vm563_vm3, %v562_v12 }
 0x1ce PF: > { %s2959_s11 = sld [smem:[#allocation23_spill]]  ;;  %s2960_s10 = sld [smem:[#allocation22_spill]] }
 0x1d4   : > { %p1566_p4 = scmp.gt.s32.totalorder %s2960_s10, %s2959_s11 }
 0x1d5   : > { %v1895_v13 = vld [vmem:[#allocation12] sm:$0xff] (!%p1566_p4)   ;;  %v2233_v14 = vmov (!%p1566_p4), 0.0   ;;  %v1896_v15 = vld [vmem:[#allocation12 + $0x8] sm:$0xff] (!%p1566_p4)   ;;  %vm2234_vm4 = vmmov (!%p1566_p4), 0   ;;  %vm593_vm5 = vcmask (!%p1566_p4), 261120   ;;  %s2961_s1 = sld [smem:[#allocation35_spill]] (!%p1566_p4)  ;;  %v703_v40 = vlaneseq (!%p1566_p4) }
 0x1d6   : > { %568 = sbr.rel (%p1566_p4) target bundleno = 1720 (0x6b8), region = 88  ;;  %1634 = vmatprep.subr.bf16.mxu0 (!%p1566_p4), %v2233_v14  ;;  %1642 = vmatprep.subr.bf16.mxu1 (!%p1566_p4), %v2233_v14  ;;  %v569_v16 = vld [vmem:[%s430_s4] sm:$0xf] (!%p1566_p4)  ;;  %vm715_vm6 = vcmask (!%p1566_p4), 64512   ;;  %s2235_s20 = smov (!%p1566_p4), 112   ;;  %v1900_v29 = vld [vmem:[#allocation14] sm:$0xff] (!%p1566_p4)  }
 0x1d7   : > { %1635 = vmatpush3.bf16.msra.mxu0 (!%p1566_p4), %v1895_v13  ;;  %1638 = vmatprep.mubr.msk.bf16.mxu0 (!%p1566_p4), %vm2234_vm4, %v2233_v14  ;;  %s2236_s28 = smov (!%p1566_p4), 120   ;;  %v1897_v25 = vld [vmem:[#allocation2] ss:$0 sps:$4 sm:$0xff] (!%p1566_p4)   ;;  %s2237_s12 = smov (!%p1566_p4), 104   ;;  %v1901_v30 = vld [vmem:[#allocation14 + $0x8] sm:$0xff] (!%p1566_p4)   ;;  %v704_v41 = vshrl.u32 (!%p1566_p4), %v703_v40, 7 }
 0x1d8   : > { %1636 = vmatprep.subr.bf16.mxu0 (!%p1566_p4), %v2233_v14  ;;  %1646 = vmatprep.mubr.msk.bf16.mxu1 (!%p1566_p4), %vm2234_vm4, %v2233_v14  ;;  %v1898_v26 = vld [vmem:[#allocation2] ss:$0 sps:$4 sm:$0xff] (!%p1566_p4)   ;;  %s2962_s5 = sld [smem:[#allocation23_spill]] (!%p1566_p4)  ;;  %s2963_s3 = sld [smem:[#allocation22_spill]] (!%p1566_p4)  ;;  %v709_v42 = vand.u32 (!%p1566_p4), 127, %v703_v40  ;;  %v2239_v55 = vmov (!%p1566_p4), 0  }
 0x1d9   : > { %v714_v27 = vld [vmem:[#allocation2] sm:$0xf] (!%p1566_p4)  ;;  %1643 = vmatpush3.bf16.msra.mxu1 (!%p1566_p4), %v1900_v29  ;;  %v2238_v47 = vmov (!%p1566_p4), -1e+30   ;;  %1886 = vset.pattern.permute.xlu1 (!%p1566_p4), %v2239_v55  ;;  %v2240_v10 = vmov (!%p1566_p4), 1   ;;  %v762_v11 = vld [vmem:[#allocation3] sm:$0xff] (!%p1566_p4) }
 0x1da   : > { %v1899_v28 = vld [vmem:[#allocation2] ss:$0 sps:$4 sm:$0xff] (!%p1566_p4)   ;;  %1644 = vmatprep.subr.bf16.mxu1 (!%p1566_p4), %v2233_v14  ;;  %1887 = vset.pattern.permute.xlu0 (!%p1566_p4), %v2240_v10  ;;  %vm784_vm8 = vcmask (!%p1566_p4), 7168   ;;  %s2964_s21 = sld [smem:[#allocation36_spill]] (!%p1566_p4)  ;;  %vm797_vm9 = vcmask (!%p1566_p4), 1043456   ;;  %vm921_vm10 = vcmask (!%p1566_p4), 15368  }
 0x1db   : > { %1637 = vmatpush3.bf16.msra.mxu0 (!%p1566_p4), %v1896_v15  ;;  %v1567_v17 = vld [vmem:[%s2961_s1] ss:$0 sm:$0xff] (!%p1566_p4)  ;;  %vm1064_vm11 = vcmask (!%p1566_p4), 23568   ;;  %v2242_v40 = vmov (!%p1566_p4), 3   ;;  %vm1206_vm12 = vcmask (!%p1566_p4), 31768   ;;  %s2243_s9 = smov (!%p1566_p4), 8  }
 0x1dc   : > { %1650 = vmatprep.subr.bf16.mxu0 (!%p1566_p4), %v2233_v14  ;;  %s2244_s11 = smov (!%p1566_p4), 16   ;;  %s2245_s10 = smov (!%p1566_p4), 24   ;;  %vm985_vm13 = vcmask (!%p1566_p4), 130112   ;;  %vm1127_vm14 = vcmask (!%p1566_p4), 195712   ;;  %vm1269_vm15 = vcmask (!%p1566_p4), 261312  }
 0x1dd   : > { %1645 = vmatpush3.bf16.msra.mxu1 %v1901_v30 }
 0x1de   : > { %1639 = vmatmul.mubr.msk.bf16.vlgmr.msra.gmra.mrb[0].mxu0 %vm593_vm5, %v569_v16  ;;  %1656 = vmatprep.subr.bf16.mxu1 %v2233_v14  ;;  %s1575_s4 = sshll.u32 %s2962_s5, 3  ;;  %s1576_s8 = sshll.u32 %s2963_s3, 3 }
 0x1df   : > { %1652 = vmatprep.mubr.msk.bf16.mxu0 %vm2234_vm4, %v2233_v14  ;;  %v705_v43 = vstv %s1575_s4  ;;  %v710_v44 = vstv %s1576_s8 }
 0x1e0   : > { %1647 = vmatmul.mubr.msk.bf16.vlgmr.msra.gmra.mrb[0].mxu1 %vm593_vm5, %v569_v16  ;;  %v706_v45 = vadd.s32 %v705_v43, %v704_v41  ;;  %v711_v46 = vadd.s32 %v710_v44, %v709_v42 }
 0x1e1   : > { %1658 = vmatprep.mubr.msk.bf16.mxu1 %vm2234_vm4, %v2233_v14 }
 0x1e2   : > { %vm712_vm7 = vcmp.ge.s32.totalorder %v706_v45, %v711_v46 }
 0x1e3   : > { %v713_v48 = vsel %vm712_vm7, 0.0, %v2238_v47 }
 0x2b1   : > { %v631_v18 = vpop.f32.mrb[0].mxu0 }
 0x2b2   : > { %v632_v19 = vadd.f32 %v1567_v17, %v631_v18  ;;  %v1640_v20 = vpop.f32.mrb[1].mxu0  ;;  %v1571_v18 = vld [vmem:[%s2964_s21] ss:$0 sm:$0xff] }
 0x2b3   : > { %v634_v21 = vpop.f32.mrb[2].mxu0  ;;  %v695_v12 = vpop.f32.mrb[0].mxu1 }
 0x2b4   : > { %v637_v22 = vpack.c.bf16 %v632_v19, %v632_v19  ;;  %v1641_v23 = vpop.f32.mrb[3].mxu0  ;;  %v1648_v13 = vpop.f32.mrb[1].mxu1  ;;  %v696_v20 = vadd.f32 %v1571_v18, %v695_v12 }
 0x2b5   : > { %v698_v16 = vpop.f32.mrb[2].mxu1 }
 0x2b6   : > { %994 = vrot.lane.b32.xlu1 %v637_v22, %s2235_s20  ;;  %851 = vrot.lane.b32.xlu0 %v637_v22, %s2236_s28  ;;  %v720_v24 = vsel %vm715_vm6, %v637_v22, 0  ;;  %v1649_v19 = vpop.f32.mrb[3].mxu1  ;;  %v786_v16 = vld [vmem:[#allocation5] sm:$0xff] }
 0x2b7   : > { %1651 = vmatpush3.bf16.xpose.msra.mxu0 %v720_v24  ;;  %v2241_v24 = vmov 2  }
 0x2b8   : > { %1662 = vmatprep.subr.bf16.mxu0 %v2233_v14 }
 0x2ba   : > { %848 = vrot.lane.b32.xlu0 %v1897_v25, %s2236_s28  ;;  %992 = vrot.lane.b32.xlu1 %v1898_v26, %s2235_s20 }
 0x2be   : > { %1136 = vrot.lane.b32.xlu0 %v637_v22, %s2237_s12  ;;  %1653 = vmatmul.mubr.msk.bf16.vlgmr.msra.gmra.mrb[4].mxu0 %vm715_vm6, %v714_v27  ;;  %v701_v22 = vpack.c.bf16 %v696_v20, %v696_v20 }
 0x2bf   : > { %1134 = vrot.lane.b32.xlu1 %v1899_v28, %s2237_s12  ;;  %1664 = vmatprep.mubr.msk.bf16.mxu0 %vm2234_vm4, %v2233_v14 }
 0x2c0   : > { %v799_v23 = vsel %vm797_vm9, %v701_v22, 0 }
 0x2c1   : > { %1657 = vmatpush3.bf16.msra.mxu1 %v799_v23 }
 0x2c2   : > { %1668 = vmatprep.subr.bf16.mxu1 %v2233_v14 }
 0x328   : > { %v852_v31 = vpop.permute.xlu0 %851  ;;  %v995_v33 = vpop.permute.xlu1 %994 }
 0x329   : > { %v857_v32 = vsel %vm715_vm6, %v852_v31, 0  ;;  %v1000_v35 = vsel %vm715_vm6, %v995_v33, 0 }
 0x32a   : > { %1663 = vmatpush3.bf16.xpose.msra.mxu0 %v857_v32 }
 0x32b   : > { %1674 = vmatprep.subr.bf16.mxu0 %v2233_v14 }
 0x32c   : > { %v849_v34 = vpop.permute.xlu0 %848  ;;  %v993_v37 = vpop.permute.xlu1 %992 }
 0x330   : > { %v1137_v36 = vpop.permute.xlu0 %1136 }
 0x331   : > { %1665 = vmatmul.mubr.msk.bf16.vlgmr.msra.gmra.mrb[8].mxu0 %vm715_vm6, %v849_v34  ;;  %v1142_v38 = vsel %vm715_vm6, %v1137_v36, 0  ;;  %v1135_v39 = vpop.permute.xlu1 %1134 }
 0x332   : > { %1675 = vmatpush3.bf16.xpose.msra.mxu0 %v1000_v35  ;;  %1676 = vmatprep.mubr.msk.bf16.mxu0 %vm2234_vm4, %v2233_v14 }
 0x333   : > { %1686 = vmatprep.subr.bf16.mxu0 %v2233_v14 }
 0x339   : > { %1677 = vmatmul.mubr.msk.bf16.vlgmr.msra.gmra.mrb[12].mxu0 %vm715_vm6, %v993_v37 }
 0x33a   : > { %1687 = vmatpush3.bf16.xpose.msra.mxu0 %v1142_v38  ;;  %1688 = vmatprep.mubr.msk.bf16.mxu0 %vm2234_vm4, %v2233_v14 }
 0x341   : > { %1689 = vmatmul.mubr.msk.bf16.vlgmr.msra.gmra.mrb[16].mxu0 %vm715_vm6, %v1135_v39 }
 0x391   : > { %v756_v49 = vpop.f32.mrb[4].mxu0 }
 0x392   : > { %v2732_v50 = vadd.f32 %v756_v49, %v713_v48  ;;  %v1654_v51 = vpop.f32.mrb[5].mxu0 }
 0x393   : > { %v759_v52 = vpop.f32.mrb[6].mxu0 }
 0x394   : > { %v763_v53 = vsel %vm715_vm6, %v2732_v50, -inf  ;;  %v1655_v54 = vpop.f32.mrb[7].mxu0 }
 0x395   : > { %764 = vmax.xlane.f32.xlu0 %v763_v53 }
 0x404   : > { %v893_v56 = vpop.f32.mrb[8].mxu0 }
 0x405   : > { %v2736_v57 = vadd.f32 %v893_v56, %v713_v48  ;;  %v1666_v58 = vpop.f32.mrb[9].mxu0 }
 0x406   : > { %v896_v59 = vpop.f32.mrb[10].mxu0 }
 0x407   : > { %v1667_v60 = vpop.f32.mrb[11].mxu0  ;;  %v900_v61 = vsel %vm715_vm6, %v2736_v57, -inf }
 0x408   : > { %901 = vmax.xlane.f32.xlu1 %v900_v61 }
 0x40c   : > { %v1036_v62 = vpop.f32.mrb[12].mxu0 }
 0x40d   : > { %v2740_v63 = vadd.f32 %v1036_v62, %v713_v48  ;;  %v1678_v0 = vpop.f32.mrb[13].mxu0 }
 0x40e   : > { %v1039_v1 = vpop.f32.mrb[14].mxu0 }
 0x40f   : > { %v1679_v2 = vpop.f32.mrb[15].mxu0  ;;  %v1043_v3 = vsel %vm715_vm6, %v2740_v63, -inf }
 0x410   : > { %1044 = vmax.xlane.f32.xlu0 %v1043_v3 }
 0x414   : > { %v1178_v4 = vpop.f32.mrb[16].mxu0 }
 0x415   : > { %v2744_v5 = vadd.f32 %v1178_v4, %v713_v48  ;;  %v1690_v6 = vpop.f32.mrb[17].mxu0 }
 0x416   : > { %v1181_v7 = vpop.f32.mrb[18].mxu0 }
 0x417   : > { %v1691_v8 = vpop.f32.mrb[19].mxu0  ;;  %v1185_v9 = vsel %vm715_vm6, %v2744_v5, -inf }
 0x418   : > { %1186 = vmax.xlane.f32.xlu0 %v1185_v9 }
 0x422   : > { %v765_v15 = vpop.xlane.xlu0 %764 }
 0x423   : > { %v766_v17 = vmax.f32 %v762_v11, %v765_v15 }
 0x425   : > { %v767_v21 = vsub.f32 %v762_v11, %v766_v17  ;;  %843 = vst.msk [vmem:[#allocation3] sm:$0xff] %vm784_vm8, %v766_v17  ;;  %772 = vperm.xlu1 %1886, %v766_v17   ;;  %v778_v11 = vld [vmem:[#allocation4] sm:$0xff] }
 0x427   : > { %v768_v25 = vmul.f32 1.442695, %v767_v21 }
 0x429   : > { %1888 = vset.pattern.permute.xlu1 %v2241_v24  ;;  %1902 = vpow2.f32 %v768_v25 }
 0x42c   : > { %v899_v26 = vld [vmem:[#allocation3] sm:$0xff] }
 0x433   : > { %v2755_v30 = vpop.eup %1902 }
 0x434   : > { %v779_v12 = vmul.f32 %v2755_v30, %v778_v11 }
 0x495   : > { %v902_v27 = vpop.xlane.xlu1 %901 }
 0x496   : > { %v903_v28 = vmax.f32 %v899_v26, %v902_v27 }
 0x498   : > { %v904_v29 = vsub.f32 %v899_v26, %v903_v28  ;;  %987 = vst.msk [vmem:[#allocation3] sm:$0xff] %vm921_vm10, %v903_v28  ;;  %909 = vperm.xlu0 %1887, %v903_v28  }
 0x49a   : > { %v905_v48 = vmul.f32 1.442695, %v904_v29 }
 0x49c   : > { %1890 = vset.pattern.permute.xlu0 %v2239_v55 }
 0x49d   : > { %789 = vperm.xlu0 %1890, %v2755_v30   ;;  %v1045_v31 = vpop.xlane.xlu0 %1044 }
 0x49f   : > { %v1042_v32 = vld [vmem:[#allocation3] sm:$0xff] }
 0x4a0   : > { %v1046_v33 = vmax.f32 %v1042_v32, %v1045_v31 }
 0x4a1   : > { %1892 = vset.pattern.permute.xlu0 %v2241_v24 }
 0x4a2   : > { %v1047_v34 = vsub.f32 %v1042_v32, %v1046_v33  ;;  %1129 = vst.msk [vmem:[#allocation3] sm:$0xff] %vm1064_vm11, %v1046_v33  ;;  %1052 = vperm.xlu1 %1888, %v1046_v33  }
 0x4a4   : > { %v1048_v35 = vmul.f32 1.442695, %v1047_v34  ;;  %v773_v36 = vpop.permute.xlu1 %772 }
 0x4a5   : > { %v775_v37 = vsub.f32 %v2732_v50, %v773_v36  ;;  %v1187_v39 = vpop.xlane.xlu0 %1186 }
 0x4a6   : > { %1904 = vpow2.f32 %v1048_v35  ;;  %932 = vrot.lane.b32.xlu1 %v701_v22, %s2236_s28 }
 0x4a7   : > { %v776_v38 = vmul.f32 1.442695, %v775_v37  ;;  %1889 = vset.pattern.permute.xlu1 %v2242_v40 }
 0x4a9   : > { %1906 = vpow2.f32 %v776_v38  ;;  %v1184_v41 = vld [vmem:[#allocation3] sm:$0xff] }
 0x4aa   : > { %v1188_v42 = vmax.f32 %v1184_v41, %v1187_v39  ;;  %1908 = vpow2.f32 %v905_v48 }
 0x4ac   : > { %v1189_v43 = vsub.f32 %v1184_v41, %v1188_v42  ;;  %1271 = vst.msk [vmem:[#allocation3] sm:$0xff] %vm1206_vm12, %v1188_v42  ;;  %1194 = vperm.xlu1 %1889, %v1188_v42  }
 0x4ae   : > { %v1190_v7 = vmul.f32 1.442695, %v1189_v43 }
 0x4b0   : > { %v2762_v44 = vpop.eup %1904  ;;  %1074 = vrot.lane.b32.xlu1 %v701_v22, %s2235_s20 }
 0x4b1   : > { %1069 = vperm.xlu0 %1892, %v2762_v44   ;;  %1891 = vset.pattern.permute.xlu1 %v2240_v10 }
 0x4b3   : > { %v1907_v45 = vpop.eup %1906 }
 0x4b4   : > { %1216 = vrot.lane.b32.xlu1 %v701_v22, %s2237_s12  ;;  %v793_v46 = vpack.c.bf16 %v1907_v45, %v1907_v45  ;;  %v780_v47 = vsel %vm715_vm6, %v1907_v45, 0.0  ;;  %v1909_v49 = vpop.eup %1908 }
 0x4b5   : > { %1894 = vset.pattern.permute.xlu0 %v2242_v40 }
 0x4b6   : > { %1659 = vmatmul.mubr.msk.bf16.vlgmr.msra.gmra.mrb[4].mxu1 %vm715_vm6, %v793_v46 }
 0x4b7   : > { %1670 = vmatprep.mubr.msk.bf16.mxu1 %vm2234_vm4, %v2233_v14 }
 0x4d8   : > { %781 = vadd.xlane.f32.xlu1 %v780_v47 }
 0x4e9   : > { %926 = vperm.xlu1 %1891, %v1909_v49  }
 0x4ed   : > { %1893 = vset.pattern.permute.xlu1 %v2242_v40 }
 0x517   : > { %v910_v50 = vpop.permute.xlu0 %909 }
 0x518   : > { %v912_v51 = vsub.f32 %v2736_v57, %v910_v50 }
 0x51a   : > { %v913_v52 = vmul.f32 1.442695, %v912_v51 }
 0x51c   : > { %1910 = vpow2.f32 %v913_v52  ;;  %v790_v17 = vpop.permute.xlu0 %789 }
 0x51d   : > { %v792_v18 = vmul.f32 %v790_v17, %v786_v16 }
 0x521   : > { %v1053_v53 = vpop.permute.xlu1 %1052 }
 0x522   : > { %v1055_v54 = vsub.f32 %v2740_v63, %v1053_v53 }
 0x524   : > { %v1056_v55 = vmul.f32 1.442695, %v1055_v54 }
 0x525   : > { %v933_v56 = vpop.permute.xlu1 %932 }
 0x526   : > { %v1911_v58 = vpop.eup %1910  ;;  %1912 = vpow2.f32 %v1056_v55  ;;  %v938_v59 = vsel %vm797_vm9, %v933_v56, 0 }
 0x527   : > { %1669 = vmatpush3.bf16.msra.mxu1 %v938_v59  ;;  %v917_v60 = vsel %vm715_vm6, %v1911_v58, 0.0  ;;  %v930_v61 = vpack.c.bf16 %v1911_v58, %v1911_v58 }
 0x528   : > { %918 = vadd.xlane.f32.xlu0 %v917_v60  ;;  %1680 = vmatprep.subr.bf16.mxu1 %v2233_v14 }
 0x52a   : > { %1671 = vmatmul.mubr.msk.bf16.vlgmr.msra.gmra.mrb[8].mxu1 %vm715_vm6, %v930_v61 }
 0x52b   : > { %v1195_v57 = vpop.permute.xlu1 %1194  ;;  %1682 = vmatprep.mubr.msk.bf16.mxu1 %vm2234_vm4, %v2233_v14 }
 0x52c   : > { %v1197_v62 = vsub.f32 %v2744_v5, %v1195_v57 }
 0x52e   : > { %v1198_v63 = vmul.f32 1.442695, %v1197_v62 }
 0x52f   : > { %v1075_v0 = vpop.permute.xlu1 %1074 }
 0x530   : > { %v1913_v1 = vpop.eup %1912  ;;  %1914 = vpow2.f32 %v1198_v63  ;;  %v1080_v2 = vsel %vm797_vm9, %v1075_v0, 0  ;;  %v1070_v23 = vpop.permute.xlu0 %1069 }
 0x531   : > { %1681 = vmatpush3.bf16.msra.mxu1 %v1080_v2  ;;  %v1060_v3 = vsel %vm715_vm6, %v1913_v1, 0.0  ;;  %v1073_v4 = vpack.c.bf16 %v1913_v1, %v1913_v1  ;;  %1916 = vpow2.f32 %v1190_v7 }
 0x532   : > { %1061 = vadd.xlane.f32.xlu1 %v1060_v3  ;;  %1692 = vmatprep.subr.bf16.mxu1 %v2233_v14 }
 0x533   : > { %v1217_v6 = vpop.permute.xlu1 %1216 }
 0x534   : > { %v1222_v8 = vsel %vm797_vm9, %v1217_v6, 0  ;;  %1683 = vmatmul.mubr.msk.bf16.vlgmr.msra.gmra.mrb[12].mxu1 %vm715_vm6, %v1073_v4 }
 0x535   : > { %1693 = vmatpush3.bf16.msra.mxu1 %v1222_v8  ;;  %1694 = vmatprep.mubr.msk.bf16.mxu1 %vm2234_vm4, %v2233_v14 }
 0x53a   : > { %v1915_v5 = vpop.eup %1914 }
 0x53b   : > { %v1215_v9 = vpack.c.bf16 %v1915_v5, %v1915_v5  ;;  %v2788_v10 = vpop.eup %1916  ;;  %v1202_v45 = vsel %vm715_vm6, %v1915_v5, 0.0 }
 0x53d   : > { %1695 = vmatmul.mubr.msk.bf16.vlgmr.msra.gmra.mrb[16].mxu1 %vm715_vm6, %v1215_v9 }
 0x543   : > { %1211 = vperm.xlu1 %1893, %v2788_v10  }
 0x565   : > { %v782_v13 = vpop.xlane.xlu1 %781 }
 0x566   : > { %v783_v15 = vadd.f32 %v782_v13, %v779_v12 }
 0x568   : > { %785 = vst.msk [vmem:[#allocation4] sm:$0xff] %vm784_vm8, %v783_v15 }
 0x569   : > { %v927_v28 = vpop.permute.xlu1 %926 }
 0x56f   : > { %v915_v24 = vld [vmem:[#allocation4] sm:$0xff] }
 0x570   : > { %v916_v25 = vmul.f32 %v1909_v49, %v915_v24 }
 0x589   : > { %v835_v14 = vpop.f32.mrb[4].mxu1 }
 0x58a   : > { %v841_v19 = vadd.f32 %v835_v14, %v792_v18  ;;  %v1660_v20 = vpop.f32.mrb[5].mxu1 }
 0x58b   : > { %v838_v21 = vpop.f32.mrb[6].mxu1 }
 0x58c   : > { %842 = vst.msk [vmem:[#allocation5] sm:$0xff] %vm715_vm6, %v841_v19  ;;  %v1661_v22 = vpop.f32.mrb[7].mxu1 }
 0x593   : > { %v923_v46 = vld [vmem:[#allocation5] sm:$0xff] }
 0x594   : > { %v929_v47 = vmul.f32 %v927_v28, %v923_v46 }
 0x5b5   : > { %v919_v26 = vpop.xlane.xlu0 %918 }
 0x5b6   : > { %v920_v27 = vadd.f32 %v919_v26, %v916_v25 }
 0x5b8   : > { %922 = vst.msk [vmem:[#allocation4] sm:$0xff] %vm921_vm10, %v920_v27 }
 0x5bf   : > { %v1058_v29 = vld [vmem:[#allocation4] sm:$0xff]  ;;  %v1062_v31 = vpop.xlane.xlu1 %1061 }
 0x5c0   : > { %v1059_v30 = vmul.f32 %v2762_v44, %v1058_v29 }
 0x5c2   : > { %v1063_v32 = vadd.f32 %v1062_v31, %v1059_v30 }
 0x5c3   : > { %v1212_v54 = vpop.permute.xlu1 %1211 }
 0x5c4   : > { %1065 = vst.msk [vmem:[#allocation4] sm:$0xff] %vm1064_vm11, %v1063_v32 }
 0x5cb   : > { %v1200_v60 = vld [vmem:[#allocation4] sm:$0xff] }
 0x5cc   : > { %v1201_v61 = vmul.f32 %v2788_v10, %v1200_v60 }
 0x5fd   : > { %v974_v33 = vpop.f32.mrb[8].mxu1 }
 0x5fe   : > { %v1672_v34 = vpop.f32.mrb[9].mxu1  ;;  %981 = vrot.lane.b32.xlu0 %v974_v33, %s2243_s9 }
 0x5ff   : > { %v977_v35 = vpop.f32.mrb[10].mxu1 }
 0x600   : > { %v1673_v36 = vpop.f32.mrb[11].mxu1 }
 0x607   : > { %v1116_v37 = vpop.f32.mrb[12].mxu1 }
 0x608   : > { %v1684_v38 = vpop.f32.mrb[13].mxu1  ;;  %1123 = vrot.lane.b32.xlu0 %v1116_v37, %s2244_s11 }
 0x609   : > { %v1119_v39 = vpop.f32.mrb[14].mxu1 }
 0x60a   : > { %v1685_v40 = vpop.f32.mrb[15].mxu1 }
 0x610   : > { %v1258_v41 = vpop.f32.mrb[16].mxu1 }
 0x611   : > { %1265 = vrot.lane.b32.xlu1 %v1258_v41, %s2245_s10  ;;  %v1696_v42 = vpop.f32.mrb[17].mxu1 }
 0x612   : > { %v1261_v43 = vpop.f32.mrb[18].mxu1 }
 0x613   : > { %v1697_v44 = vpop.f32.mrb[19].mxu1 }
 0x627   : > { %1203 = vadd.xlane.f32.xlu0 %v1202_v45 }
 0x670   : > { %v982_v48 = vpop.permute.xlu0 %981 }
 0x671   : > { %v984_v49 = vadd.f32 %v982_v48, %v929_v47 }
 0x673   : > { %986 = vst.msk [vmem:[#allocation5] sm:$0xff] %vm985_vm13, %v984_v49 }
 0x67a   : > { %v1066_v50 = vld [vmem:[#allocation5] sm:$0xff]  ;;  %v1124_v52 = vpop.permute.xlu0 %1123 }
 0x67b   : > { %v1072_v51 = vmul.f32 %v1070_v23, %v1066_v50 }
 0x67d   : > { %v1126_v53 = vadd.f32 %v1124_v52, %v1072_v51 }
 0x67f   : > { %1128 = vst.msk [vmem:[#allocation5] sm:$0xff] %vm1127_vm14, %v1126_v53 }
 0x683   : > { %v1266_v58 = vpop.permute.xlu1 %1265 }
 0x686   : > { %v1208_v55 = vld [vmem:[#allocation5] sm:$0xff] }
 0x687   : > { %v1214_v56 = vmul.f32 %v1212_v54, %v1208_v55 }
 0x689   : > { %v1268_v59 = vadd.f32 %v1266_v58, %v1214_v56 }
 0x68b   : > { %1270 = vst.msk [vmem:[#allocation5] sm:$0xff] %vm1269_vm15, %v1268_v59 }
 0x6b4   : > { %v1204_v57 = vpop.xlane.xlu0 %1203 }
 0x6b5   : > { %v1205_v62 = vadd.f32 %v1204_v57, %v1201_v61 }
 0x6b7   : > { %1207 = vst.msk [vmem:[#allocation4] sm:$0xff] %vm1206_vm12, %v1205_v62 }
 0x6b8 PF: > { %s2965_s13 = sld [smem:[#allocation22_spill]] }
 0x6be   : > { %p1588_p7 = scmp.ne.s32.totalorder %s2965_s13, 1 }
 0x6bf   : > { %v1276_v63 = vld [vmem:[#allocation4] sm:$0xff] (!%p1588_p7)  ;;  %v2246_v0 = vmov (!%p1588_p7), 0   ;;  %v2247_v1 = vmov (!%p1588_p7), 2   ;;  %v2248_v3 = vmov (!%p1588_p7), 1   ;;  %v2249_v4 = vmov (!%p1588_p7), 3   ;;  %s2966_s20 = sld [smem:[#allocation37_spill]] (!%p1588_p7) }
 0x6c0   : > { %1275 = sbr.rel (%p1588_p7) target bundleno = 2124 (0x84c), region = 92  ;;  %1918 = vset.pattern.permute.xlu0 (!%p1588_p7), %v2246_v0  ;;  %1925 = vrcp.f32 (!%p1588_p7), %v1276_v63  ;;  %1920 = vset.pattern.permute.xlu1 (!%p1588_p7), %v2247_v1  ;;  %v2250_v7 = vmov (!%p1588_p7), 0.0   ;;  %vm2251_vm0 = vmmov (!%p1588_p7), 0   ;;  %v1278_v5 = vld [vmem:[#allocation5] sm:$0xff] (!%p1588_p7)  ;;  %vm1285_vm1 = vcmask (!%p1588_p7), 64512   ;;  %s2968_s8 = sld [smem:[#allocation38_spill]] (!%p1588_p7) }
 0x6c1   : > { %1698 = vmatprep.subr.bf16.mxu0 (!%p1588_p7), %v2250_v7  ;;  %1702 = vmatprep.mubr.msk.bf16.mxu0 (!%p1588_p7), %vm2251_vm0, %v2250_v7  ;;  %vm1293_vm2 = vcmask (!%p1588_p7), 130112   ;;  %vm1301_vm3 = vcmask (!%p1588_p7), 195712   ;;  %vm1309_vm4 = vcmask (!%p1588_p7), 261312   ;;  %vm1336_vm5 = vcmask (!%p1588_p7), 261120  }
 0x6c5   : > { %s2967_s28 = smov (!%p1588_p7), %s2966_s20  ;;  %v1923_v6 = vld [vmem:[%s2966_s20] sm:$0xff] (!%p1588_p7)  }
 0x6c6   : > { %1699 = vmatpush3.bf16.msra.mxu0 (!%p1588_p7), %v1923_v6  ;;  %v1924_v8 = vld [vmem:[%s2967_s28 + $0x8] sm:$0xff] (!%p1588_p7)   ;;  %v1589_v22 = vld [vmem:[%s2968_s8] ss:$0 sm:$0xff] (!%p1588_p7) }
 0x6c7   : > { %1700 = vmatprep.subr.bf16.mxu0 %v2250_v7 }
 0x6ca   : > { %v1926_v2 = vpop.eup %1925  ;;  %1701 = vmatpush3.bf16.msra.mxu0 %v1924_v8 }
 0x6cb   : > { %1281 = vperm.xlu0 %1918, %v1926_v2   ;;  %1297 = vperm.xlu1 %1920, %v1926_v2  }
 0x6cf   : > { %1919 = vset.pattern.permute.xlu0 %v2248_v3  ;;  %1921 = vset.pattern.permute.xlu1 %v2249_v4 }
 0x6d0   : > { %1289 = vperm.xlu0 %1919, %v1926_v2   ;;  %1305 = vperm.xlu1 %1921, %v1926_v2  }
 0x6d4   : > { %1922 = vset.pattern.permute.xlu0 %v2249_v4 }
 0x74a   : > { %v1282_v9 = vpop.permute.xlu0 %1281  ;;  %v1298_v15 = vpop.permute.xlu1 %1297 }
 0x74b   : > { %v1284_v10 = vmul.f32 %v1282_v9, %v1278_v5 }
 0x74d   : > { %1286 = vst.msk [vmem:[#allocation5] sm:$0xff] %vm1285_vm1, %v1284_v10 }
 0x74f   : > { %v1290_v11 = vpop.permute.xlu0 %1289  ;;  %v1306_v18 = vpop.permute.xlu1 %1305 }
 0x754   : > { %v1287_v12 = vld [vmem:[#allocation5] sm:$0xff] }
 0x755   : > { %v1292_v13 = vmul.f32 %v1290_v11, %v1287_v12 }
 0x757   : > { %1294 = vst.msk [vmem:[#allocation5] sm:$0xff] %vm1293_vm2, %v1292_v13 }
 0x75e   : > { %v1295_v16 = vld [vmem:[#allocation5] sm:$0xff] }
 0x75f   : > { %v1300_v17 = vmul.f32 %v1298_v15, %v1295_v16 }
 0x761   : > { %1302 = vst.msk [vmem:[#allocation5] sm:$0xff] %vm1301_vm3, %v1300_v17 }
 0x768   : > { %v1303_v14 = vld [vmem:[#allocation5] sm:$0xff] }
 0x769   : > { %v1308_v19 = vmul.f32 %v1306_v18, %v1303_v14 }
 0x76b   : > { %1310 = vst.msk [vmem:[#allocation5] sm:$0xff] %vm1309_vm4, %v1308_v19 }
 0x772   : > { %v1311_v20 = vld [vmem:[#allocation5] sm:$0xff] }
 0x773   : > { %v1312_v21 = vpack.c.bf16 %v1311_v20, %v1311_v20 }
 0x775   : > { %1703 = vmatmul.mubr.msk.bf16.vlgmr.msra.gmra.mrb[0].mxu0 %vm1336_vm5, %v1312_v21 }
 0x848   : > { %v1374_v23 = vpop.f32.mrb[0].mxu0 }
 0x849   : > { %v1375_v24 = vadd.f32 %v1589_v22, %v1374_v23  ;;  %v1704_v25 = vpop.f32.mrb[1].mxu0 }
 0x84a   : > { %v1377_v26 = vpop.f32.mrb[2].mxu0 }
 0x84b   : > { %1380 = vst.msk [vmem:[%s2677_s7] sm:$0xff] %vm1336_vm5, %v1375_v24  ;;  %v1705_v27 = vpop.f32.mrb[3].mxu0 }
 0x84c PF: > { %s2969_s27 = sld [smem:[#allocation24_spill]]  ;;  %s2970_s26 = sld [smem:[#allocation23_spill]] }
 0x84d   : > { %s2971_s21 = sld [smem:[#allocation28_spill]]  ;;  %s1397_s10 = sshll.u32 %s2677_s7, 4  ;;  %s2814_s10 = int_to_ptr.vmem [resolvable:$true] %s1397_s10 }
 0x84e   : > { %s2972_s20 = sld [smem:[#allocation39_spill]]  ;;  %s1382_s3 = scalar_lea.sflag [#allocation8], %s2649_s6 }
 0x84f   : > { %s2071_s4 = scalar_lea.vmem %s2814_s10, 128  ;;  %s2252_s8 = smov [#allocation15]  }
 0x850   : > { %p2072_p2 = scmp.ne.s32.totalorder %s2814_s10, %s2071_s4 }
 0x852   : > { %s1594_s9 = sshll.u32 %s2969_s27, 1  ;;  %s2075_s27 = sshll.u32 %s2252_s8, 4  ;;  %s2076_s27 = int_to_ptr.vmem [resolvable:$false] %s2075_s27 }
 0x853   : > { %s1393_s11 = sadd.s32 %s2970_s26, %s1594_s9  ;;  %p2974_p6 = scmp.ne.s32.totalorder %s2971_s21, 0 }
 0x854   : > { %s1595_s13 = sshll.u32 %s1393_s11, 7  ;;  %s2973_s12 = smov %s2972_s20 }
 0x855   : > { %s1395_s5 = scalar_lea.hbm %s2972_s20, %s1595_s13  ;;  %p2073_p5 = pnand %p2072_p2, %p2974_p6 }
 0x856   : > { %s2077_s7 = scalar_lea.vmem %s2076_s27, 256  ;;  %p2078_p10 = scmp.lt.s32.totalorder %s2814_s10, %s2076_s27 }
 0x857   : > { %p2074_p8 = pneg %p2073_p5  ;;  %p2079_p9 = scmp.lt.s32.totalorder %s2077_s7, %s2071_s4 }
 0x859   : > { %p2080_p1 = por %p2079_p9, %p2078_p10 }
 0x85b   : > { %p2081_p11 = pnand %p2080_p1, %p2074_p8 }
 0x85d   : > { %2084 = shalt.err (!%p2081_p11)
}
 0x85e   : > { %s2085_s26 = scalar_lea.hbm %s1395_s5, 128  ;;  %s2089_s11 = scalar_lea.hbm %s2973_s12, 512 }
 0x85f   : > { %p2086_p0 = scmp.ne.s32.totalorder %s1395_s5, %s2085_s26  ;;  %p2090_p13 = scmp.lt.u32.totalorder %s1395_s5, %s2973_s12 }
 0x860   : > { %p2091_p4 = scmp.lt.u32.totalorder %s2089_s11, %s2085_s26  ;;  %p2093_p2 = scmp.lt.u32.totalorder %s2085_s26, %s1395_s5 }
 0x861   : > { %p2087_p12 = pnand %p2086_p0, %p2974_p6 }
 0x862   : > { %p2092_p7 = por %p2091_p4, %p2090_p13 }
 0x863   : > { %p2088_p3 = pneg %p2087_p12 }
 0x864   : > { %p2094_p5 = por %p2093_p2, %p2092_p7 }
 0x866   : > { %p2095_p8 = pnand %p2094_p5, %p2088_p3 }
 0x868   : > { %2098 = shalt.err (!%p2095_p8)
}
 0x869   : > { %1722 = dma.vmem_to_hbm [thread:$0]  (%p2974_p6), %s2814_s10, 128, %s1395_s5, %s1382_s3  }
 0x86a PF: > { %s2975_s1 = sld [smem:[#allocation21_spill]]  ;;  %s2976_s20 = sld [smem:[#allocation29_spill]] }
 0x86b   : > { %p1752_p10 = scmp.ge.s32.totalorder %s2221_s25, 2 }
 0x870   : > { %s1409_s4 = sand.u32 1, %s2975_s1   ;;  %p2977_p9 = scmp.ne.s32.totalorder %s2976_s20, 0 }
 0x871   : > { %s1410_s8 = scalar_lea.sflag [#allocation8], %s1409_s4 }
 0x872   : > { %p1742_p1 = pnand %p1752_p10, %p2977_p9 }
 0x874   : > { %2168 = dma.done.wait (!%p1742_p1), %s1410_s8, 128  }
 0x875   : > { %2170 = vsyncadd (!%p1742_p1), %s1410_s8, 4294967168  ;;  %s30_s25 = sadd.s32 1, %s2221_s25   ;;  %s2979_s10 = sld [smem:[#allocation26_spill]] }
 0x876   : > { %p2841_p11 = scmp.ge.s32.totalorder %s30_s25, 10   ;;  %s2980_s5 = sld [smem:[#allocation27_spill]] }
 0x877   : > { %s2981_s3 = smov %s3003_s19  ;;  %s2982_s13 = smov %s2177_s14 }
 0x878   : > { %s2983_s14 = smov %s2181_s15  ;;  %s2984_s15 = smov %s2591_s16 }
 0x879   : > { %s2985_s16 = smov %s2189_s17  ;;  %s2986_s17 = smov %s2193_s18 }
 0x87a   : > { %s2987_s18 = smov %s2541_s2  ;;  %s2988_s19 = smov %s2209_s22 }
 0x87b   : > { %s2989_s20 = smov %s2213_s23  ;;  %s2990_s21 = smov %s2217_s24 }
 0x87c   : > { %s2991_s22 = smov %s2979_s10  ;;  %s2992_s23 = smov %s2980_s5 }
 0x87d   : > { %s2993_s24 = smov %s2981_s3  ;;  %29 = sbr.rel (!%p2841_p11) target bundleno = 24 (0x18), region = 142 }
 0x884   :  { %1415 = vsyncpa [#allocation7], 1 }
 0x885   :  { %1417 = vsyncpa [#allocation7 + $0x1], 1 }
 0x886   :  { %1418 = vsyncpa [#allocation10], 1 }
 0x887   :  { %1420 = vsyncpa [#allocation10 + $0x1], 1 }
 0x888   :  { %1421 = vsyncpa [#allocation13], 1 }
 0x889   :  { %1422 = vsyncpa [#allocation8], 1 }
 0x88a   :  { %1424 = vsyncpa [#allocation8 + $0x1], 1 }

</bundles_post_ra>
